<compile_context>
chip_gen: v5e
topology: v5e:2x2
jax: 0.10.0
libtpu: 0.0.40
codegen_flags: <defaults>
</compile_context>

<pallas_src>
import jax
import jax.numpy as jnp
from jax import lax
from jax.experimental import pallas as pl
from jax.experimental.pallas import tpu as pltpu

# ----------------------------- model config (small) -----------------------------
B = 2            # batch
S = 8            # sequence length
H = 32           # hidden size
NH = 4           # attention heads
DH = H // NH     # head dim
FF = 64          # intermediate (FFN) size
V = 64           # vocab size
MAXP = 16        # max position embeddings
D_OUT = 16       # output_dim of TextEncoder.fc
N_LAYERS = 2
LN_EPS = 1e-12
BS = B * S

_COMPILER_PARAMS = pltpu.CompilerParams(dimension_semantics=("arbitrary",))


# ----------------------------- fused Pallas kernel -------------------------------
def _layernorm(x, g, b):
    mu = jnp.mean(x, axis=-1, keepdims=True)
    xc = x - mu
    var = jnp.mean(xc * xc, axis=-1, keepdims=True)
    return xc * lax.rsqrt(var + LN_EPS) * g + b


def _encoder_kernel(
    emb_ref, mask_ref, nullm_ref,
    embg_ref, embb_ref,
    wqkv_ref, bqkv_ref, wo_ref, bo_ref, ln1g_ref, ln1b_ref,
    w1_ref, b1_ref, w2_ref, b2_ref, ln2g_ref, ln2b_ref,
    fcw_ref, fcb_ref, null_ref,
    o_ref,
):
    """Whole TextEncoder forward in one kernel.

    emb:(B*S,H) mask:(B,S) nullm:(B,1)
    stacked per-layer weights carry a leading N_LAYERS axis.
    o:(B,D_OUT)
    """
    scale = 1.0 / (DH ** 0.5)
    mask = mask_ref[...]                                            # (B, S) float

    # --- BERT embedding LayerNorm (token+pos+type sum computed by the caller) ---
    x = _layernorm(emb_ref[...], embg_ref[...], embb_ref[...])      # (B*S, H)

    # --- transformer layers (weights indexed statically, stay VMEM resident) ---
    for l in range(N_LAYERS):
        # packed QKV projection: one MXU pass, lane-dense (B*S, 3H) output.
        qkv = jnp.dot(x, wqkv_ref[l], preferred_element_type=jnp.float32) + bqkv_ref[l]
        q = qkv[:, 0 * H:1 * H]
        k = qkv[:, 1 * H:2 * H]
        v = qkv[:, 2 * H:3 * H]

        # multi-head attention: heads split/merged in-register via lane slices.
        batch_rows = []
        for b in range(B):
            neg = (1.0 - mask[b:b + 1, :]) * (-1e9)                 # (1, S) key mask
            r0, r1 = b * S, (b + 1) * S
            heads = []
            for h in range(NH):
                c0, c1 = h * DH, (h + 1) * DH
                qb = q[r0:r1, c0:c1]                                # (S, DH)
                kb = k[r0:r1, c0:c1]
                vb = v[r0:r1, c0:c1]
                s = lax.dot_general(qb, kb, (((1,), (1,)), ((), ())),
                                    preferred_element_type=jnp.float32) * scale
                s = s + neg                                         # (S, S)
                s = s - jnp.max(s, axis=-1, keepdims=True)
                p = jnp.exp(s)
                p = p * pl.reciprocal(jnp.sum(p, axis=-1, keepdims=True), approx=True)
                heads.append(jnp.dot(p, vb, preferred_element_type=jnp.float32))
            batch_rows.append(jnp.concatenate(heads, axis=-1))      # (S, H)
        ctx = jnp.concatenate(batch_rows, axis=0)                   # (B*S, H)

        attn_out = jnp.dot(ctx, wo_ref[l], preferred_element_type=jnp.float32) + bo_ref[l]
        x = _layernorm(attn_out + x, ln1g_ref[l], ln1b_ref[l])

        inter = jnp.dot(x, w1_ref[l], preferred_element_type=jnp.float32) + b1_ref[l]
        # TODO(synk): BERT uses exact erf-GELU; tanh approximation used here.
        inter = jax.nn.gelu(inter, approximate=True)
        ffn = jnp.dot(inter, w2_ref[l], preferred_element_type=jnp.float32) + b2_ref[l]
        x = _layernorm(ffn + x, ln2g_ref[l], ln2b_ref[l])

    # --- masked mean pool (masked sum as (1,S)@(S,H) matmul) + fc + L2-norm + null ---
    pooled_rows = []
    for b in range(B):
        mb = mask[b:b + 1, :]                                       # (1, S)
        hb = x[b * S:(b + 1) * S, :]                                # (S, H)
        msum = jnp.dot(mb, hb, preferred_element_type=jnp.float32)  # (1, H)
        cnt = jnp.maximum(jnp.sum(mb, axis=-1, keepdims=True), 1e-9)
        pooled_rows.append(msum / cnt)
    pooled = jnp.concatenate(pooled_rows, axis=0)                   # (B, H)

    proj = jnp.dot(pooled, fcw_ref[...], preferred_element_type=jnp.float32) + fcb_ref[...]
    sumsq = jnp.sum(proj * proj, axis=-1, keepdims=True)
    normalized = proj * lax.rsqrt(jnp.maximum(sumsq, 1e-24))        # F.normalize(eps=1e-12)
    o_ref[...] = jnp.where(nullm_ref[...] > 0.5, null_ref[...], normalized)


def _full_spec(shape):
    nd = len(shape)
    return pl.BlockSpec(shape, lambda i, _nd=nd: (0,) * _nd)


def text_encoder_pallas(emb2d, attn_mask_f, null_mask_f, p):
    inputs = [
        emb2d, attn_mask_f, null_mask_f,
        p["emb_ln_g"], p["emb_ln_b"],
        p["wqkv"], p["bqkv"], p["wo"], p["bo"], p["ln1_g"], p["ln1_b"],
        p["w1"], p["b1"], p["w2"], p["b2"], p["ln2_g"], p["ln2_b"],
        p["fc_w"], p["fc_b"], p["null_emb"],
    ]
    return pl.pallas_call(
        _encoder_kernel,
        out_shape=jax.ShapeDtypeStruct((B, D_OUT), jnp.float32),
        grid=(1,),
        in_specs=[_full_spec(a.shape) for a in inputs],
        out_specs=pl.BlockSpec((B, D_OUT), lambda i: (0, 0)),
        compiler_params=_COMPILER_PARAMS,
    )(*inputs)


# ----------------------------- parameters (deterministic) ------------------------
def init_params(key):
    def nrm(k, shape, scale=0.02):
        return scale * jax.random.normal(k, shape, dtype=jnp.float32)

    keys = iter(jax.random.split(key, 64))
    p = {
        "tok_emb": nrm(next(keys), (V, H)),
        "pos_emb": nrm(next(keys), (MAXP, H)),
        "type_emb": nrm(next(keys), (2, H)),
        "emb_ln_g": jnp.ones((1, H), jnp.float32),
        "emb_ln_b": jnp.zeros((1, H), jnp.float32),
        "fc_w": nrm(next(keys), (H, D_OUT)),
        "fc_b": jnp.zeros((1, D_OUT), jnp.float32),
        "null_emb": jax.random.normal(next(keys), (1, D_OUT), dtype=jnp.float32),
    }
    wqkv, bqkv, wo, bo = [], [], [], []
    ln1g, ln1b, w1, b1, w2, b2, ln2g, ln2b = [], [], [], [], [], [], [], []
    for _ in range(N_LAYERS):
        wq = nrm(next(keys), (H, H))
        wk = nrm(next(keys), (H, H))
        wv = nrm(next(keys), (H, H))
        wqkv.append(jnp.concatenate([wq, wk, wv], axis=1))          # packed (H, 3H)
        bqkv.append(jnp.zeros((1, 3 * H), jnp.float32))
        wo.append(nrm(next(keys), (H, H)))
        bo.append(jnp.zeros((1, H), jnp.float32))
        ln1g.append(jnp.ones((1, H), jnp.float32))
        ln1b.append(jnp.zeros((1, H), jnp.float32))
        w1.append(nrm(next(keys), (H, FF)))
        b1.append(jnp.zeros((1, FF), jnp.float32))
        w2.append(nrm(next(keys), (FF, H)))
        b2.append(jnp.zeros((1, H), jnp.float32))
        ln2g.append(jnp.ones((1, H), jnp.float32))
        ln2b.append(jnp.zeros((1, H), jnp.float32))
    p.update({
        "wqkv": jnp.stack(wqkv), "bqkv": jnp.stack(bqkv),
        "wo": jnp.stack(wo), "bo": jnp.stack(bo),
        "ln1_g": jnp.stack(ln1g), "ln1_b": jnp.stack(ln1b),
        "w1": jnp.stack(w1), "b1": jnp.stack(b1),
        "w2": jnp.stack(w2), "b2": jnp.stack(b2),
        "ln2_g": jnp.stack(ln2g), "ln2_b": jnp.stack(ln2b),
    })
    return p


# ----------------------------- forward pass --------------------------------------
def text_encoder_forward(params, input_ids, attention_mask, null_symptom_mask):
    attn_mask_f = attention_mask.astype(jnp.float32)                # (B, S)
    null_mask_f = null_symptom_mask.astype(jnp.float32).reshape(B, 1)

    # BERT embeddings: gather + adds are glue; everything else is the fused kernel.
    tok = jnp.take(params["tok_emb"], input_ids, axis=0)            # (B, S, H)
    pos = params["pos_emb"][:S][None, :, :]                         # (1, S, H)
    typ = params["type_emb"][0][None, None, :]                      # (1, 1, H)
    emb2d = (tok + pos + typ).reshape(B * S, H)

    return text_encoder_pallas(emb2d, attn_mask_f, null_mask_f, params)


# ----------------------------- main ----------------------------------------------
if __name__ == "__main__":
    key = jax.random.PRNGKey(0)
    pkey, ikey = jax.random.split(key)
    params = init_params(pkey)

    input_ids = jax.random.randint(ikey, (B, S), 0, V, dtype=jnp.int32)
    # first sequence uses 5 tokens, second uses all 8
    attention_mask = jnp.array([[1, 1, 1, 1, 1, 0, 0, 0],
                                [1, 1, 1, 1, 1, 1, 1, 1]], dtype=jnp.int32)
    null_symptom_mask = jnp.array([False, True])

    forward = jax.jit(text_encoder_forward)
    out = forward(params, input_ids, attention_mask, null_symptom_mask)
    out = jax.block_until_ready(out)
    assert out.shape == (B, D_OUT)
    assert bool(jnp.all(jnp.isfinite(out)))
    print("KERNEL_OK")
</pallas_src>

<mosaic_0001>
module attributes {stable_mosaic.version = 11 : i64} {
  func.func @_encoder_kernel(%arg0: i32, %arg1: memref<16x32xf32, #tpu.memory_space<vmem>>, %arg2: memref<2x8xf32, #tpu.memory_space<vmem>>, %arg3: memref<2x1xf32, #tpu.memory_space<vmem>>, %arg4: memref<1x32xf32, #tpu.memory_space<vmem>>, %arg5: memref<1x32xf32, #tpu.memory_space<vmem>>, %arg6: memref<2x32x96xf32, #tpu.memory_space<vmem>>, %arg7: memref<2x1x96xf32, #tpu.memory_space<vmem>>, %arg8: memref<2x32x32xf32, #tpu.memory_space<vmem>>, %arg9: memref<2x1x32xf32, #tpu.memory_space<vmem>>, %arg10: memref<2x1x32xf32, #tpu.memory_space<vmem>>, %arg11: memref<2x1x32xf32, #tpu.memory_space<vmem>>, %arg12: memref<2x32x64xf32, #tpu.memory_space<vmem>>, %arg13: memref<2x1x64xf32, #tpu.memory_space<vmem>>, %arg14: memref<2x64x32xf32, #tpu.memory_space<vmem>>, %arg15: memref<2x1x32xf32, #tpu.memory_space<vmem>>, %arg16: memref<2x1x32xf32, #tpu.memory_space<vmem>>, %arg17: memref<2x1x32xf32, #tpu.memory_space<vmem>>, %arg18: memref<32x16xf32, #tpu.memory_space<vmem>>, %arg19: memref<1x16xf32, #tpu.memory_space<vmem>>, %arg20: memref<1x16xf32, #tpu.memory_space<vmem>>, %arg21: memref<2x16xf32, #tpu.memory_space<vmem>>) attributes {dimension_semantics = [#tpu.dimension_semantics<arbitrary>], iteration_bounds = array<i64: 1>, scalar_prefetch = 0 : i64, scratch_operands = 0 : i64, tpu.core_type = #tpu.core_type<tc>, window_params = [{pipeline_mode = #tpu.pipeline_mode<synchronous>, transform_indices = @transform_0, window_bounds = array<i64: 16, 32>}, {pipeline_mode = #tpu.pipeline_mode<synchronous>, transform_indices = @transform_1, window_bounds = array<i64: 2, 8>}, {pipeline_mode = #tpu.pipeline_mode<synchronous>, transform_indices = @transform_2, window_bounds = array<i64: 2, 1>}, {pipeline_mode = #tpu.pipeline_mode<synchronous>, transform_indices = @transform_3, window_bounds = array<i64: 1, 32>}, {pipeline_mode = #tpu.pipeline_mode<synchronous>, transform_indices = @transform_4, window_bounds = array<i64: 1, 32>}, {pipeline_mode = #tpu.pipeline_mode<synchronous>, transform_indices = @transform_5, window_bounds = array<i64: 2, 32, 96>}, {pipeline_mode = #tpu.pipeline_mode<synchronous>, transform_indices = @transform_6, window_bounds = array<i64: 2, 1, 96>}, {pipeline_mode = #tpu.pipeline_mode<synchronous>, transform_indices = @transform_7, window_bounds = array<i64: 2, 32, 32>}, {pipeline_mode = #tpu.pipeline_mode<synchronous>, transform_indices = @transform_8, window_bounds = array<i64: 2, 1, 32>}, {pipeline_mode = #tpu.pipeline_mode<synchronous>, transform_indices = @transform_9, window_bounds = array<i64: 2, 1, 32>}, {pipeline_mode = #tpu.pipeline_mode<synchronous>, transform_indices = @transform_10, window_bounds = array<i64: 2, 1, 32>}, {pipeline_mode = #tpu.pipeline_mode<synchronous>, transform_indices = @transform_11, window_bounds = array<i64: 2, 32, 64>}, {pipeline_mode = #tpu.pipeline_mode<synchronous>, transform_indices = @transform_12, window_bounds = array<i64: 2, 1, 64>}, {pipeline_mode = #tpu.pipeline_mode<synchronous>, transform_indices = @transform_13, window_bounds = array<i64: 2, 64, 32>}, {pipeline_mode = #tpu.pipeline_mode<synchronous>, transform_indices = @transform_14, window_bounds = array<i64: 2, 1, 32>}, {pipeline_mode = #tpu.pipeline_mode<synchronous>, transform_indices = @transform_15, window_bounds = array<i64: 2, 1, 32>}, {pipeline_mode = #tpu.pipeline_mode<synchronous>, transform_indices = @transform_16, window_bounds = array<i64: 2, 1, 32>}, {pipeline_mode = #tpu.pipeline_mode<synchronous>, transform_indices = @transform_17, window_bounds = array<i64: 32, 16>}, {pipeline_mode = #tpu.pipeline_mode<synchronous>, transform_indices = @transform_18, window_bounds = array<i64: 1, 16>}, {pipeline_mode = #tpu.pipeline_mode<synchronous>, transform_indices = @transform_19, window_bounds = array<i64: 1, 16>}, {pipeline_mode = #tpu.pipeline_mode<synchronous>, transform_indices = @transform_20, window_bounds = array<i64: 2, 16>}]} {
    %c0 = arith.constant 0 : index
    %c0_0 = arith.constant 0 : index
    %0 = vector.load %arg2[%c0, %c0_0] : memref<2x8xf32, #tpu.memory_space<vmem>>, vector<2x8xf32>
    %c0_1 = arith.constant 0 : index
    %c0_2 = arith.constant 0 : index
    %1 = vector.load %arg1[%c0_1, %c0_2] : memref<16x32xf32, #tpu.memory_space<vmem>>, vector<16x32xf32>
    %c0_3 = arith.constant 0 : index
    %c0_4 = arith.constant 0 : index
    %2 = vector.load %arg4[%c0_3, %c0_4] : memref<1x32xf32, #tpu.memory_space<vmem>>, vector<1x32xf32>
    %c0_5 = arith.constant 0 : index
    %c0_6 = arith.constant 0 : index
    %3 = vector.load %arg5[%c0_5, %c0_6] : memref<1x32xf32, #tpu.memory_space<vmem>>, vector<1x32xf32>
    %cst = arith.constant dense<0.000000e+00> : vector<16xf32>
    %4 = vector.multi_reduction <add>, %1, %cst [1] : vector<16x32xf32> to vector<16xf32>
    %5 = vector.shape_cast %4 : vector<16xf32> to vector<16x1xf32>
    %cst_7 = arith.constant 3.200000e+01 : f32
    %6 = vector.broadcast %cst_7 : f32 to vector<16x1xf32>
    %7 = arith.divf %5, %6 : vector<16x1xf32>
    %8 = vector.broadcast %7 : vector<16x1xf32> to vector<16x32xf32>
    %9 = arith.subf %1, %8 : vector<16x32xf32>
    %10 = arith.mulf %9, %9 : vector<16x32xf32>
    %cst_8 = arith.constant dense<0.000000e+00> : vector<16xf32>
    %11 = vector.multi_reduction <add>, %10, %cst_8 [1] : vector<16x32xf32> to vector<16xf32>
    %12 = vector.shape_cast %11 : vector<16xf32> to vector<16x1xf32>
    %cst_9 = arith.constant 3.200000e+01 : f32
    %13 = vector.broadcast %cst_9 : f32 to vector<16x1xf32>
    %14 = arith.divf %12, %13 : vector<16x1xf32>
    %cst_10 = arith.constant 9.99999996E-13 : f32
    %15 = vector.broadcast %cst_10 : f32 to vector<16x1xf32>
    %16 = arith.addf %14, %15 : vector<16x1xf32>
    %17 = math.rsqrt %16 : vector<16x1xf32>
    %18 = vector.broadcast %17 : vector<16x1xf32> to vector<16x32xf32>
    %19 = arith.mulf %9, %18 : vector<16x32xf32>
    %20 = vector.broadcast %2 : vector<1x32xf32> to vector<16x32xf32>
    %21 = arith.mulf %19, %20 : vector<16x32xf32>
    %22 = vector.broadcast %3 : vector<1x32xf32> to vector<16x32xf32>
    %23 = arith.addf %21, %22 : vector<16x32xf32>
    %c0_11 = arith.constant 0 : index
    %c0_12 = arith.constant 0 : index
    %c0_13 = arith.constant 0 : index
    %24 = vector.load %arg6[%c0_11, %c0_12, %c0_13] : memref<2x32x96xf32, #tpu.memory_space<vmem>>, vector<1x32x96xf32>
    %25 = vector.shape_cast %24 : vector<1x32x96xf32> to vector<32x96xf32>
    %cst_14 = arith.constant dense<0.000000e+00> : vector<16x96xf32>
    %26 = tpu.matmul %23, %25, %cst_14 {dimension_numbers = #tpu.dot_dimension_numbers<[1], [0], [0], [1], [0, 0, 1, 1], [], []>} : vector<16x32xf32>, vector<32x96xf32>, vector<16x96xf32> -> vector<16x96xf32>
    %c0_15 = arith.constant 0 : index
    %c0_16 = arith.constant 0 : index
    %c0_17 = arith.constant 0 : index
    %27 = vector.load %arg7[%c0_15, %c0_16, %c0_17] : memref<2x1x96xf32, #tpu.memory_space<vmem>>, vector<1x1x96xf32>
    %28 = vector.shape_cast %27 : vector<1x1x96xf32> to vector<1x96xf32>
    %29 = vector.broadcast %28 : vector<1x96xf32> to vector<16x96xf32>
    %30 = arith.addf %26, %29 : vector<16x96xf32>
    %31 = vector.extract_strided_slice %30 {offsets = [0, 0], sizes = [16, 32], strides = [1, 1]} : vector<16x96xf32> to vector<16x32xf32>
    %32 = vector.extract_strided_slice %30 {offsets = [0, 32], sizes = [16, 32], strides = [1, 1]} : vector<16x96xf32> to vector<16x32xf32>
    %33 = vector.extract_strided_slice %30 {offsets = [0, 64], sizes = [16, 32], strides = [1, 1]} : vector<16x96xf32> to vector<16x32xf32>
    %34 = vector.extract_strided_slice %0 {offsets = [0, 0], sizes = [1, 8], strides = [1, 1]} : vector<2x8xf32> to vector<1x8xf32>
    %cst_18 = arith.constant 1.000000e+00 : f32
    %35 = vector.broadcast %cst_18 : f32 to vector<1x8xf32>
    %36 = arith.subf %35, %34 : vector<1x8xf32>
    %cst_19 = arith.constant -1.000000e+09 : f32
    %37 = vector.broadcast %cst_19 : f32 to vector<1x8xf32>
    %38 = arith.mulf %36, %37 : vector<1x8xf32>
    %39 = vector.extract_strided_slice %31 {offsets = [0, 0], sizes = [8, 8], strides = [1, 1]} : vector<16x32xf32> to vector<8x8xf32>
    %40 = vector.extract_strided_slice %32 {offsets = [0, 0], sizes = [8, 8], strides = [1, 1]} : vector<16x32xf32> to vector<8x8xf32>
    %41 = vector.extract_strided_slice %33 {offsets = [0, 0], sizes = [8, 8], strides = [1, 1]} : vector<16x32xf32> to vector<8x8xf32>
    %cst_20 = arith.constant dense<0.000000e+00> : vector<8x8xf32>
    %42 = tpu.matmul %39, %40, %cst_20 {dimension_numbers = #tpu.dot_dimension_numbers<[1], [1], [0], [0], [0, 0, 1, 0], [], []>} : vector<8x8xf32>, vector<8x8xf32>, vector<8x8xf32> -> vector<8x8xf32>
    %cst_21 = arith.constant 0.353553385 : f32
    %43 = vector.broadcast %cst_21 : f32 to vector<8x8xf32>
    %44 = arith.mulf %42, %43 : vector<8x8xf32>
    %45 = vector.broadcast %38 : vector<1x8xf32> to vector<8x8xf32>
    %46 = arith.addf %44, %45 : vector<8x8xf32>
    %cst_22 = arith.constant dense<0xFF800000> : vector<8xf32>
    %47 = vector.multi_reduction <maximumf>, %46, %cst_22 [1] : vector<8x8xf32> to vector<8xf32>
    %48 = vector.shape_cast %47 : vector<8xf32> to vector<8x1xf32>
    %49 = vector.broadcast %48 : vector<8x1xf32> to vector<8x8xf32>
    %50 = arith.subf %46, %49 : vector<8x8xf32>
    %51 = math.exp %50 : vector<8x8xf32>
    %cst_23 = arith.constant dense<0.000000e+00> : vector<8xf32>
    %52 = vector.multi_reduction <add>, %51, %cst_23 [1] : vector<8x8xf32> to vector<8xf32>
    %53 = vector.shape_cast %52 : vector<8xf32> to vector<8x1xf32>
    %54 = tpu.reciprocal %53 {approx = true} : vector<8x1xf32> -> vector<8x1xf32>
    %55 = vector.broadcast %54 : vector<8x1xf32> to vector<8x8xf32>
    %56 = arith.mulf %51, %55 : vector<8x8xf32>
    %cst_24 = arith.constant dense<0.000000e+00> : vector<8x8xf32>
    %57 = tpu.matmul %56, %41, %cst_24 {dimension_numbers = #tpu.dot_dimension_numbers<[1], [0], [0], [1], [0, 0, 1, 1], [], []>} : vector<8x8xf32>, vector<8x8xf32>, vector<8x8xf32> -> vector<8x8xf32>
    %58 = vector.extract_strided_slice %31 {offsets = [0, 8], sizes = [8, 8], strides = [1, 1]} : vector<16x32xf32> to vector<8x8xf32>
    %59 = vector.extract_strided_slice %32 {offsets = [0, 8], sizes = [8, 8], strides = [1, 1]} : vector<16x32xf32> to vector<8x8xf32>
    %60 = vector.extract_strided_slice %33 {offsets = [0, 8], sizes = [8, 8], strides = [1, 1]} : vector<16x32xf32> to vector<8x8xf32>
    %cst_25 = arith.constant dense<0.000000e+00> : vector<8x8xf32>
    %61 = tpu.matmul %58, %59, %cst_25 {dimension_numbers = #tpu.dot_dimension_numbers<[1], [1], [0], [0], [0, 0, 1, 0], [], []>} : vector<8x8xf32>, vector<8x8xf32>, vector<8x8xf32> -> vector<8x8xf32>
    %cst_26 = arith.constant 0.353553385 : f32
    %62 = vector.broadcast %cst_26 : f32 to vector<8x8xf32>
    %63 = arith.mulf %61, %62 : vector<8x8xf32>
    %64 = vector.broadcast %38 : vector<1x8xf32> to vector<8x8xf32>
    %65 = arith.addf %63, %64 : vector<8x8xf32>
    %cst_27 = arith.constant dense<0xFF800000> : vector<8xf32>
    %66 = vector.multi_reduction <maximumf>, %65, %cst_27 [1] : vector<8x8xf32> to vector<8xf32>
    %67 = vector.shape_cast %66 : vector<8xf32> to vector<8x1xf32>
    %68 = vector.broadcast %67 : vector<8x1xf32> to vector<8x8xf32>
    %69 = arith.subf %65, %68 : vector<8x8xf32>
    %70 = math.exp %69 : vector<8x8xf32>
    %cst_28 = arith.constant dense<0.000000e+00> : vector<8xf32>
    %71 = vector.multi_reduction <add>, %70, %cst_28 [1] : vector<8x8xf32> to vector<8xf32>
    %72 = vector.shape_cast %71 : vector<8xf32> to vector<8x1xf32>
    %73 = tpu.reciprocal %72 {approx = true} : vector<8x1xf32> -> vector<8x1xf32>
    %74 = vector.broadcast %73 : vector<8x1xf32> to vector<8x8xf32>
    %75 = arith.mulf %70, %74 : vector<8x8xf32>
    %cst_29 = arith.constant dense<0.000000e+00> : vector<8x8xf32>
    %76 = tpu.matmul %75, %60, %cst_29 {dimension_numbers = #tpu.dot_dimension_numbers<[1], [0], [0], [1], [0, 0, 1, 1], [], []>} : vector<8x8xf32>, vector<8x8xf32>, vector<8x8xf32> -> vector<8x8xf32>
    %77 = vector.extract_strided_slice %31 {offsets = [0, 16], sizes = [8, 8], strides = [1, 1]} : vector<16x32xf32> to vector<8x8xf32>
    %78 = vector.extract_strided_slice %32 {offsets = [0, 16], sizes = [8, 8], strides = [1, 1]} : vector<16x32xf32> to vector<8x8xf32>
    %79 = vector.extract_strided_slice %33 {offsets = [0, 16], sizes = [8, 8], strides = [1, 1]} : vector<16x32xf32> to vector<8x8xf32>
    %cst_30 = arith.constant dense<0.000000e+00> : vector<8x8xf32>
    %80 = tpu.matmul %77, %78, %cst_30 {dimension_numbers = #tpu.dot_dimension_numbers<[1], [1], [0], [0], [0, 0, 1, 0], [], []>} : vector<8x8xf32>, vector<8x8xf32>, vector<8x8xf32> -> vector<8x8xf32>
    %cst_31 = arith.constant 0.353553385 : f32
    %81 = vector.broadcast %cst_31 : f32 to vector<8x8xf32>
    %82 = arith.mulf %80, %81 : vector<8x8xf32>
    %83 = vector.broadcast %38 : vector<1x8xf32> to vector<8x8xf32>
    %84 = arith.addf %82, %83 : vector<8x8xf32>
    %cst_32 = arith.constant dense<0xFF800000> : vector<8xf32>
    %85 = vector.multi_reduction <maximumf>, %84, %cst_32 [1] : vector<8x8xf32> to vector<8xf32>
    %86 = vector.shape_cast %85 : vector<8xf32> to vector<8x1xf32>
    %87 = vector.broadcast %86 : vector<8x1xf32> to vector<8x8xf32>
    %88 = arith.subf %84, %87 : vector<8x8xf32>
    %89 = math.exp %88 : vector<8x8xf32>
    %cst_33 = arith.constant dense<0.000000e+00> : vector<8xf32>
    %90 = vector.multi_reduction <add>, %89, %cst_33 [1] : vector<8x8xf32> to vector<8xf32>
    %91 = vector.shape_cast %90 : vector<8xf32> to vector<8x1xf32>
    %92 = tpu.reciprocal %91 {approx = true} : vector<8x1xf32> -> vector<8x1xf32>
    %93 = vector.broadcast %92 : vector<8x1xf32> to vector<8x8xf32>
    %94 = arith.mulf %89, %93 : vector<8x8xf32>
    %cst_34 = arith.constant dense<0.000000e+00> : vector<8x8xf32>
    %95 = tpu.matmul %94, %79, %cst_34 {dimension_numbers = #tpu.dot_dimension_numbers<[1], [0], [0], [1], [0, 0, 1, 1], [], []>} : vector<8x8xf32>, vector<8x8xf32>, vector<8x8xf32> -> vector<8x8xf32>
    %96 = vector.extract_strided_slice %31 {offsets = [0, 24], sizes = [8, 8], strides = [1, 1]} : vector<16x32xf32> to vector<8x8xf32>
    %97 = vector.extract_strided_slice %32 {offsets = [0, 24], sizes = [8, 8], strides = [1, 1]} : vector<16x32xf32> to vector<8x8xf32>
    %98 = vector.extract_strided_slice %33 {offsets = [0, 24], sizes = [8, 8], strides = [1, 1]} : vector<16x32xf32> to vector<8x8xf32>
    %cst_35 = arith.constant dense<0.000000e+00> : vector<8x8xf32>
    %99 = tpu.matmul %96, %97, %cst_35 {dimension_numbers = #tpu.dot_dimension_numbers<[1], [1], [0], [0], [0, 0, 1, 0], [], []>} : vector<8x8xf32>, vector<8x8xf32>, vector<8x8xf32> -> vector<8x8xf32>
    %cst_36 = arith.constant 0.353553385 : f32
    %100 = vector.broadcast %cst_36 : f32 to vector<8x8xf32>
    %101 = arith.mulf %99, %100 : vector<8x8xf32>
    %102 = vector.broadcast %38 : vector<1x8xf32> to vector<8x8xf32>
    %103 = arith.addf %101, %102 : vector<8x8xf32>
    %cst_37 = arith.constant dense<0xFF800000> : vector<8xf32>
    %104 = vector.multi_reduction <maximumf>, %103, %cst_37 [1] : vector<8x8xf32> to vector<8xf32>
    %105 = vector.shape_cast %104 : vector<8xf32> to vector<8x1xf32>
    %106 = vector.broadcast %105 : vector<8x1xf32> to vector<8x8xf32>
    %107 = arith.subf %103, %106 : vector<8x8xf32>
    %108 = math.exp %107 : vector<8x8xf32>
    %cst_38 = arith.constant dense<0.000000e+00> : vector<8xf32>
    %109 = vector.multi_reduction <add>, %108, %cst_38 [1] : vector<8x8xf32> to vector<8xf32>
    %110 = vector.shape_cast %109 : vector<8xf32> to vector<8x1xf32>
    %111 = tpu.reciprocal %110 {approx = true} : vector<8x1xf32> -> vector<8x1xf32>
    %112 = vector.broadcast %111 : vector<8x1xf32> to vector<8x8xf32>
    %113 = arith.mulf %108, %112 : vector<8x8xf32>
    %cst_39 = arith.constant dense<0.000000e+00> : vector<8x8xf32>
    %114 = tpu.matmul %113, %98, %cst_39 {dimension_numbers = #tpu.dot_dimension_numbers<[1], [0], [0], [1], [0, 0, 1, 1], [], []>} : vector<8x8xf32>, vector<8x8xf32>, vector<8x8xf32> -> vector<8x8xf32>
    %115 = tpu.concatenate %57, %76, %95, %114 in 1 : vector<8x8xf32>, vector<8x8xf32>, vector<8x8xf32>, vector<8x8xf32> -> vector<8x32xf32>
    %116 = vector.extract_strided_slice %0 {offsets = [1, 0], sizes = [1, 8], strides = [1, 1]} : vector<2x8xf32> to vector<1x8xf32>
    %cst_40 = arith.constant 1.000000e+00 : f32
    %117 = vector.broadcast %cst_40 : f32 to vector<1x8xf32>
    %118 = arith.subf %117, %116 : vector<1x8xf32>
    %cst_41 = arith.constant -1.000000e+09 : f32
    %119 = vector.broadcast %cst_41 : f32 to vector<1x8xf32>
    %120 = arith.mulf %118, %119 : vector<1x8xf32>
    %121 = vector.extract_strided_slice %31 {offsets = [8, 0], sizes = [8, 8], strides = [1, 1]} : vector<16x32xf32> to vector<8x8xf32>
    %122 = vector.extract_strided_slice %32 {offsets = [8, 0], sizes = [8, 8], strides = [1, 1]} : vector<16x32xf32> to vector<8x8xf32>
    %123 = vector.extract_strided_slice %33 {offsets = [8, 0], sizes = [8, 8], strides = [1, 1]} : vector<16x32xf32> to vector<8x8xf32>
    %cst_42 = arith.constant dense<0.000000e+00> : vector<8x8xf32>
    %124 = tpu.matmul %121, %122, %cst_42 {dimension_numbers = #tpu.dot_dimension_numbers<[1], [1], [0], [0], [0, 0, 1, 0], [], []>} : vector<8x8xf32>, vector<8x8xf32>, vector<8x8xf32> -> vector<8x8xf32>
    %cst_43 = arith.constant 0.353553385 : f32
    %125 = vector.broadcast %cst_43 : f32 to vector<8x8xf32>
    %126 = arith.mulf %124, %125 : vector<8x8xf32>
    %127 = vector.broadcast %120 : vector<1x8xf32> to vector<8x8xf32>
    %128 = arith.addf %126, %127 : vector<8x8xf32>
    %cst_44 = arith.constant dense<0xFF800000> : vector<8xf32>
    %129 = vector.multi_reduction <maximumf>, %128, %cst_44 [1] : vector<8x8xf32> to vector<8xf32>
    %130 = vector.shape_cast %129 : vector<8xf32> to vector<8x1xf32>
    %131 = vector.broadcast %130 : vector<8x1xf32> to vector<8x8xf32>
    %132 = arith.subf %128, %131 : vector<8x8xf32>
    %133 = math.exp %132 : vector<8x8xf32>
    %cst_45 = arith.constant dense<0.000000e+00> : vector<8xf32>
    %134 = vector.multi_reduction <add>, %133, %cst_45 [1] : vector<8x8xf32> to vector<8xf32>
    %135 = vector.shape_cast %134 : vector<8xf32> to vector<8x1xf32>
    %136 = tpu.reciprocal %135 {approx = true} : vector<8x1xf32> -> vector<8x1xf32>
    %137 = vector.broadcast %136 : vector<8x1xf32> to vector<8x8xf32>
    %138 = arith.mulf %133, %137 : vector<8x8xf32>
    %cst_46 = arith.constant dense<0.000000e+00> : vector<8x8xf32>
    %139 = tpu.matmul %138, %123, %cst_46 {dimension_numbers = #tpu.dot_dimension_numbers<[1], [0], [0], [1], [0, 0, 1, 1], [], []>} : vector<8x8xf32>, vector<8x8xf32>, vector<8x8xf32> -> vector<8x8xf32>
    %140 = vector.extract_strided_slice %31 {offsets = [8, 8], sizes = [8, 8], strides = [1, 1]} : vector<16x32xf32> to vector<8x8xf32>
    %141 = vector.extract_strided_slice %32 {offsets = [8, 8], sizes = [8, 8], strides = [1, 1]} : vector<16x32xf32> to vector<8x8xf32>
    %142 = vector.extract_strided_slice %33 {offsets = [8, 8], sizes = [8, 8], strides = [1, 1]} : vector<16x32xf32> to vector<8x8xf32>
    %cst_47 = arith.constant dense<0.000000e+00> : vector<8x8xf32>
    %143 = tpu.matmul %140, %141, %cst_47 {dimension_numbers = #tpu.dot_dimension_numbers<[1], [1], [0], [0], [0, 0, 1, 0], [], []>} : vector<8x8xf32>, vector<8x8xf32>, vector<8x8xf32> -> vector<8x8xf32>
    %cst_48 = arith.constant 0.353553385 : f32
    %144 = vector.broadcast %cst_48 : f32 to vector<8x8xf32>
    %145 = arith.mulf %143, %144 : vector<8x8xf32>
    %146 = vector.broadcast %120 : vector<1x8xf32> to vector<8x8xf32>
    %147 = arith.addf %145, %146 : vector<8x8xf32>
    %cst_49 = arith.constant dense<0xFF800000> : vector<8xf32>
    %148 = vector.multi_reduction <maximumf>, %147, %cst_49 [1] : vector<8x8xf32> to vector<8xf32>
    %149 = vector.shape_cast %148 : vector<8xf32> to vector<8x1xf32>
    %150 = vector.broadcast %149 : vector<8x1xf32> to vector<8x8xf32>
    %151 = arith.subf %147, %150 : vector<8x8xf32>
    %152 = math.exp %151 : vector<8x8xf32>
    %cst_50 = arith.constant dense<0.000000e+00> : vector<8xf32>
    %153 = vector.multi_reduction <add>, %152, %cst_50 [1] : vector<8x8xf32> to vector<8xf32>
    %154 = vector.shape_cast %153 : vector<8xf32> to vector<8x1xf32>
    %155 = tpu.reciprocal %154 {approx = true} : vector<8x1xf32> -> vector<8x1xf32>
    %156 = vector.broadcast %155 : vector<8x1xf32> to vector<8x8xf32>
    %157 = arith.mulf %152, %156 : vector<8x8xf32>
    %cst_51 = arith.constant dense<0.000000e+00> : vector<8x8xf32>
    %158 = tpu.matmul %157, %142, %cst_51 {dimension_numbers = #tpu.dot_dimension_numbers<[1], [0], [0], [1], [0, 0, 1, 1], [], []>} : vector<8x8xf32>, vector<8x8xf32>, vector<8x8xf32> -> vector<8x8xf32>
    %159 = vector.extract_strided_slice %31 {offsets = [8, 16], sizes = [8, 8], strides = [1, 1]} : vector<16x32xf32> to vector<8x8xf32>
    %160 = vector.extract_strided_slice %32 {offsets = [8, 16], sizes = [8, 8], strides = [1, 1]} : vector<16x32xf32> to vector<8x8xf32>
    %161 = vector.extract_strided_slice %33 {offsets = [8, 16], sizes = [8, 8], strides = [1, 1]} : vector<16x32xf32> to vector<8x8xf32>
    %cst_52 = arith.constant dense<0.000000e+00> : vector<8x8xf32>
    %162 = tpu.matmul %159, %160, %cst_52 {dimension_numbers = #tpu.dot_dimension_numbers<[1], [1], [0], [0], [0, 0, 1, 0], [], []>} : vector<8x8xf32>, vector<8x8xf32>, vector<8x8xf32> -> vector<8x8xf32>
    %cst_53 = arith.constant 0.353553385 : f32
    %163 = vector.broadcast %cst_53 : f32 to vector<8x8xf32>
    %164 = arith.mulf %162, %163 : vector<8x8xf32>
    %165 = vector.broadcast %120 : vector<1x8xf32> to vector<8x8xf32>
    %166 = arith.addf %164, %165 : vector<8x8xf32>
    %cst_54 = arith.constant dense<0xFF800000> : vector<8xf32>
    %167 = vector.multi_reduction <maximumf>, %166, %cst_54 [1] : vector<8x8xf32> to vector<8xf32>
    %168 = vector.shape_cast %167 : vector<8xf32> to vector<8x1xf32>
    %169 = vector.broadcast %168 : vector<8x1xf32> to vector<8x8xf32>
    %170 = arith.subf %166, %169 : vector<8x8xf32>
    %171 = math.exp %170 : vector<8x8xf32>
    %cst_55 = arith.constant dense<0.000000e+00> : vector<8xf32>
    %172 = vector.multi_reduction <add>, %171, %cst_55 [1] : vector<8x8xf32> to vector<8xf32>
    %173 = vector.shape_cast %172 : vector<8xf32> to vector<8x1xf32>
    %174 = tpu.reciprocal %173 {approx = true} : vector<8x1xf32> -> vector<8x1xf32>
    %175 = vector.broadcast %174 : vector<8x1xf32> to vector<8x8xf32>
    %176 = arith.mulf %171, %175 : vector<8x8xf32>
    %cst_56 = arith.constant dense<0.000000e+00> : vector<8x8xf32>
    %177 = tpu.matmul %176, %161, %cst_56 {dimension_numbers = #tpu.dot_dimension_numbers<[1], [0], [0], [1], [0, 0, 1, 1], [], []>} : vector<8x8xf32>, vector<8x8xf32>, vector<8x8xf32> -> vector<8x8xf32>
    %178 = vector.extract_strided_slice %31 {offsets = [8, 24], sizes = [8, 8], strides = [1, 1]} : vector<16x32xf32> to vector<8x8xf32>
    %179 = vector.extract_strided_slice %32 {offsets = [8, 24], sizes = [8, 8], strides = [1, 1]} : vector<16x32xf32> to vector<8x8xf32>
    %180 = vector.extract_strided_slice %33 {offsets = [8, 24], sizes = [8, 8], strides = [1, 1]} : vector<16x32xf32> to vector<8x8xf32>
    %cst_57 = arith.constant dense<0.000000e+00> : vector<8x8xf32>
    %181 = tpu.matmul %178, %179, %cst_57 {dimension_numbers = #tpu.dot_dimension_numbers<[1], [1], [0], [0], [0, 0, 1, 0], [], []>} : vector<8x8xf32>, vector<8x8xf32>, vector<8x8xf32> -> vector<8x8xf32>
    %cst_58 = arith.constant 0.353553385 : f32
    %182 = vector.broadcast %cst_58 : f32 to vector<8x8xf32>
    %183 = arith.mulf %181, %182 : vector<8x8xf32>
    %184 = vector.broadcast %120 : vector<1x8xf32> to vector<8x8xf32>
    %185 = arith.addf %183, %184 : vector<8x8xf32>
    %cst_59 = arith.constant dense<0xFF800000> : vector<8xf32>
    %186 = vector.multi_reduction <maximumf>, %185, %cst_59 [1] : vector<8x8xf32> to vector<8xf32>
    %187 = vector.shape_cast %186 : vector<8xf32> to vector<8x1xf32>
    %188 = vector.broadcast %187 : vector<8x1xf32> to vector<8x8xf32>
    %189 = arith.subf %185, %188 : vector<8x8xf32>
    %190 = math.exp %189 : vector<8x8xf32>
    %cst_60 = arith.constant dense<0.000000e+00> : vector<8xf32>
    %191 = vector.multi_reduction <add>, %190, %cst_60 [1] : vector<8x8xf32> to vector<8xf32>
    %192 = vector.shape_cast %191 : vector<8xf32> to vector<8x1xf32>
    %193 = tpu.reciprocal %192 {approx = true} : vector<8x1xf32> -> vector<8x1xf32>
    %194 = vector.broadcast %193 : vector<8x1xf32> to vector<8x8xf32>
    %195 = arith.mulf %190, %194 : vector<8x8xf32>
    %cst_61 = arith.constant dense<0.000000e+00> : vector<8x8xf32>
    %196 = tpu.matmul %195, %180, %cst_61 {dimension_numbers = #tpu.dot_dimension_numbers<[1], [0], [0], [1], [0, 0, 1, 1], [], []>} : vector<8x8xf32>, vector<8x8xf32>, vector<8x8xf32> -> vector<8x8xf32>
    %197 = tpu.concatenate %139, %158, %177, %196 in 1 : vector<8x8xf32>, vector<8x8xf32>, vector<8x8xf32>, vector<8x8xf32> -> vector<8x32xf32>
    %198 = tpu.concatenate %115, %197 in 0 : vector<8x32xf32>, vector<8x32xf32> -> vector<16x32xf32>
    %c0_62 = arith.constant 0 : index
    %c0_63 = arith.constant 0 : index
    %c0_64 = arith.constant 0 : index
    %199 = vector.load %arg8[%c0_62, %c0_63, %c0_64] : memref<2x32x32xf32, #tpu.memory_space<vmem>>, vector<1x32x32xf32>
    %200 = vector.shape_cast %199 : vector<1x32x32xf32> to vector<32x32xf32>
    %cst_65 = arith.constant dense<0.000000e+00> : vector<16x32xf32>
    %201 = tpu.matmul %198, %200, %cst_65 {dimension_numbers = #tpu.dot_dimension_numbers<[1], [0], [0], [1], [0, 0, 1, 1], [], []>} : vector<16x32xf32>, vector<32x32xf32>, vector<16x32xf32> -> vector<16x32xf32>
    %c0_66 = arith.constant 0 : index
    %c0_67 = arith.constant 0 : index
    %c0_68 = arith.constant 0 : index
    %202 = vector.load %arg9[%c0_66, %c0_67, %c0_68] : memref<2x1x32xf32, #tpu.memory_space<vmem>>, vector<1x1x32xf32>
    %203 = vector.shape_cast %202 : vector<1x1x32xf32> to vector<1x32xf32>
    %204 = vector.broadcast %203 : vector<1x32xf32> to vector<16x32xf32>
    %205 = arith.addf %201, %204 : vector<16x32xf32>
    %206 = arith.addf %205, %23 : vector<16x32xf32>
    %c0_69 = arith.constant 0 : index
    %c0_70 = arith.constant 0 : index
    %c0_71 = arith.constant 0 : index
    %207 = vector.load %arg10[%c0_69, %c0_70, %c0_71] : memref<2x1x32xf32, #tpu.memory_space<vmem>>, vector<1x1x32xf32>
    %208 = vector.shape_cast %207 : vector<1x1x32xf32> to vector<1x32xf32>
    %c0_72 = arith.constant 0 : index
    %c0_73 = arith.constant 0 : index
    %c0_74 = arith.constant 0 : index
    %209 = vector.load %arg11[%c0_72, %c0_73, %c0_74] : memref<2x1x32xf32, #tpu.memory_space<vmem>>, vector<1x1x32xf32>
    %210 = vector.shape_cast %209 : vector<1x1x32xf32> to vector<1x32xf32>
    %cst_75 = arith.constant dense<0.000000e+00> : vector<16xf32>
    %211 = vector.multi_reduction <add>, %206, %cst_75 [1] : vector<16x32xf32> to vector<16xf32>
    %212 = vector.shape_cast %211 : vector<16xf32> to vector<16x1xf32>
    %cst_76 = arith.constant 3.200000e+01 : f32
    %213 = vector.broadcast %cst_76 : f32 to vector<16x1xf32>
    %214 = arith.divf %212, %213 : vector<16x1xf32>
    %215 = vector.broadcast %214 : vector<16x1xf32> to vector<16x32xf32>
    %216 = arith.subf %206, %215 : vector<16x32xf32>
    %217 = arith.mulf %216, %216 : vector<16x32xf32>
    %cst_77 = arith.constant dense<0.000000e+00> : vector<16xf32>
    %218 = vector.multi_reduction <add>, %217, %cst_77 [1] : vector<16x32xf32> to vector<16xf32>
    %219 = vector.shape_cast %218 : vector<16xf32> to vector<16x1xf32>
    %cst_78 = arith.constant 3.200000e+01 : f32
    %220 = vector.broadcast %cst_78 : f32 to vector<16x1xf32>
    %221 = arith.divf %219, %220 : vector<16x1xf32>
    %cst_79 = arith.constant 9.99999996E-13 : f32
    %222 = vector.broadcast %cst_79 : f32 to vector<16x1xf32>
    %223 = arith.addf %221, %222 : vector<16x1xf32>
    %224 = math.rsqrt %223 : vector<16x1xf32>
    %225 = vector.broadcast %224 : vector<16x1xf32> to vector<16x32xf32>
    %226 = arith.mulf %216, %225 : vector<16x32xf32>
    %227 = vector.broadcast %208 : vector<1x32xf32> to vector<16x32xf32>
    %228 = arith.mulf %226, %227 : vector<16x32xf32>
    %229 = vector.broadcast %210 : vector<1x32xf32> to vector<16x32xf32>
    %230 = arith.addf %228, %229 : vector<16x32xf32>
    %c0_80 = arith.constant 0 : index
    %c0_81 = arith.constant 0 : index
    %c0_82 = arith.constant 0 : index
    %231 = vector.load %arg12[%c0_80, %c0_81, %c0_82] : memref<2x32x64xf32, #tpu.memory_space<vmem>>, vector<1x32x64xf32>
    %232 = vector.shape_cast %231 : vector<1x32x64xf32> to vector<32x64xf32>
    %cst_83 = arith.constant dense<0.000000e+00> : vector<16x64xf32>
    %233 = tpu.matmul %230, %232, %cst_83 {dimension_numbers = #tpu.dot_dimension_numbers<[1], [0], [0], [1], [0, 0, 1, 1], [], []>} : vector<16x32xf32>, vector<32x64xf32>, vector<16x64xf32> -> vector<16x64xf32>
    %c0_84 = arith.constant 0 : index
    %c0_85 = arith.constant 0 : index
    %c0_86 = arith.constant 0 : index
    %234 = vector.load %arg13[%c0_84, %c0_85, %c0_86] : memref<2x1x64xf32, #tpu.memory_space<vmem>>, vector<1x1x64xf32>
    %235 = vector.shape_cast %234 : vector<1x1x64xf32> to vector<1x64xf32>
    %236 = vector.broadcast %235 : vector<1x64xf32> to vector<16x64xf32>
    %237 = arith.addf %233, %236 : vector<16x64xf32>
    %238 = arith.mulf %237, %237 : vector<16x64xf32>
    %239 = arith.mulf %237, %238 : vector<16x64xf32>
    %cst_87 = arith.constant 4.471500e-02 : f32
    %240 = vector.broadcast %cst_87 : f32 to vector<16x64xf32>
    %241 = arith.mulf %240, %239 : vector<16x64xf32>
    %242 = arith.addf %237, %241 : vector<16x64xf32>
    %cst_88 = arith.constant 0.797884583 : f32
    %243 = vector.broadcast %cst_88 : f32 to vector<16x64xf32>
    %244 = arith.mulf %243, %242 : vector<16x64xf32>
    %245 = math.tanh %244 : vector<16x64xf32>
    %cst_89 = arith.constant 1.000000e+00 : f32
    %246 = vector.broadcast %cst_89 : f32 to vector<16x64xf32>
    %247 = arith.addf %246, %245 : vector<16x64xf32>
    %cst_90 = arith.constant 5.000000e-01 : f32
    %248 = vector.broadcast %cst_90 : f32 to vector<16x64xf32>
    %249 = arith.mulf %248, %247 : vector<16x64xf32>
    %250 = arith.mulf %237, %249 : vector<16x64xf32>
    %c0_91 = arith.constant 0 : index
    %c0_92 = arith.constant 0 : index
    %c0_93 = arith.constant 0 : index
    %251 = vector.load %arg14[%c0_91, %c0_92, %c0_93] : memref<2x64x32xf32, #tpu.memory_space<vmem>>, vector<1x64x32xf32>
    %252 = vector.shape_cast %251 : vector<1x64x32xf32> to vector<64x32xf32>
    %cst_94 = arith.constant dense<0.000000e+00> : vector<16x32xf32>
    %253 = tpu.matmul %250, %252, %cst_94 {dimension_numbers = #tpu.dot_dimension_numbers<[1], [0], [0], [1], [0, 0, 1, 1], [], []>} : vector<16x64xf32>, vector<64x32xf32>, vector<16x32xf32> -> vector<16x32xf32>
    %c0_95 = arith.constant 0 : index
    %c0_96 = arith.constant 0 : index
    %c0_97 = arith.constant 0 : index
    %254 = vector.load %arg15[%c0_95, %c0_96, %c0_97] : memref<2x1x32xf32, #tpu.memory_space<vmem>>, vector<1x1x32xf32>
    %255 = vector.shape_cast %254 : vector<1x1x32xf32> to vector<1x32xf32>
    %256 = vector.broadcast %255 : vector<1x32xf32> to vector<16x32xf32>
    %257 = arith.addf %253, %256 : vector<16x32xf32>
    %258 = arith.addf %257, %230 : vector<16x32xf32>
    %c0_98 = arith.constant 0 : index
    %c0_99 = arith.constant 0 : index
    %c0_100 = arith.constant 0 : index
    %259 = vector.load %arg16[%c0_98, %c0_99, %c0_100] : memref<2x1x32xf32, #tpu.memory_space<vmem>>, vector<1x1x32xf32>
    %260 = vector.shape_cast %259 : vector<1x1x32xf32> to vector<1x32xf32>
    %c0_101 = arith.constant 0 : index
    %c0_102 = arith.constant 0 : index
    %c0_103 = arith.constant 0 : index
    %261 = vector.load %arg17[%c0_101, %c0_102, %c0_103] : memref<2x1x32xf32, #tpu.memory_space<vmem>>, vector<1x1x32xf32>
    %262 = vector.shape_cast %261 : vector<1x1x32xf32> to vector<1x32xf32>
    %cst_104 = arith.constant dense<0.000000e+00> : vector<16xf32>
    %263 = vector.multi_reduction <add>, %258, %cst_104 [1] : vector<16x32xf32> to vector<16xf32>
    %264 = vector.shape_cast %263 : vector<16xf32> to vector<16x1xf32>
    %cst_105 = arith.constant 3.200000e+01 : f32
    %265 = vector.broadcast %cst_105 : f32 to vector<16x1xf32>
    %266 = arith.divf %264, %265 : vector<16x1xf32>
    %267 = vector.broadcast %266 : vector<16x1xf32> to vector<16x32xf32>
    %268 = arith.subf %258, %267 : vector<16x32xf32>
    %269 = arith.mulf %268, %268 : vector<16x32xf32>
    %cst_106 = arith.constant dense<0.000000e+00> : vector<16xf32>
    %270 = vector.multi_reduction <add>, %269, %cst_106 [1] : vector<16x32xf32> to vector<16xf32>
    %271 = vector.shape_cast %270 : vector<16xf32> to vector<16x1xf32>
    %cst_107 = arith.constant 3.200000e+01 : f32
    %272 = vector.broadcast %cst_107 : f32 to vector<16x1xf32>
    %273 = arith.divf %271, %272 : vector<16x1xf32>
    %cst_108 = arith.constant 9.99999996E-13 : f32
    %274 = vector.broadcast %cst_108 : f32 to vector<16x1xf32>
    %275 = arith.addf %273, %274 : vector<16x1xf32>
    %276 = math.rsqrt %275 : vector<16x1xf32>
    %277 = vector.broadcast %276 : vector<16x1xf32> to vector<16x32xf32>
    %278 = arith.mulf %268, %277 : vector<16x32xf32>
    %279 = vector.broadcast %260 : vector<1x32xf32> to vector<16x32xf32>
    %280 = arith.mulf %278, %279 : vector<16x32xf32>
    %281 = vector.broadcast %262 : vector<1x32xf32> to vector<16x32xf32>
    %282 = arith.addf %280, %281 : vector<16x32xf32>
    %c1 = arith.constant 1 : index
    %c0_109 = arith.constant 0 : index
    %c0_110 = arith.constant 0 : index
    %283 = vector.load %arg6[%c1, %c0_109, %c0_110] : memref<2x32x96xf32, #tpu.memory_space<vmem>>, vector<1x32x96xf32>
    %284 = vector.shape_cast %283 : vector<1x32x96xf32> to vector<32x96xf32>
    %cst_111 = arith.constant dense<0.000000e+00> : vector<16x96xf32>
    %285 = tpu.matmul %282, %284, %cst_111 {dimension_numbers = #tpu.dot_dimension_numbers<[1], [0], [0], [1], [0, 0, 1, 1], [], []>} : vector<16x32xf32>, vector<32x96xf32>, vector<16x96xf32> -> vector<16x96xf32>
    %c1_112 = arith.constant 1 : index
    %c0_113 = arith.constant 0 : index
    %c0_114 = arith.constant 0 : index
    %286 = vector.load %arg7[%c1_112, %c0_113, %c0_114] : memref<2x1x96xf32, #tpu.memory_space<vmem>>, vector<1x1x96xf32>
    %287 = vector.shape_cast %286 : vector<1x1x96xf32> to vector<1x96xf32>
    %288 = vector.broadcast %287 : vector<1x96xf32> to vector<16x96xf32>
    %289 = arith.addf %285, %288 : vector<16x96xf32>
    %290 = vector.extract_strided_slice %289 {offsets = [0, 0], sizes = [16, 32], strides = [1, 1]} : vector<16x96xf32> to vector<16x32xf32>
    %291 = vector.extract_strided_slice %289 {offsets = [0, 32], sizes = [16, 32], strides = [1, 1]} : vector<16x96xf32> to vector<16x32xf32>
    %292 = vector.extract_strided_slice %289 {offsets = [0, 64], sizes = [16, 32], strides = [1, 1]} : vector<16x96xf32> to vector<16x32xf32>
    %293 = vector.extract_strided_slice %0 {offsets = [0, 0], sizes = [1, 8], strides = [1, 1]} : vector<2x8xf32> to vector<1x8xf32>
    %cst_115 = arith.constant 1.000000e+00 : f32
    %294 = vector.broadcast %cst_115 : f32 to vector<1x8xf32>
    %295 = arith.subf %294, %293 : vector<1x8xf32>
    %cst_116 = arith.constant -1.000000e+09 : f32
    %296 = vector.broadcast %cst_116 : f32 to vector<1x8xf32>
    %297 = arith.mulf %295, %296 : vector<1x8xf32>
    %298 = vector.extract_strided_slice %290 {offsets = [0, 0], sizes = [8, 8], strides = [1, 1]} : vector<16x32xf32> to vector<8x8xf32>
    %299 = vector.extract_strided_slice %291 {offsets = [0, 0], sizes = [8, 8], strides = [1, 1]} : vector<16x32xf32> to vector<8x8xf32>
    %300 = vector.extract_strided_slice %292 {offsets = [0, 0], sizes = [8, 8], strides = [1, 1]} : vector<16x32xf32> to vector<8x8xf32>
    %cst_117 = arith.constant dense<0.000000e+00> : vector<8x8xf32>
    %301 = tpu.matmul %298, %299, %cst_117 {dimension_numbers = #tpu.dot_dimension_numbers<[1], [1], [0], [0], [0, 0, 1, 0], [], []>} : vector<8x8xf32>, vector<8x8xf32>, vector<8x8xf32> -> vector<8x8xf32>
    %cst_118 = arith.constant 0.353553385 : f32
    %302 = vector.broadcast %cst_118 : f32 to vector<8x8xf32>
    %303 = arith.mulf %301, %302 : vector<8x8xf32>
    %304 = vector.broadcast %297 : vector<1x8xf32> to vector<8x8xf32>
    %305 = arith.addf %303, %304 : vector<8x8xf32>
    %cst_119 = arith.constant dense<0xFF800000> : vector<8xf32>
    %306 = vector.multi_reduction <maximumf>, %305, %cst_119 [1] : vector<8x8xf32> to vector<8xf32>
    %307 = vector.shape_cast %306 : vector<8xf32> to vector<8x1xf32>
    %308 = vector.broadcast %307 : vector<8x1xf32> to vector<8x8xf32>
    %309 = arith.subf %305, %308 : vector<8x8xf32>
    %310 = math.exp %309 : vector<8x8xf32>
    %cst_120 = arith.constant dense<0.000000e+00> : vector<8xf32>
    %311 = vector.multi_reduction <add>, %310, %cst_120 [1] : vector<8x8xf32> to vector<8xf32>
    %312 = vector.shape_cast %311 : vector<8xf32> to vector<8x1xf32>
    %313 = tpu.reciprocal %312 {approx = true} : vector<8x1xf32> -> vector<8x1xf32>
    %314 = vector.broadcast %313 : vector<8x1xf32> to vector<8x8xf32>
    %315 = arith.mulf %310, %314 : vector<8x8xf32>
    %cst_121 = arith.constant dense<0.000000e+00> : vector<8x8xf32>
    %316 = tpu.matmul %315, %300, %cst_121 {dimension_numbers = #tpu.dot_dimension_numbers<[1], [0], [0], [1], [0, 0, 1, 1], [], []>} : vector<8x8xf32>, vector<8x8xf32>, vector<8x8xf32> -> vector<8x8xf32>
    %317 = vector.extract_strided_slice %290 {offsets = [0, 8], sizes = [8, 8], strides = [1, 1]} : vector<16x32xf32> to vector<8x8xf32>
    %318 = vector.extract_strided_slice %291 {offsets = [0, 8], sizes = [8, 8], strides = [1, 1]} : vector<16x32xf32> to vector<8x8xf32>
    %319 = vector.extract_strided_slice %292 {offsets = [0, 8], sizes = [8, 8], strides = [1, 1]} : vector<16x32xf32> to vector<8x8xf32>
    %cst_122 = arith.constant dense<0.000000e+00> : vector<8x8xf32>
    %320 = tpu.matmul %317, %318, %cst_122 {dimension_numbers = #tpu.dot_dimension_numbers<[1], [1], [0], [0], [0, 0, 1, 0], [], []>} : vector<8x8xf32>, vector<8x8xf32>, vector<8x8xf32> -> vector<8x8xf32>
    %cst_123 = arith.constant 0.353553385 : f32
    %321 = vector.broadcast %cst_123 : f32 to vector<8x8xf32>
    %322 = arith.mulf %320, %321 : vector<8x8xf32>
    %323 = vector.broadcast %297 : vector<1x8xf32> to vector<8x8xf32>
    %324 = arith.addf %322, %323 : vector<8x8xf32>
    %cst_124 = arith.constant dense<0xFF800000> : vector<8xf32>
    %325 = vector.multi_reduction <maximumf>, %324, %cst_124 [1] : vector<8x8xf32> to vector<8xf32>
    %326 = vector.shape_cast %325 : vector<8xf32> to vector<8x1xf32>
    %327 = vector.broadcast %326 : vector<8x1xf32> to vector<8x8xf32>
    %328 = arith.subf %324, %327 : vector<8x8xf32>
    %329 = math.exp %328 : vector<8x8xf32>
    %cst_125 = arith.constant dense<0.000000e+00> : vector<8xf32>
    %330 = vector.multi_reduction <add>, %329, %cst_125 [1] : vector<8x8xf32> to vector<8xf32>
    %331 = vector.shape_cast %330 : vector<8xf32> to vector<8x1xf32>
    %332 = tpu.reciprocal %331 {approx = true} : vector<8x1xf32> -> vector<8x1xf32>
    %333 = vector.broadcast %332 : vector<8x1xf32> to vector<8x8xf32>
    %334 = arith.mulf %329, %333 : vector<8x8xf32>
    %cst_126 = arith.constant dense<0.000000e+00> : vector<8x8xf32>
    %335 = tpu.matmul %334, %319, %cst_126 {dimension_numbers = #tpu.dot_dimension_numbers<[1], [0], [0], [1], [0, 0, 1, 1], [], []>} : vector<8x8xf32>, vector<8x8xf32>, vector<8x8xf32> -> vector<8x8xf32>
    %336 = vector.extract_strided_slice %290 {offsets = [0, 16], sizes = [8, 8], strides = [1, 1]} : vector<16x32xf32> to vector<8x8xf32>
    %337 = vector.extract_strided_slice %291 {offsets = [0, 16], sizes = [8, 8], strides = [1, 1]} : vector<16x32xf32> to vector<8x8xf32>
    %338 = vector.extract_strided_slice %292 {offsets = [0, 16], sizes = [8, 8], strides = [1, 1]} : vector<16x32xf32> to vector<8x8xf32>
    %cst_127 = arith.constant dense<0.000000e+00> : vector<8x8xf32>
    %339 = tpu.matmul %336, %337, %cst_127 {dimension_numbers = #tpu.dot_dimension_numbers<[1], [1], [0], [0], [0, 0, 1, 0], [], []>} : vector<8x8xf32>, vector<8x8xf32>, vector<8x8xf32> -> vector<8x8xf32>
    %cst_128 = arith.constant 0.353553385 : f32
    %340 = vector.broadcast %cst_128 : f32 to vector<8x8xf32>
    %341 = arith.mulf %339, %340 : vector<8x8xf32>
    %342 = vector.broadcast %297 : vector<1x8xf32> to vector<8x8xf32>
    %343 = arith.addf %341, %342 : vector<8x8xf32>
    %cst_129 = arith.constant dense<0xFF800000> : vector<8xf32>
    %344 = vector.multi_reduction <maximumf>, %343, %cst_129 [1] : vector<8x8xf32> to vector<8xf32>
    %345 = vector.shape_cast %344 : vector<8xf32> to vector<8x1xf32>
    %346 = vector.broadcast %345 : vector<8x1xf32> to vector<8x8xf32>
    %347 = arith.subf %343, %346 : vector<8x8xf32>
    %348 = math.exp %347 : vector<8x8xf32>
    %cst_130 = arith.constant dense<0.000000e+00> : vector<8xf32>
    %349 = vector.multi_reduction <add>, %348, %cst_130 [1] : vector<8x8xf32> to vector<8xf32>
    %350 = vector.shape_cast %349 : vector<8xf32> to vector<8x1xf32>
    %351 = tpu.reciprocal %350 {approx = true} : vector<8x1xf32> -> vector<8x1xf32>
    %352 = vector.broadcast %351 : vector<8x1xf32> to vector<8x8xf32>
    %353 = arith.mulf %348, %352 : vector<8x8xf32>
    %cst_131 = arith.constant dense<0.000000e+00> : vector<8x8xf32>
    %354 = tpu.matmul %353, %338, %cst_131 {dimension_numbers = #tpu.dot_dimension_numbers<[1], [0], [0], [1], [0, 0, 1, 1], [], []>} : vector<8x8xf32>, vector<8x8xf32>, vector<8x8xf32> -> vector<8x8xf32>
    %355 = vector.extract_strided_slice %290 {offsets = [0, 24], sizes = [8, 8], strides = [1, 1]} : vector<16x32xf32> to vector<8x8xf32>
    %356 = vector.extract_strided_slice %291 {offsets = [0, 24], sizes = [8, 8], strides = [1, 1]} : vector<16x32xf32> to vector<8x8xf32>
    %357 = vector.extract_strided_slice %292 {offsets = [0, 24], sizes = [8, 8], strides = [1, 1]} : vector<16x32xf32> to vector<8x8xf32>
    %cst_132 = arith.constant dense<0.000000e+00> : vector<8x8xf32>
    %358 = tpu.matmul %355, %356, %cst_132 {dimension_numbers = #tpu.dot_dimension_numbers<[1], [1], [0], [0], [0, 0, 1, 0], [], []>} : vector<8x8xf32>, vector<8x8xf32>, vector<8x8xf32> -> vector<8x8xf32>
    %cst_133 = arith.constant 0.353553385 : f32
    %359 = vector.broadcast %cst_133 : f32 to vector<8x8xf32>
    %360 = arith.mulf %358, %359 : vector<8x8xf32>
    %361 = vector.broadcast %297 : vector<1x8xf32> to vector<8x8xf32>
    %362 = arith.addf %360, %361 : vector<8x8xf32>
    %cst_134 = arith.constant dense<0xFF800000> : vector<8xf32>
    %363 = vector.multi_reduction <maximumf>, %362, %cst_134 [1] : vector<8x8xf32> to vector<8xf32>
    %364 = vector.shape_cast %363 : vector<8xf32> to vector<8x1xf32>
    %365 = vector.broadcast %364 : vector<8x1xf32> to vector<8x8xf32>
    %366 = arith.subf %362, %365 : vector<8x8xf32>
    %367 = math.exp %366 : vector<8x8xf32>
    %cst_135 = arith.constant dense<0.000000e+00> : vector<8xf32>
    %368 = vector.multi_reduction <add>, %367, %cst_135 [1] : vector<8x8xf32> to vector<8xf32>
    %369 = vector.shape_cast %368 : vector<8xf32> to vector<8x1xf32>
    %370 = tpu.reciprocal %369 {approx = true} : vector<8x1xf32> -> vector<8x1xf32>
    %371 = vector.broadcast %370 : vector<8x1xf32> to vector<8x8xf32>
    %372 = arith.mulf %367, %371 : vector<8x8xf32>
    %cst_136 = arith.constant dense<0.000000e+00> : vector<8x8xf32>
    %373 = tpu.matmul %372, %357, %cst_136 {dimension_numbers = #tpu.dot_dimension_numbers<[1], [0], [0], [1], [0, 0, 1, 1], [], []>} : vector<8x8xf32>, vector<8x8xf32>, vector<8x8xf32> -> vector<8x8xf32>
    %374 = tpu.concatenate %316, %335, %354, %373 in 1 : vector<8x8xf32>, vector<8x8xf32>, vector<8x8xf32>, vector<8x8xf32> -> vector<8x32xf32>
    %375 = vector.extract_strided_slice %0 {offsets = [1, 0], sizes = [1, 8], strides = [1, 1]} : vector<2x8xf32> to vector<1x8xf32>
    %cst_137 = arith.constant 1.000000e+00 : f32
    %376 = vector.broadcast %cst_137 : f32 to vector<1x8xf32>
    %377 = arith.subf %376, %375 : vector<1x8xf32>
    %cst_138 = arith.constant -1.000000e+09 : f32
    %378 = vector.broadcast %cst_138 : f32 to vector<1x8xf32>
    %379 = arith.mulf %377, %378 : vector<1x8xf32>
    %380 = vector.extract_strided_slice %290 {offsets = [8, 0], sizes = [8, 8], strides = [1, 1]} : vector<16x32xf32> to vector<8x8xf32>
    %381 = vector.extract_strided_slice %291 {offsets = [8, 0], sizes = [8, 8], strides = [1, 1]} : vector<16x32xf32> to vector<8x8xf32>
    %382 = vector.extract_strided_slice %292 {offsets = [8, 0], sizes = [8, 8], strides = [1, 1]} : vector<16x32xf32> to vector<8x8xf32>
    %cst_139 = arith.constant dense<0.000000e+00> : vector<8x8xf32>
    %383 = tpu.matmul %380, %381, %cst_139 {dimension_numbers = #tpu.dot_dimension_numbers<[1], [1], [0], [0], [0, 0, 1, 0], [], []>} : vector<8x8xf32>, vector<8x8xf32>, vector<8x8xf32> -> vector<8x8xf32>
    %cst_140 = arith.constant 0.353553385 : f32
    %384 = vector.broadcast %cst_140 : f32 to vector<8x8xf32>
    %385 = arith.mulf %383, %384 : vector<8x8xf32>
    %386 = vector.broadcast %379 : vector<1x8xf32> to vector<8x8xf32>
    %387 = arith.addf %385, %386 : vector<8x8xf32>
    %cst_141 = arith.constant dense<0xFF800000> : vector<8xf32>
    %388 = vector.multi_reduction <maximumf>, %387, %cst_141 [1] : vector<8x8xf32> to vector<8xf32>
    %389 = vector.shape_cast %388 : vector<8xf32> to vector<8x1xf32>
    %390 = vector.broadcast %389 : vector<8x1xf32> to vector<8x8xf32>
    %391 = arith.subf %387, %390 : vector<8x8xf32>
    %392 = math.exp %391 : vector<8x8xf32>
    %cst_142 = arith.constant dense<0.000000e+00> : vector<8xf32>
    %393 = vector.multi_reduction <add>, %392, %cst_142 [1] : vector<8x8xf32> to vector<8xf32>
    %394 = vector.shape_cast %393 : vector<8xf32> to vector<8x1xf32>
    %395 = tpu.reciprocal %394 {approx = true} : vector<8x1xf32> -> vector<8x1xf32>
    %396 = vector.broadcast %395 : vector<8x1xf32> to vector<8x8xf32>
    %397 = arith.mulf %392, %396 : vector<8x8xf32>
    %cst_143 = arith.constant dense<0.000000e+00> : vector<8x8xf32>
    %398 = tpu.matmul %397, %382, %cst_143 {dimension_numbers = #tpu.dot_dimension_numbers<[1], [0], [0], [1], [0, 0, 1, 1], [], []>} : vector<8x8xf32>, vector<8x8xf32>, vector<8x8xf32> -> vector<8x8xf32>
    %399 = vector.extract_strided_slice %290 {offsets = [8, 8], sizes = [8, 8], strides = [1, 1]} : vector<16x32xf32> to vector<8x8xf32>
    %400 = vector.extract_strided_slice %291 {offsets = [8, 8], sizes = [8, 8], strides = [1, 1]} : vector<16x32xf32> to vector<8x8xf32>
    %401 = vector.extract_strided_slice %292 {offsets = [8, 8], sizes = [8, 8], strides = [1, 1]} : vector<16x32xf32> to vector<8x8xf32>
    %cst_144 = arith.constant dense<0.000000e+00> : vector<8x8xf32>
    %402 = tpu.matmul %399, %400, %cst_144 {dimension_numbers = #tpu.dot_dimension_numbers<[1], [1], [0], [0], [0, 0, 1, 0], [], []>} : vector<8x8xf32>, vector<8x8xf32>, vector<8x8xf32> -> vector<8x8xf32>
    %cst_145 = arith.constant 0.353553385 : f32
    %403 = vector.broadcast %cst_145 : f32 to vector<8x8xf32>
    %404 = arith.mulf %402, %403 : vector<8x8xf32>
    %405 = vector.broadcast %379 : vector<1x8xf32> to vector<8x8xf32>
    %406 = arith.addf %404, %405 : vector<8x8xf32>
    %cst_146 = arith.constant dense<0xFF800000> : vector<8xf32>
    %407 = vector.multi_reduction <maximumf>, %406, %cst_146 [1] : vector<8x8xf32> to vector<8xf32>
    %408 = vector.shape_cast %407 : vector<8xf32> to vector<8x1xf32>
    %409 = vector.broadcast %408 : vector<8x1xf32> to vector<8x8xf32>
    %410 = arith.subf %406, %409 : vector<8x8xf32>
    %411 = math.exp %410 : vector<8x8xf32>
    %cst_147 = arith.constant dense<0.000000e+00> : vector<8xf32>
    %412 = vector.multi_reduction <add>, %411, %cst_147 [1] : vector<8x8xf32> to vector<8xf32>
    %413 = vector.shape_cast %412 : vector<8xf32> to vector<8x1xf32>
    %414 = tpu.reciprocal %413 {approx = true} : vector<8x1xf32> -> vector<8x1xf32>
    %415 = vector.broadcast %414 : vector<8x1xf32> to vector<8x8xf32>
    %416 = arith.mulf %411, %415 : vector<8x8xf32>
    %cst_148 = arith.constant dense<0.000000e+00> : vector<8x8xf32>
    %417 = tpu.matmul %416, %401, %cst_148 {dimension_numbers = #tpu.dot_dimension_numbers<[1], [0], [0], [1], [0, 0, 1, 1], [], []>} : vector<8x8xf32>, vector<8x8xf32>, vector<8x8xf32> -> vector<8x8xf32>
    %418 = vector.extract_strided_slice %290 {offsets = [8, 16], sizes = [8, 8], strides = [1, 1]} : vector<16x32xf32> to vector<8x8xf32>
    %419 = vector.extract_strided_slice %291 {offsets = [8, 16], sizes = [8, 8], strides = [1, 1]} : vector<16x32xf32> to vector<8x8xf32>
    %420 = vector.extract_strided_slice %292 {offsets = [8, 16], sizes = [8, 8], strides = [1, 1]} : vector<16x32xf32> to vector<8x8xf32>
    %cst_149 = arith.constant dense<0.000000e+00> : vector<8x8xf32>
    %421 = tpu.matmul %418, %419, %cst_149 {dimension_numbers = #tpu.dot_dimension_numbers<[1], [1], [0], [0], [0, 0, 1, 0], [], []>} : vector<8x8xf32>, vector<8x8xf32>, vector<8x8xf32> -> vector<8x8xf32>
    %cst_150 = arith.constant 0.353553385 : f32
    %422 = vector.broadcast %cst_150 : f32 to vector<8x8xf32>
    %423 = arith.mulf %421, %422 : vector<8x8xf32>
    %424 = vector.broadcast %379 : vector<1x8xf32> to vector<8x8xf32>
    %425 = arith.addf %423, %424 : vector<8x8xf32>
    %cst_151 = arith.constant dense<0xFF800000> : vector<8xf32>
    %426 = vector.multi_reduction <maximumf>, %425, %cst_151 [1] : vector<8x8xf32> to vector<8xf32>
    %427 = vector.shape_cast %426 : vector<8xf32> to vector<8x1xf32>
    %428 = vector.broadcast %427 : vector<8x1xf32> to vector<8x8xf32>
    %429 = arith.subf %425, %428 : vector<8x8xf32>
    %430 = math.exp %429 : vector<8x8xf32>
    %cst_152 = arith.constant dense<0.000000e+00> : vector<8xf32>
    %431 = vector.multi_reduction <add>, %430, %cst_152 [1] : vector<8x8xf32> to vector<8xf32>
    %432 = vector.shape_cast %431 : vector<8xf32> to vector<8x1xf32>
    %433 = tpu.reciprocal %432 {approx = true} : vector<8x1xf32> -> vector<8x1xf32>
    %434 = vector.broadcast %433 : vector<8x1xf32> to vector<8x8xf32>
    %435 = arith.mulf %430, %434 : vector<8x8xf32>
    %cst_153 = arith.constant dense<0.000000e+00> : vector<8x8xf32>
    %436 = tpu.matmul %435, %420, %cst_153 {dimension_numbers = #tpu.dot_dimension_numbers<[1], [0], [0], [1], [0, 0, 1, 1], [], []>} : vector<8x8xf32>, vector<8x8xf32>, vector<8x8xf32> -> vector<8x8xf32>
    %437 = vector.extract_strided_slice %290 {offsets = [8, 24], sizes = [8, 8], strides = [1, 1]} : vector<16x32xf32> to vector<8x8xf32>
    %438 = vector.extract_strided_slice %291 {offsets = [8, 24], sizes = [8, 8], strides = [1, 1]} : vector<16x32xf32> to vector<8x8xf32>
    %439 = vector.extract_strided_slice %292 {offsets = [8, 24], sizes = [8, 8], strides = [1, 1]} : vector<16x32xf32> to vector<8x8xf32>
    %cst_154 = arith.constant dense<0.000000e+00> : vector<8x8xf32>
    %440 = tpu.matmul %437, %438, %cst_154 {dimension_numbers = #tpu.dot_dimension_numbers<[1], [1], [0], [0], [0, 0, 1, 0], [], []>} : vector<8x8xf32>, vector<8x8xf32>, vector<8x8xf32> -> vector<8x8xf32>
    %cst_155 = arith.constant 0.353553385 : f32
    %441 = vector.broadcast %cst_155 : f32 to vector<8x8xf32>
    %442 = arith.mulf %440, %441 : vector<8x8xf32>
    %443 = vector.broadcast %379 : vector<1x8xf32> to vector<8x8xf32>
    %444 = arith.addf %442, %443 : vector<8x8xf32>
    %cst_156 = arith.constant dense<0xFF800000> : vector<8xf32>
    %445 = vector.multi_reduction <maximumf>, %444, %cst_156 [1] : vector<8x8xf32> to vector<8xf32>
    %446 = vector.shape_cast %445 : vector<8xf32> to vector<8x1xf32>
    %447 = vector.broadcast %446 : vector<8x1xf32> to vector<8x8xf32>
    %448 = arith.subf %444, %447 : vector<8x8xf32>
    %449 = math.exp %448 : vector<8x8xf32>
    %cst_157 = arith.constant dense<0.000000e+00> : vector<8xf32>
    %450 = vector.multi_reduction <add>, %449, %cst_157 [1] : vector<8x8xf32> to vector<8xf32>
    %451 = vector.shape_cast %450 : vector<8xf32> to vector<8x1xf32>
    %452 = tpu.reciprocal %451 {approx = true} : vector<8x1xf32> -> vector<8x1xf32>
    %453 = vector.broadcast %452 : vector<8x1xf32> to vector<8x8xf32>
    %454 = arith.mulf %449, %453 : vector<8x8xf32>
    %cst_158 = arith.constant dense<0.000000e+00> : vector<8x8xf32>
    %455 = tpu.matmul %454, %439, %cst_158 {dimension_numbers = #tpu.dot_dimension_numbers<[1], [0], [0], [1], [0, 0, 1, 1], [], []>} : vector<8x8xf32>, vector<8x8xf32>, vector<8x8xf32> -> vector<8x8xf32>
    %456 = tpu.concatenate %398, %417, %436, %455 in 1 : vector<8x8xf32>, vector<8x8xf32>, vector<8x8xf32>, vector<8x8xf32> -> vector<8x32xf32>
    %457 = tpu.concatenate %374, %456 in 0 : vector<8x32xf32>, vector<8x32xf32> -> vector<16x32xf32>
    %c1_159 = arith.constant 1 : index
    %c0_160 = arith.constant 0 : index
    %c0_161 = arith.constant 0 : index
    %458 = vector.load %arg8[%c1_159, %c0_160, %c0_161] : memref<2x32x32xf32, #tpu.memory_space<vmem>>, vector<1x32x32xf32>
    %459 = vector.shape_cast %458 : vector<1x32x32xf32> to vector<32x32xf32>
    %cst_162 = arith.constant dense<0.000000e+00> : vector<16x32xf32>
    %460 = tpu.matmul %457, %459, %cst_162 {dimension_numbers = #tpu.dot_dimension_numbers<[1], [0], [0], [1], [0, 0, 1, 1], [], []>} : vector<16x32xf32>, vector<32x32xf32>, vector<16x32xf32> -> vector<16x32xf32>
    %c1_163 = arith.constant 1 : index
    %c0_164 = arith.constant 0 : index
    %c0_165 = arith.constant 0 : index
    %461 = vector.load %arg9[%c1_163, %c0_164, %c0_165] : memref<2x1x32xf32, #tpu.memory_space<vmem>>, vector<1x1x32xf32>
    %462 = vector.shape_cast %461 : vector<1x1x32xf32> to vector<1x32xf32>
    %463 = vector.broadcast %462 : vector<1x32xf32> to vector<16x32xf32>
    %464 = arith.addf %460, %463 : vector<16x32xf32>
    %465 = arith.addf %464, %282 : vector<16x32xf32>
    %c1_166 = arith.constant 1 : index
    %c0_167 = arith.constant 0 : index
    %c0_168 = arith.constant 0 : index
    %466 = vector.load %arg10[%c1_166, %c0_167, %c0_168] : memref<2x1x32xf32, #tpu.memory_space<vmem>>, vector<1x1x32xf32>
    %467 = vector.shape_cast %466 : vector<1x1x32xf32> to vector<1x32xf32>
    %c1_169 = arith.constant 1 : index
    %c0_170 = arith.constant 0 : index
    %c0_171 = arith.constant 0 : index
    %468 = vector.load %arg11[%c1_169, %c0_170, %c0_171] : memref<2x1x32xf32, #tpu.memory_space<vmem>>, vector<1x1x32xf32>
    %469 = vector.shape_cast %468 : vector<1x1x32xf32> to vector<1x32xf32>
    %cst_172 = arith.constant dense<0.000000e+00> : vector<16xf32>
    %470 = vector.multi_reduction <add>, %465, %cst_172 [1] : vector<16x32xf32> to vector<16xf32>
    %471 = vector.shape_cast %470 : vector<16xf32> to vector<16x1xf32>
    %cst_173 = arith.constant 3.200000e+01 : f32
    %472 = vector.broadcast %cst_173 : f32 to vector<16x1xf32>
    %473 = arith.divf %471, %472 : vector<16x1xf32>
    %474 = vector.broadcast %473 : vector<16x1xf32> to vector<16x32xf32>
    %475 = arith.subf %465, %474 : vector<16x32xf32>
    %476 = arith.mulf %475, %475 : vector<16x32xf32>
    %cst_174 = arith.constant dense<0.000000e+00> : vector<16xf32>
    %477 = vector.multi_reduction <add>, %476, %cst_174 [1] : vector<16x32xf32> to vector<16xf32>
    %478 = vector.shape_cast %477 : vector<16xf32> to vector<16x1xf32>
    %cst_175 = arith.constant 3.200000e+01 : f32
    %479 = vector.broadcast %cst_175 : f32 to vector<16x1xf32>
    %480 = arith.divf %478, %479 : vector<16x1xf32>
    %cst_176 = arith.constant 9.99999996E-13 : f32
    %481 = vector.broadcast %cst_176 : f32 to vector<16x1xf32>
    %482 = arith.addf %480, %481 : vector<16x1xf32>
    %483 = math.rsqrt %482 : vector<16x1xf32>
    %484 = vector.broadcast %483 : vector<16x1xf32> to vector<16x32xf32>
    %485 = arith.mulf %475, %484 : vector<16x32xf32>
    %486 = vector.broadcast %467 : vector<1x32xf32> to vector<16x32xf32>
    %487 = arith.mulf %485, %486 : vector<16x32xf32>
    %488 = vector.broadcast %469 : vector<1x32xf32> to vector<16x32xf32>
    %489 = arith.addf %487, %488 : vector<16x32xf32>
    %c1_177 = arith.constant 1 : index
    %c0_178 = arith.constant 0 : index
    %c0_179 = arith.constant 0 : index
    %490 = vector.load %arg12[%c1_177, %c0_178, %c0_179] : memref<2x32x64xf32, #tpu.memory_space<vmem>>, vector<1x32x64xf32>
    %491 = vector.shape_cast %490 : vector<1x32x64xf32> to vector<32x64xf32>
    %cst_180 = arith.constant dense<0.000000e+00> : vector<16x64xf32>
    %492 = tpu.matmul %489, %491, %cst_180 {dimension_numbers = #tpu.dot_dimension_numbers<[1], [0], [0], [1], [0, 0, 1, 1], [], []>} : vector<16x32xf32>, vector<32x64xf32>, vector<16x64xf32> -> vector<16x64xf32>
    %c1_181 = arith.constant 1 : index
    %c0_182 = arith.constant 0 : index
    %c0_183 = arith.constant 0 : index
    %493 = vector.load %arg13[%c1_181, %c0_182, %c0_183] : memref<2x1x64xf32, #tpu.memory_space<vmem>>, vector<1x1x64xf32>
    %494 = vector.shape_cast %493 : vector<1x1x64xf32> to vector<1x64xf32>
    %495 = vector.broadcast %494 : vector<1x64xf32> to vector<16x64xf32>
    %496 = arith.addf %492, %495 : vector<16x64xf32>
    %497 = arith.mulf %496, %496 : vector<16x64xf32>
    %498 = arith.mulf %496, %497 : vector<16x64xf32>
    %cst_184 = arith.constant 4.471500e-02 : f32
    %499 = vector.broadcast %cst_184 : f32 to vector<16x64xf32>
    %500 = arith.mulf %499, %498 : vector<16x64xf32>
    %501 = arith.addf %496, %500 : vector<16x64xf32>
    %cst_185 = arith.constant 0.797884583 : f32
    %502 = vector.broadcast %cst_185 : f32 to vector<16x64xf32>
    %503 = arith.mulf %502, %501 : vector<16x64xf32>
    %504 = math.tanh %503 : vector<16x64xf32>
    %cst_186 = arith.constant 1.000000e+00 : f32
    %505 = vector.broadcast %cst_186 : f32 to vector<16x64xf32>
    %506 = arith.addf %505, %504 : vector<16x64xf32>
    %cst_187 = arith.constant 5.000000e-01 : f32
    %507 = vector.broadcast %cst_187 : f32 to vector<16x64xf32>
    %508 = arith.mulf %507, %506 : vector<16x64xf32>
    %509 = arith.mulf %496, %508 : vector<16x64xf32>
    %c1_188 = arith.constant 1 : index
    %c0_189 = arith.constant 0 : index
    %c0_190 = arith.constant 0 : index
    %510 = vector.load %arg14[%c1_188, %c0_189, %c0_190] : memref<2x64x32xf32, #tpu.memory_space<vmem>>, vector<1x64x32xf32>
    %511 = vector.shape_cast %510 : vector<1x64x32xf32> to vector<64x32xf32>
    %cst_191 = arith.constant dense<0.000000e+00> : vector<16x32xf32>
    %512 = tpu.matmul %509, %511, %cst_191 {dimension_numbers = #tpu.dot_dimension_numbers<[1], [0], [0], [1], [0, 0, 1, 1], [], []>} : vector<16x64xf32>, vector<64x32xf32>, vector<16x32xf32> -> vector<16x32xf32>
    %c1_192 = arith.constant 1 : index
    %c0_193 = arith.constant 0 : index
    %c0_194 = arith.constant 0 : index
    %513 = vector.load %arg15[%c1_192, %c0_193, %c0_194] : memref<2x1x32xf32, #tpu.memory_space<vmem>>, vector<1x1x32xf32>
    %514 = vector.shape_cast %513 : vector<1x1x32xf32> to vector<1x32xf32>
    %515 = vector.broadcast %514 : vector<1x32xf32> to vector<16x32xf32>
    %516 = arith.addf %512, %515 : vector<16x32xf32>
    %517 = arith.addf %516, %489 : vector<16x32xf32>
    %c1_195 = arith.constant 1 : index
    %c0_196 = arith.constant 0 : index
    %c0_197 = arith.constant 0 : index
    %518 = vector.load %arg16[%c1_195, %c0_196, %c0_197] : memref<2x1x32xf32, #tpu.memory_space<vmem>>, vector<1x1x32xf32>
    %519 = vector.shape_cast %518 : vector<1x1x32xf32> to vector<1x32xf32>
    %c1_198 = arith.constant 1 : index
    %c0_199 = arith.constant 0 : index
    %c0_200 = arith.constant 0 : index
    %520 = vector.load %arg17[%c1_198, %c0_199, %c0_200] : memref<2x1x32xf32, #tpu.memory_space<vmem>>, vector<1x1x32xf32>
    %521 = vector.shape_cast %520 : vector<1x1x32xf32> to vector<1x32xf32>
    %cst_201 = arith.constant dense<0.000000e+00> : vector<16xf32>
    %522 = vector.multi_reduction <add>, %517, %cst_201 [1] : vector<16x32xf32> to vector<16xf32>
    %523 = vector.shape_cast %522 : vector<16xf32> to vector<16x1xf32>
    %cst_202 = arith.constant 3.200000e+01 : f32
    %524 = vector.broadcast %cst_202 : f32 to vector<16x1xf32>
    %525 = arith.divf %523, %524 : vector<16x1xf32>
    %526 = vector.broadcast %525 : vector<16x1xf32> to vector<16x32xf32>
    %527 = arith.subf %517, %526 : vector<16x32xf32>
    %528 = arith.mulf %527, %527 : vector<16x32xf32>
    %cst_203 = arith.constant dense<0.000000e+00> : vector<16xf32>
    %529 = vector.multi_reduction <add>, %528, %cst_203 [1] : vector<16x32xf32> to vector<16xf32>
    %530 = vector.shape_cast %529 : vector<16xf32> to vector<16x1xf32>
    %cst_204 = arith.constant 3.200000e+01 : f32
    %531 = vector.broadcast %cst_204 : f32 to vector<16x1xf32>
    %532 = arith.divf %530, %531 : vector<16x1xf32>
    %cst_205 = arith.constant 9.99999996E-13 : f32
    %533 = vector.broadcast %cst_205 : f32 to vector<16x1xf32>
    %534 = arith.addf %532, %533 : vector<16x1xf32>
    %535 = math.rsqrt %534 : vector<16x1xf32>
    %536 = vector.broadcast %535 : vector<16x1xf32> to vector<16x32xf32>
    %537 = arith.mulf %527, %536 : vector<16x32xf32>
    %538 = vector.broadcast %519 : vector<1x32xf32> to vector<16x32xf32>
    %539 = arith.mulf %537, %538 : vector<16x32xf32>
    %540 = vector.broadcast %521 : vector<1x32xf32> to vector<16x32xf32>
    %541 = arith.addf %539, %540 : vector<16x32xf32>
    %542 = vector.extract_strided_slice %0 {offsets = [0, 0], sizes = [1, 8], strides = [1, 1]} : vector<2x8xf32> to vector<1x8xf32>
    %543 = vector.extract_strided_slice %541 {offsets = [0, 0], sizes = [8, 32], strides = [1, 1]} : vector<16x32xf32> to vector<8x32xf32>
    %cst_206 = arith.constant dense<0.000000e+00> : vector<1x32xf32>
    %544 = tpu.matmul %542, %543, %cst_206 {dimension_numbers = #tpu.dot_dimension_numbers<[1], [0], [0], [1], [0, 0, 1, 1], [], []>} : vector<1x8xf32>, vector<8x32xf32>, vector<1x32xf32> -> vector<1x32xf32>
    %cst_207 = arith.constant dense<0.000000e+00> : vector<1xf32>
    %545 = vector.multi_reduction <add>, %542, %cst_207 [1] : vector<1x8xf32> to vector<1xf32>
    %546 = vector.shape_cast %545 : vector<1xf32> to vector<1x1xf32>
    %cst_208 = arith.constant 9.99999971E-10 : f32
    %547 = vector.broadcast %cst_208 : f32 to vector<1x1xf32>
    %548 = arith.maximumf %546, %547 : vector<1x1xf32>
    %549 = vector.broadcast %548 : vector<1x1xf32> to vector<1x32xf32>
    %550 = arith.divf %544, %549 : vector<1x32xf32>
    %551 = vector.extract_strided_slice %0 {offsets = [1, 0], sizes = [1, 8], strides = [1, 1]} : vector<2x8xf32> to vector<1x8xf32>
    %552 = vector.extract_strided_slice %541 {offsets = [8, 0], sizes = [8, 32], strides = [1, 1]} : vector<16x32xf32> to vector<8x32xf32>
    %cst_209 = arith.constant dense<0.000000e+00> : vector<1x32xf32>
    %553 = tpu.matmul %551, %552, %cst_209 {dimension_numbers = #tpu.dot_dimension_numbers<[1], [0], [0], [1], [0, 0, 1, 1], [], []>} : vector<1x8xf32>, vector<8x32xf32>, vector<1x32xf32> -> vector<1x32xf32>
    %cst_210 = arith.constant dense<0.000000e+00> : vector<1xf32>
    %554 = vector.multi_reduction <add>, %551, %cst_210 [1] : vector<1x8xf32> to vector<1xf32>
    %555 = vector.shape_cast %554 : vector<1xf32> to vector<1x1xf32>
    %cst_211 = arith.constant 9.99999971E-10 : f32
    %556 = vector.broadcast %cst_211 : f32 to vector<1x1xf32>
    %557 = arith.maximumf %555, %556 : vector<1x1xf32>
    %558 = vector.broadcast %557 : vector<1x1xf32> to vector<1x32xf32>
    %559 = arith.divf %553, %558 : vector<1x32xf32>
    %560 = tpu.concatenate %550, %559 in 0 : vector<1x32xf32>, vector<1x32xf32> -> vector<2x32xf32>
    %c0_212 = arith.constant 0 : index
    %c0_213 = arith.constant 0 : index
    %561 = vector.load %arg18[%c0_212, %c0_213] : memref<32x16xf32, #tpu.memory_space<vmem>>, vector<32x16xf32>
    %cst_214 = arith.constant dense<0.000000e+00> : vector<2x16xf32>
    %562 = tpu.matmul %560, %561, %cst_214 {dimension_numbers = #tpu.dot_dimension_numbers<[1], [0], [0], [1], [0, 0, 1, 1], [], []>} : vector<2x32xf32>, vector<32x16xf32>, vector<2x16xf32> -> vector<2x16xf32>
    %c0_215 = arith.constant 0 : index
    %c0_216 = arith.constant 0 : index
    %563 = vector.load %arg19[%c0_215, %c0_216] : memref<1x16xf32, #tpu.memory_space<vmem>>, vector<1x16xf32>
    %564 = vector.broadcast %563 : vector<1x16xf32> to vector<2x16xf32>
    %565 = arith.addf %562, %564 : vector<2x16xf32>
    %566 = arith.mulf %565, %565 : vector<2x16xf32>
    %cst_217 = arith.constant dense<0.000000e+00> : vector<2xf32>
    %567 = vector.multi_reduction <add>, %566, %cst_217 [1] : vector<2x16xf32> to vector<2xf32>
    %568 = vector.shape_cast %567 : vector<2xf32> to vector<2x1xf32>
    %cst_218 = arith.constant 1.000000e-24 : f32
    %569 = vector.broadcast %cst_218 : f32 to vector<2x1xf32>
    %570 = arith.maximumf %568, %569 : vector<2x1xf32>
    %571 = math.rsqrt %570 : vector<2x1xf32>
    %572 = vector.broadcast %571 : vector<2x1xf32> to vector<2x16xf32>
    %573 = arith.mulf %565, %572 : vector<2x16xf32>
    %c0_219 = arith.constant 0 : index
    %c0_220 = arith.constant 0 : index
    %574 = vector.load %arg3[%c0_219, %c0_220] : memref<2x1xf32, #tpu.memory_space<vmem>>, vector<2x1xf32>
    %cst_221 = arith.constant 5.000000e-01 : f32
    %575 = vector.broadcast %cst_221 : f32 to vector<2x1xf32>
    %576 = arith.cmpf ogt, %574, %575 : vector<2x1xf32>
    %c0_222 = arith.constant 0 : index
    %c0_223 = arith.constant 0 : index
    %577 = vector.load %arg20[%c0_222, %c0_223] : memref<1x16xf32, #tpu.memory_space<vmem>>, vector<1x16xf32>
    %578 = vector.shape_cast %576 : vector<2x1xi1> to vector<2x1xi1>
    %579 = vector.broadcast %578 : vector<2x1xi1> to vector<2x16xi1>
    %580 = vector.shape_cast %577 : vector<1x16xf32> to vector<1x16xf32>
    %581 = vector.broadcast %580 : vector<1x16xf32> to vector<2x16xf32>
    %582 = arith.select %579, %581, %573 : vector<2x16xi1>, vector<2x16xf32>
    %c0_224 = arith.constant 0 : index
    %c0_225 = arith.constant 0 : index
    %583 = vector.load %arg21[%c0_224, %c0_225] : memref<2x16xf32, #tpu.memory_space<vmem>>, vector<2x16xf32>
    tpu.vector_store %arg21[%c0_224, %c0_225], %582 {strides = array<i32>} : memref<2x16xf32, #tpu.memory_space<vmem>>, vector<2x16xf32>,
    return
  }
  func.func @transform_0(%arg0: i32) -> (i32, i32) {
    %c0_i32 = arith.constant 0 : i32
    %c0_i32_0 = arith.constant 0 : i32
    %c0_i32_1 = arith.constant 0 : i32
    return %c0_i32, %c0_i32_0 : i32, i32
  }
  func.func @transform_1(%arg0: i32) -> (i32, i32) {
    %c0_i32 = arith.constant 0 : i32
    %c0_i32_0 = arith.constant 0 : i32
    %c0_i32_1 = arith.constant 0 : i32
    return %c0_i32, %c0_i32_0 : i32, i32
  }
  func.func @transform_2(%arg0: i32) -> (i32, i32) {
    %c0_i32 = arith.constant 0 : i32
    %c0_i32_0 = arith.constant 0 : i32
    %c0_i32_1 = arith.constant 0 : i32
    return %c0_i32, %c0_i32_0 : i32, i32
  }
  func.func @transform_3(%arg0: i32) -> (i32, i32) {
    %c0_i32 = arith.constant 0 : i32
    %c0_i32_0 = arith.constant 0 : i32
    %c0_i32_1 = arith.constant 0 : i32
    return %c0_i32, %c0_i32_0 : i32, i32
  }
  func.func @transform_4(%arg0: i32) -> (i32, i32) {
    %c0_i32 = arith.constant 0 : i32
    %c0_i32_0 = arith.constant 0 : i32
    %c0_i32_1 = arith.constant 0 : i32
    return %c0_i32, %c0_i32_0 : i32, i32
  }
  func.func @transform_5(%arg0: i32) -> (i32, i32, i32) {
    %c0_i32 = arith.constant 0 : i32
    %c0_i32_0 = arith.constant 0 : i32
    %c0_i32_1 = arith.constant 0 : i32
    %c0_i32_2 = arith.constant 0 : i32
    return %c0_i32, %c0_i32_0, %c0_i32_1 : i32, i32, i32
  }
  func.func @transform_6(%arg0: i32) -> (i32, i32, i32) {
    %c0_i32 = arith.constant 0 : i32
    %c0_i32_0 = arith.constant 0 : i32
    %c0_i32_1 = arith.constant 0 : i32
    %c0_i32_2 = arith.constant 0 : i32
    return %c0_i32, %c0_i32_0, %c0_i32_1 : i32, i32, i32
  }
  func.func @transform_7(%arg0: i32) -> (i32, i32, i32) {
    %c0_i32 = arith.constant 0 : i32
    %c0_i32_0 = arith.constant 0 : i32
    %c0_i32_1 = arith.constant 0 : i32
    %c0_i32_2 = arith.constant 0 : i32
    return %c0_i32, %c0_i32_0, %c0_i32_1 : i32, i32, i32
  }
  func.func @transform_8(%arg0: i32) -> (i32, i32, i32) {
    %c0_i32 = arith.constant 0 : i32
    %c0_i32_0 = arith.constant 0 : i32
    %c0_i32_1 = arith.constant 0 : i32
    %c0_i32_2 = arith.constant 0 : i32
    return %c0_i32, %c0_i32_0, %c0_i32_1 : i32, i32, i32
  }
  func.func @transform_9(%arg0: i32) -> (i32, i32, i32) {
    %c0_i32 = arith.constant 0 : i32
    %c0_i32_0 = arith.constant 0 : i32
    %c0_i32_1 = arith.constant 0 : i32
    %c0_i32_2 = arith.constant 0 : i32
    return %c0_i32, %c0_i32_0, %c0_i32_1 : i32, i32, i32
  }
  func.func @transform_10(%arg0: i32) -> (i32, i32, i32) {
    %c0_i32 = arith.constant 0 : i32
    %c0_i32_0 = arith.constant 0 : i32
    %c0_i32_1 = arith.constant 0 : i32
    %c0_i32_2 = arith.constant 0 : i32
    return %c0_i32, %c0_i32_0, %c0_i32_1 : i32, i32, i32
  }
  func.func @transform_11(%arg0: i32) -> (i32, i32, i32) {
    %c0_i32 = arith.constant 0 : i32
    %c0_i32_0 = arith.constant 0 : i32
    %c0_i32_1 = arith.constant 0 : i32
    %c0_i32_2 = arith.constant 0 : i32
    return %c0_i32, %c0_i32_0, %c0_i32_1 : i32, i32, i32
  }
  func.func @transform_12(%arg0: i32) -> (i32, i32, i32) {
    %c0_i32 = arith.constant 0 : i32
    %c0_i32_0 = arith.constant 0 : i32
    %c0_i32_1 = arith.constant 0 : i32
    %c0_i32_2 = arith.constant 0 : i32
    return %c0_i32, %c0_i32_0, %c0_i32_1 : i32, i32, i32
  }
  func.func @transform_13(%arg0: i32) -> (i32, i32, i32) {
    %c0_i32 = arith.constant 0 : i32
    %c0_i32_0 = arith.constant 0 : i32
    %c0_i32_1 = arith.constant 0 : i32
    %c0_i32_2 = arith.constant 0 : i32
    return %c0_i32, %c0_i32_0, %c0_i32_1 : i32, i32, i32
  }
  func.func @transform_14(%arg0: i32) -> (i32, i32, i32) {
    %c0_i32 = arith.constant 0 : i32
    %c0_i32_0 = arith.constant 0 : i32
    %c0_i32_1 = arith.constant 0 : i32
    %c0_i32_2 = arith.constant 0 : i32
    return %c0_i32, %c0_i32_0, %c0_i32_1 : i32, i32, i32
  }
  func.func @transform_15(%arg0: i32) -> (i32, i32, i32) {
    %c0_i32 = arith.constant 0 : i32
    %c0_i32_0 = arith.constant 0 : i32
    %c0_i32_1 = arith.constant 0 : i32
    %c0_i32_2 = arith.constant 0 : i32
    return %c0_i32, %c0_i32_0, %c0_i32_1 : i32, i32, i32
  }
  func.func @transform_16(%arg0: i32) -> (i32, i32, i32) {
    %c0_i32 = arith.constant 0 : i32
    %c0_i32_0 = arith.constant 0 : i32
    %c0_i32_1 = arith.constant 0 : i32
    %c0_i32_2 = arith.constant 0 : i32
    return %c0_i32, %c0_i32_0, %c0_i32_1 : i32, i32, i32
  }
  func.func @transform_17(%arg0: i32) -> (i32, i32) {
    %c0_i32 = arith.constant 0 : i32
    %c0_i32_0 = arith.constant 0 : i32
    %c0_i32_1 = arith.constant 0 : i32
    return %c0_i32, %c0_i32_0 : i32, i32
  }
  func.func @transform_18(%arg0: i32) -> (i32, i32) {
    %c0_i32 = arith.constant 0 : i32
    %c0_i32_0 = arith.constant 0 : i32
    %c0_i32_1 = arith.constant 0 : i32
    return %c0_i32, %c0_i32_0 : i32, i32
  }
  func.func @transform_19(%arg0: i32) -> (i32, i32) {
    %c0_i32 = arith.constant 0 : i32
    %c0_i32_0 = arith.constant 0 : i32
    %c0_i32_1 = arith.constant 0 : i32
    return %c0_i32, %c0_i32_0 : i32, i32
  }
  func.func @transform_20(%arg0: i32) -> (i32, i32) {
    %c0_i32 = arith.constant 0 : i32
    %c0_i32_0 = arith.constant 0 : i32
    %c0_i32_1 = arith.constant 0 : i32
    return %c0_i32, %c0_i32_0 : i32, i32
  }
}

</mosaic_0001>

<bundles_post_ra>
// kernel: text_encoder_forward.1
= control target key start
LH: loop header
LB: loop body
LE: loop exit
PB: predicated region body
PF: predicated region fallthrough
CT: control target
= control target key end

     0   :  { %s2970_s0 = inlined_call_operand.vmem [shape: f32[16,32], index: 0, kind: input, shape index: {}]   ;;  %s2971_s1 = inlined_call_operand.vmem [shape: f32[2,8], index: 1, kind: input, shape index: {}]   ;;  %s2972_s2 = inlined_call_operand.vmem [shape: f32[2,1], index: 2, kind: input, shape index: {}]   ;;  %s2973_s3 = inlined_call_operand.vmem [shape: f32[1,32], index: 3, kind: input, shape index: {}]   ;;  %s2974_s4 = inlined_call_operand.vmem [shape: f32[1,32], index: 4, kind: input, shape index: {}]   ;;  %s2975_s5 = inlined_call_operand.vmem [shape: f32[2,32,96], index: 5, kind: input, shape index: {}]   ;;  %s2976_s6 = inlined_call_operand.vmem [shape: f32[2,1,96], index: 6, kind: input, shape index: {}]   ;;  %s2977_s7 = inlined_call_operand.vmem [shape: f32[2,32,32], index: 7, kind: input, shape index: {}]   ;;  %s2978_s8 = inlined_call_operand.vmem [shape: f32[2,1,32], index: 8, kind: input, shape index: {}]   ;;  %s2979_s9 = inlined_call_operand.vmem [shape: f32[2,1,32], index: 9, kind: input, shape index: {}]   ;;  %s2980_s10 = inlined_call_operand.vmem [shape: f32[2,1,32], index: 10, kind: input, shape index: {}]   ;;  %s2981_s11 = inlined_call_operand.vmem [shape: f32[2,32,64], index: 11, kind: input, shape index: {}]   ;;  %s2982_s12 = inlined_call_operand.vmem [shape: f32[2,1,64], index: 12, kind: input, shape index: {}]   ;;  %s2983_s13 = inlined_call_operand.vmem [shape: f32[2,64,32], index: 13, kind: input, shape index: {}]   ;;  %s2984_s14 = inlined_call_operand.vmem [shape: f32[2,1,32], index: 14, kind: input, shape index: {}]   ;;  %s2985_s15 = inlined_call_operand.vmem [shape: f32[2,1,32], index: 15, kind: input, shape index: {}]   ;;  %s2986_s16 = inlined_call_operand.vmem [shape: f32[2,1,32], index: 16, kind: input, shape index: {}]   ;;  %s2987_s17 = inlined_call_operand.vmem [shape: f32[32,16], index: 17, kind: input, shape index: {}]   ;;  %s2988_s18 = inlined_call_operand.vmem [shape: f32[1,16], index: 18, kind: input, shape index: {}]   ;;  %s2989_s19 = inlined_call_operand.vmem [shape: f32[1,16], index: 19, kind: input, shape index: {}]   ;;  %s2990_s20 = inlined_call_operand.hbm [shape: f32[2,16], index: 20, kind: output, shape index: {}]  }
   0x1   :  { %3013 = sst [smem:[#allocation5_spill]] %s2970_s0 }
   0x2   :  { %3014 = sst [smem:[#allocation6_spill]] %s2971_s1 }
   0x3   :  { %3015 = sst [smem:[#allocation7_spill]] %s2972_s2 }
   0x4   :  { %3016 = sst [smem:[#allocation8_spill]] %s2973_s3 }
   0x5   :  { %3017 = sst [smem:[#allocation9_spill]] %s2974_s4 }
   0x6   :  { %s3018_s23 = sld [smem:[#allocation5_spill]]  ;;  %vm71_vm0 = vcmask 261120  }
   0xc   :  { %v67_v0 = vld [vmem:[%s3018_s23] sm:$0xff] }
   0xd   :  { %v72_v1 = vsel %vm71_vm0, %v67_v0, 0.0 }
   0xe   :  { %73 = vadd.xlane.f32.xlu0 %v72_v1 }
   0xf   :  { %25 = vsyncpa [#allocation3], 0  ;;  %v2285_v2 = vmov 32.0   ;;  %v136_v14 = vld [vmem:[%s2975_s5 + $0x18] sm:$0xff]  ;;  %v135_v15 = vld [vmem:[%s2975_s5 + $0x10] sm:$0xff]  ;;  %s3019_s0 = sld [smem:[#allocation8_spill]] }
  0x10   :  { %2158 = vrcp.f32 %v2285_v2  ;;  %159 = vmatpush.msra.mxu0 %v136_v14  ;;  %v134_v16 = vld [vmem:[%s2975_s5 + $0x8] sm:$0xff]  ;;  %v133_v17 = vld [vmem:[%s2975_s5] sm:$0xff]  ;;  %s3020_s22 = sld [smem:[#allocation9_spill]]  ;;  %s2286_s25 = smov 64   ;;  %vm175_vm5 = vcmask 64512   ;;  %vm454_vm9 = vcmask 130048  }
  0x11   :  { %v2447_v33 = vld [vmem:[%s2976_s6] ss:$0 sm:$0xff]  ;;  %s3007_s3 = smov 120   ;;  %s3003_s26 = smov 96   ;;  %v68_v63 = vld [vmem:[%s3018_s23 + $0x8] sm:$0xff]  ;;  %vm456_vm10 = vcmask 195584  }
  0x12   :  { %160 = vmatpush.msra.mxu0 %v135_v15  ;;  %s3001_s27 = smov 88   ;;  %s3021_s29 = sld [smem:[#allocation6_spill]]  ;;  %vm903_vm14 = vcmask 523264  }
  0x13   :  { %s3005_s30 = smov 56   ;;  %s2999_s21 = smov 80  }
  0x14   :  { %161 = vmatpush.msra.mxu0 %v134_v16  ;;  %s2995_s1 = smov 112   ;;  %s2295_s28 = smov 40  }
  0x15   :  { %v2431_v27 = vld [vmem:[%s3019_s0] ss:$0 sm:$0xff]  ;;  %s2993_s0 = smov 104   ;;  %s2296_s23 = smov 48  }
  0x16   :  { %v2159_v3 = vpop.eup %2158  ;;  %162 = vmatpush.msra.mxu0 %v133_v17  ;;  %v2436_v30 = vld [vmem:[%s3020_s22] ss:$0 sm:$0xff]  ;;  %s2997_s22 = smov 72   ;;  %s2297_s4 = smov 8  }
  0x17   :  { %v79_v4 = vmul.f32 32.0, %v2159_v3  ;;  %vm83_vm1 = vweird.f32 %v2159_v3  ;;  %s3009_s24 = smov 16   ;;  %s3011_s2 = smov 24  }
  0x18   :  { %v66_v40 = vld [vmem:[%s3021_s29] sm:$0x3] }
  0x19   :  { %v80_v5 = vsub.f32 1.0, %v79_v4  ;;  %v170_v41 = vsub.f32 1.0, %v66_v40 }
  0x1b   :  { %v81_v6 = vmul.f32 %v2159_v3, %v80_v5  ;;  %v2468_v42 = vmul.f32 -1e+09, %v170_v41 }
  0x1d   :  { %v82_v7 = vadd.f32 %v2159_v3, %v81_v6  ;;  %v2471_v43 = vperm.slane %v2468_v42, 0 }
  0x1f   :  { %v2411_v8 = vsel %vm83_vm1, %v2159_v3, %v82_v7 }
  0x81   :  { %v74_v9 = vpop.xlane.xlu0 %73 }
  0x82   :  { %v85_v10 = vmul.f32 %v2411_v8, %v74_v9 }
  0x84   :  { %v87_v11 = vsub.f32 %v67_v0, %v85_v10  ;;  %v75_v0 = vsel %vm71_vm0, %v68_v63, 0.0 }
  0x86   :  { %v89_v12 = vmul.f32 %v87_v11, %v87_v11 }
  0x88   :  { %v91_v13 = vsel %vm71_vm0, %v89_v12, 0.0 }
  0x89   :  { %92 = vadd.xlane.f32.xlu0 %v91_v13 }
  0xfc   :  { %v93_v18 = vpop.xlane.xlu0 %92 }
  0xfd   :  { %v97_v19 = vmul.f32 %v93_v18, %v2411_v8 }
  0xff   :  { %v99_v20 = vadd.f32 1e-12, %v97_v19 }
 0x101   :  { %2160 = vrsqrt.f32 %v99_v20  ;;  %vm107_vm3 = vweird.f32 %v99_v20 }
 0x107   :  { %v2161_v21 = vpop.eup %2160 }
 0x108   :  { %v102_v22 = vmul.f32 %v2161_v21, %v99_v20  ;;  %vm108_vm2 = vweird.f32 %v2161_v21 }
 0x109   :  { %vm109_vm4 = vmor %vm107_vm3, %vm108_vm2 }
 0x10a   :  { %v103_v23 = vmul.f32 %v2161_v21, %v102_v22 }
 0x10c   :  { %v104_v24 = vmul.f32 0.5, %v103_v23 }
 0x10e   :  { %v105_v25 = vsub.f32 1.5, %v104_v24 }
 0x110   :  { %v106_v26 = vmul.f32 %v2161_v21, %v105_v25 }
 0x112   :  { %v110_v28 = vsel %vm109_vm4, %v2161_v21, %v106_v26 }
 0x113   :  { %v121_v29 = vmul.f32 %v110_v28, %v87_v11 }
 0x115   :  { %v126_v31 = vmul.f32 %v2431_v27, %v121_v29 }
 0x117   :  { %v2440_v32 = vadd.f32 %v2436_v30, %v126_v31 }
 0x119   :  { %2024 = vmatmul.msk.f32.vlgmr.msra.gmra.mxu0 %vm71_vm0, %v2440_v32 }
 0x196   :  { %v164_v34 = vpop.f32.mrf.mxu0 }
 0x197   :  { %v2450_v35 = vadd.f32 %v2447_v33, %v164_v34 }
 0x199   :  { %214 = vrot.lane.b32.xlu0 %v2450_v35, %s2286_s25  ;;  %240 = vrot.lane.b32.xlu2 %v2450_v35, %s3007_s3 }
 0x19a   :  { %173 = vrot.lane.b32.xlu1 %v2450_v35, %s3003_s26 }
 0x1a2   :  { %242 = vrot.lane.b32.xlu1 %v2450_v35, %s3001_s27 }
 0x1f3   :  { %v241_v39 = vpop.permute.xlu2 %240 }
 0x20b   :  { %v215_v36 = vpop.permute.xlu0 %214 }
 0x20c   :  { %v174_v37 = vpop.permute.xlu1 %173  ;;  %235 = vmatpush.msra.mxu2 %v215_v36 }
 0x20d   :  { %2026 = vmatpush.xpose.msk.msra.mxu1 %vm175_vm5, %v174_v37 }
 0x210   :  { %2027 = vmatmul.msk.f32.vlgmr.msra.gmra.mxu1 %vm175_vm5, %v2450_v35 }
 0x214   :  { %v243_v38 = vpop.permute.xlu1 %242 }
 0x215   :  { %2029 = vmatpush.xpose.msk.msra.mxu3 %vm175_vm5, %v243_v38 }
 0x218   :  { %2030 = vmatmul.msk.f32.vlgmr.msra.gmra.mxu3 %vm175_vm5, %v241_v39 }
 0x28d   :  { %v197_v44 = vpop.f32.mrf.mxu1 }
 0x28e   :  { %v200_v45 = vmul.f32 0.35355338, %v197_v44 }
 0x290   :  { %v202_v46 = vadd.f32 %v2471_v43, %v200_v45 }
 0x292   :  { %v203_v47 = vsel %vm175_vm5, %v202_v46, -inf }
 0x293   :  { %204 = vmax.xlane.f32.xlu2 %v203_v47 }
 0x29b   :  { %v265_v48 = vpop.f32.mrf.mxu3 }
 0x29c   :  { %v268_v49 = vmul.f32 0.35355338, %v265_v48 }
 0x29e   :  { %v269_v50 = vadd.f32 %v268_v49, %v2471_v43 }
 0x2a0   :  { %v270_v51 = vsel %vm175_vm5, %v269_v50, -inf }
 0x2a1   :  { %271 = vmax.xlane.f32.xlu0 %v270_v51 }
 0x2ab   :  { %281 = vrot.lane.b32.xlu2 %v2450_v35, %s3005_s30 }
 0x2b3   :  { %374 = vrot.lane.b32.xlu2 %v2450_v35, %s2993_s0 }
 0x2b5   :  { %309 = vrot.lane.b32.xlu0 %v2450_v35, %s2999_s21 }
 0x306   :  { %v205_v52 = vpop.xlane.xlu2 %204 }
 0x307   :  { %v206_v53 = vsub.f32 %v202_v46, %v205_v52 }
 0x309   :  { %v207_v54 = vmul.f32 1.442695, %v206_v53 }
 0x30b   :  { %2162 = vpow2.f32 %v207_v54 }
 0x30e   :  { %v282_v55 = vpop.permute.xlu2 %281 }
 0x30f   :  { %302 = vmatpush.msrb.mxu2 %v282_v55 }
 0x311   :  { %v2163_v56 = vpop.eup %2162 }
 0x312   :  { %v209_v57 = vsel %vm175_vm5, %v2163_v56, 0.0 }
 0x313   :  { %210 = vadd.xlane.f32.xlu1 %v209_v57 }
 0x314   :  { %v272_v58 = vpop.xlane.xlu0 %271 }
 0x315   :  { %v273_v59 = vsub.f32 %v269_v50, %v272_v58 }
 0x316   :  { %v375_v11 = vpop.permute.xlu2 %374 }
 0x317   :  { %v274_v60 = vmul.f32 1.442695, %v273_v59 }
 0x319   :  { %2164 = vpow2.f32 %v274_v60 }
 0x31f   :  { %v2165_v61 = vpop.eup %2164 }
 0x320   :  { %v276_v62 = vsel %vm175_vm5, %v2165_v61, 0.0 }
 0x321   :  { %277 = vadd.xlane.f32.xlu0 %v276_v62 }
 0x327   :  { %v310_v2 = vpop.permute.xlu0 %309 }
 0x32c   :  { %307 = vrot.lane.b32.xlu1 %v2450_v35, %s2995_s1 }
 0x335   :  { %376 = vrot.lane.b32.xlu0 %v2450_v35, %s2997_s22 }
 0x35f   :  { %76 = vadd.xlane.f32.xlu0 %v75_v0 }
 0x373   :  { %415 = vrot.lane.b32.xlu0 %v2450_v35, %s2295_s28 }
 0x386   :  { %v211_v1 = vpop.xlane.xlu1 %210 }
 0x387   :  { %2166 = vrcp.f32 %v211_v1 }
 0x38d   :  { %v2167_v3 = vpop.eup %2166 }
 0x38e   :  { %v213_v4 = vmul.f32 %v2167_v3, %v2163_v56 }
 0x390   :  { %2028 = vmatmul.msk.f32.vlgmr.msra.gmra.mxu2 %vm175_vm5, %v213_v4 }
 0x391   :  { %2032 = vmatpush.xpose.msk.msra.mxu2 %vm175_vm5, %v310_v2 }
 0x394   :  { %v278_v5 = vpop.xlane.xlu0 %277 }
 0x395   :  { %2168 = vrcp.f32 %v278_v5 }
 0x39b   :  { %v2169_v6 = vpop.eup %2168 }
 0x39c   :  { %v280_v7 = vmul.f32 %v2169_v6, %v2165_v61 }
 0x39e   :  { %2031 = vmatmul.msk.f32.vlgmr.msrb.gmra.mxu2 %vm175_vm5, %v280_v7  ;;  %v308_v9 = vpop.permute.xlu1 %307 }
 0x3a6   :  { %2033 = vmatmul.msk.f32.vlgmr.msra.gmra.mxu2 %vm175_vm5, %v308_v9 }
 0x3a7   :  { %v377_v10 = vpop.permute.xlu0 %376 }
 0x3a8   :  { %2035 = vmatpush.xpose.msk.msrb.mxu2 %vm175_vm5, %v377_v10  ;;  %v2551_v10 = vperm.slane %v2468_v42, 1 }
 0x3ae   :  { %2036 = vmatmul.msk.f32.vlgmr.msrb.gmra.mxu2 %vm175_vm5, %v375_v11 }
 0x3d2   :  { %v77_v12 = vpop.xlane.xlu0 %76 }
 0x3d3   :  { %v86_v13 = vmul.f32 %v2411_v8, %v77_v12 }
 0x3d5   :  { %v88_v14 = vsub.f32 %v68_v63, %v86_v13 }
 0x3d7   :  { %v90_v15 = vmul.f32 %v88_v14, %v88_v14 }
 0x3d9   :  { %v94_v16 = vsel %vm71_vm0, %v90_v15, 0.0 }
 0x3da   :  { %95 = vadd.xlane.f32.xlu2 %v94_v16 }
 0x3e5   :  { %v416_v17 = vpop.permute.xlu0 %415 }
 0x3e6   :  { %436 = vmatpush.msrb.mxu1 %v416_v17 }
 0x413   :  { %v2503_v18 = vpop.f32.mrf.mxu2 }
 0x421   :  { %v304_v19 = vpop.f32.mrf.mxu2 }
 0x429   :  { %v332_v20 = vpop.f32.mrf.mxu2 }
 0x42a   :  { %v335_v21 = vmul.f32 0.35355338, %v332_v20 }
 0x42c   :  { %v336_v22 = vadd.f32 %v335_v21, %v2471_v43 }
 0x42e   :  { %v337_v23 = vsel %vm175_vm5, %v336_v22, -inf }
 0x42f   :  { %338 = vmax.xlane.f32.xlu1 %v337_v23 }
 0x448   :  { %348 = vrot.lane.b32.xlu1 %v2450_v35, %s2296_s23 }
 0x44d   :  { %v96_v24 = vpop.xlane.xlu2 %95 }
 0x44e   :  { %v98_v25 = vmul.f32 %v96_v24, %v2411_v8 }
 0x450   :  { %v100_v26 = vadd.f32 1e-12, %v98_v25 }
 0x452   :  { %2170 = vrsqrt.f32 %v100_v26  ;;  %vm117_vm7 = vweird.f32 %v100_v26 }
 0x458   :  { %v2171_v28 = vpop.eup %2170 }
 0x459   :  { %v112_v29 = vmul.f32 %v2171_v28, %v100_v26  ;;  %vm118_vm6 = vweird.f32 %v2171_v28 }
 0x45a   :  { %vm119_vm8 = vmor %vm117_vm7, %vm118_vm6 }
 0x45b   :  { %v113_v31 = vmul.f32 %v2171_v28, %v112_v29 }
 0x45d   :  { %v114_v34 = vmul.f32 0.5, %v113_v31 }
 0x45f   :  { %v115_v36 = vsub.f32 1.5, %v114_v34  ;;  %v744_v34 = vld [vmem:[%s2977_s7 + $0x18] sm:$0xff] }
 0x461   :  { %v116_v37 = vmul.f32 %v2171_v28, %v115_v36  ;;  %v743_v36 = vld [vmem:[%s2977_s7 + $0x10] sm:$0xff] }
 0x463   :  { %v120_v38 = vsel %vm119_vm8, %v2171_v28, %v116_v37  ;;  %v742_v37 = vld [vmem:[%s2977_s7 + $0x8] sm:$0xff] }
 0x464   :  { %v122_v39 = vmul.f32 %v120_v38, %v88_v14 }
 0x466   :  { %v127_v40 = vmul.f32 %v2431_v27, %v122_v39  ;;  %v399_v27 = vpop.f32.mrf.mxu2 }
 0x468   :  { %v2512_v35 = vadd.f32 %v2436_v30, %v127_v40  ;;  %v402_v30 = vmul.f32 0.35355338, %v399_v27  ;;  %v741_v40 = vld [vmem:[%s2977_s7] sm:$0xff] }
 0x46a   :  { %2025 = vmatmul.msk.f32.gmra.mxu0 %vm71_vm0, %v2512_v35  ;;  %v403_v47 = vadd.f32 %v402_v30, %v2471_v43 }
 0x46c   :  { %v404_v48 = vsel %vm175_vm5, %v403_v47, -inf }
 0x4a2   :  { %v339_v41 = vpop.xlane.xlu1 %338 }
 0x4ba   :  { %v349_v44 = vpop.permute.xlu1 %348 }
 0x4bb   :  { %369 = vmatpush.msrb.mxu3 %v349_v44 }
 0x4e7   :  { %v167_v45 = vpop.f32.mrf.mxu0 }
 0x4e8   :  { %v2517_v46 = vadd.f32 %v2447_v33, %v167_v45  ;;  %v340_v33 = vsub.f32 %v336_v22, %v339_v41 }
 0x4ea   :  { %525 = vrot.lane.b32.xlu1 %v2517_v46, %s3007_s3  ;;  %527 = vrot.lane.b32.xlu0 %v2517_v46, %s3001_s27  ;;  %v341_v49 = vmul.f32 1.442695, %v340_v33  ;;  %s3023_s27 = smov 96  }
 0x4eb   :  { %459 = vrot.lane.b32.xlu2 %v2517_v46, %s3003_s26  ;;  %s3022_s26 = smov 120  }
 0x4ec   :  { %2172 = vpow2.f32 %v341_v49 }
 0x4f2   :  { %592 = vrot.lane.b32.xlu1 %v2517_v46, %s2995_s1  ;;  %v2173_v51 = vpop.eup %2172 }
 0x4f3   :  { %v343_v52 = vsel %vm175_vm5, %v2173_v51, 0.0 }
 0x514   :  { %405 = vmax.xlane.f32.xlu0 %v404_v48 }
 0x528   :  { %594 = vrot.lane.b32.xlu0 %v2517_v46, %s2999_s21  ;;  %s3027_s21 = smov 112  }
 0x545   :  { %v460_v50 = vpop.permute.xlu2 %459 }
 0x546   :  { %2038 = vmatpush.xpose.msk.msra.mxu3 %vm175_vm5, %v460_v50 }
 0x552   :  { %344 = vadd.xlane.f32.xlu0 %v343_v52 }
 0x55c   :  { %v528_v53 = vpop.permute.xlu0 %527  ;;  %v526_v54 = vpop.permute.xlu1 %525 }
 0x55d   :  { %2041 = vmatpush.xpose.msk.msra.mxu2 %vm175_vm5, %v528_v53 }
 0x560   :  { %2042 = vmatmul.msk.f32.vlgmr.msra.gmra.mxu2 %vm175_vm5, %v526_v54 }
 0x564   :  { %v593_v0 = vpop.permute.xlu1 %592 }
 0x566   :  { %659 = vrot.lane.b32.xlu0 %v2517_v46, %s2993_s0  ;;  %s3026_s0 = smov 72  }
 0x587   :  { %v406_v55 = vpop.xlane.xlu0 %405 }
 0x588   :  { %v407_v56 = vsub.f32 %v403_v47, %v406_v55 }
 0x58a   :  { %v408_v57 = vmul.f32 1.442695, %v407_v56 }
 0x58c   :  { %2174 = vpow2.f32 %v408_v57 }
 0x592   :  { %v2175_v58 = vpop.eup %2174 }
 0x593   :  { %v410_v59 = vsel %vm175_vm5, %v2175_v58, 0.0 }
 0x594   :  { %411 = vadd.xlane.f32.xlu2 %v410_v59 }
 0x59a   :  { %v595_v60 = vpop.permute.xlu0 %594 }
 0x5ac   :  { %661 = vrot.lane.b32.xlu2 %v2517_v46, %s2997_s22 }
 0x5b4   :  { %442 = vrot.lane.b32.xlu2 %v304_v19, %s2297_s4 }
 0x5c5   :  { %v345_v61 = vpop.xlane.xlu0 %344 }
 0x5c6   :  { %2176 = vrcp.f32 %v345_v61 }
 0x5cc   :  { %v2177_v62 = vpop.eup %2176 }
 0x5cd   :  { %v347_v63 = vmul.f32 %v2177_v62, %v2173_v51 }
 0x5cf   :  { %2034 = vmatmul.msk.f32.vlgmr.msrb.gmra.mxu3 %vm175_vm5, %v347_v63 }
 0x5d0   :  { %2044 = vmatpush.xpose.msk.msrb.mxu3 %vm175_vm5, %v595_v60 }
 0x5d7   :  { %2039 = vmatmul.msk.f32.vlgmr.msra.gmra.mxu3 %vm175_vm5, %v2517_v46 }
 0x5d8   :  { %v660_v5 = vpop.permute.xlu0 %659  ;;  %767 = vmatpush.msra.mxu3 %v744_v34 }
 0x5da   :  { %768 = vmatpush.msra.mxu3 %v743_v36 }
 0x5dc   :  { %769 = vmatpush.msra.mxu3 %v742_v37 }
 0x5de   :  { %770 = vmatpush.msra.mxu3 %v741_v40 }
 0x5df   :  { %2045 = vmatmul.msk.f32.vlgmr.msrb.gmra.mxu3 %vm175_vm5, %v593_v0 }
 0x5e3   :  { %v550_v13 = vpop.f32.mrf.mxu2 }
 0x5e4   :  { %v553_v14 = vmul.f32 0.35355338, %v550_v13 }
 0x5e6   :  { %v554_v15 = vadd.f32 %v553_v14, %v2551_v10 }
 0x5e8   :  { %v555_v16 = vsel %vm175_vm5, %v554_v15, -inf }
 0x607   :  { %v412_v1 = vpop.xlane.xlu2 %411 }
 0x608   :  { %2178 = vrcp.f32 %v412_v1 }
 0x60e   :  { %v2179_v2 = vpop.eup %2178 }
 0x60f   :  { %v662_v3 = vpop.permute.xlu2 %661  ;;  %v414_v4 = vmul.f32 %v2179_v2, %v2175_v58 }
 0x610   :  { %2047 = vmatpush.xpose.msk.msrb.mxu2 %vm175_vm5, %v662_v3 }
 0x611   :  { %2037 = vmatmul.msk.f32.vlgmr.msrb.gmra.mxu1 %vm175_vm5, %v414_v4  ;;  %v2596_v4 = vld [vmem:[%s2978_s8] ss:$0 sm:$0xff] }
 0x613   :  { %2048 = vmatmul.msk.f32.vlgmr.msrb.gmra.mxu2 %vm175_vm5, %v660_v5 }
 0x617   :  { %v443_v26 = vpop.permute.xlu2 %442 }
 0x618   :  { %v453_v48 = vsel %vm175_vm5, %v2503_v18, %v443_v26  ;;  %v839_v26 = vld [vmem:[%s2981_s11 + $0x18] sm:$0xff] }
 0x652   :  { %v371_v6 = vpop.f32.mrf.mxu3 }
 0x653   :  { %446 = vrot.lane.b32.xlu1 %v371_v6, %s3009_s24 }
 0x65a   :  { %v482_v7 = vpop.f32.mrf.mxu3 }
 0x65b   :  { %v485_v9 = vmul.f32 0.35355338, %v482_v7 }
 0x65d   :  { %v487_v11 = vadd.f32 %v2551_v10, %v485_v9 }
 0x65f   :  { %v488_v12 = vsel %vm175_vm5, %v487_v11, -inf }
 0x660   :  { %489 = vmax.xlane.f32.xlu2 %v488_v12 }
 0x662   :  { %v617_v22 = vpop.f32.mrf.mxu3 }
 0x663   :  { %v620_v23 = vmul.f32 0.35355338, %v617_v22 }
 0x665   :  { %v621_v24 = vadd.f32 %v620_v23, %v2551_v10 }
 0x667   :  { %v622_v25 = vsel %vm175_vm5, %v621_v24, -inf }
 0x67d   :  { %556 = vmax.xlane.f32.xlu1 %v555_v16 }
 0x68e   :  { %v438_v17 = vpop.f32.mrf.mxu1 }
 0x68f   :  { %450 = vrot.lane.b32.xlu0 %v438_v17, %s3011_s2 }
 0x696   :  { %v684_v19 = vpop.f32.mrf.mxu2 }
 0x697   :  { %v687_v20 = vmul.f32 0.35355338, %v684_v19 }
 0x699   :  { %v688_v42 = vadd.f32 %v687_v20, %v2551_v10 }
 0x69b   :  { %v689_v21 = vsel %vm175_vm5, %v688_v42, -inf }
 0x69c   :  { %690 = vmax.xlane.f32.xlu2 %v689_v21 }
 0x6b9   :  { %623 = vmax.xlane.f32.xlu0 %v622_v25 }
 0x6c5   :  { %v447_v41 = vpop.permute.xlu1 %446 }
 0x6c6   :  { %v455_v33 = vsel %vm454_vm9, %v453_v48, %v447_v41 }
 0x6cd   :  { %566 = vrot.lane.b32.xlu0 %v2517_v46, %s3005_s30  ;;  %s3024_s30 = smov 88  }
 0x6d3   :  { %v490_v28 = vpop.xlane.xlu2 %489 }
 0x6d4   :  { %v491_v29 = vsub.f32 %v487_v11, %v490_v28  ;;  %v838_v28 = vld [vmem:[%s2981_s11 + $0x10] sm:$0xff] }
 0x6d6   :  { %v492_v31 = vmul.f32 1.442695, %v491_v29  ;;  %v837_v29 = vld [vmem:[%s2981_s11 + $0x8] sm:$0xff] }
 0x6d8   :  { %2180 = vpow2.f32 %v492_v31  ;;  %v836_v31 = vld [vmem:[%s2981_s11] sm:$0xff] }
 0x6de   :  { %v2181_v38 = vpop.eup %2180 }
 0x6df   :  { %v494_v39 = vsel %vm175_vm5, %v2181_v38, 0.0 }
 0x6e0   :  { %495 = vadd.xlane.f32.xlu1 %v494_v39 }
 0x6f0   :  { %v557_v44 = vpop.xlane.xlu1 %556 }
 0x6f1   :  { %v558_v45 = vsub.f32 %v554_v15, %v557_v44 }
 0x6f3   :  { %v559_v27 = vmul.f32 1.442695, %v558_v45 }
 0x6f5   :  { %2182 = vpow2.f32 %v559_v27 }
 0x6f9   :  { %499 = vrot.lane.b32.xlu1 %v2517_v46, %s2286_s25 }
 0x6fb   :  { %v2183_v30 = vpop.eup %2182 }
 0x6fc   :  { %v561_v47 = vsel %vm175_vm5, %v2183_v30, 0.0 }
 0x6fd   :  { %562 = vadd.xlane.f32.xlu2 %v561_v47 }
 0x701   :  { %v451_v49 = vpop.permute.xlu0 %450 }
 0x702   :  { %v457_v50 = vsel %vm456_vm10, %v455_v33, %v451_v49  ;;  %v2629_v49 = vld [vmem:[%s2980_s10] ss:$0 sm:$0xff] }
 0x703   :  { %2050 = vmatmul.msk.f32.vlgmr.msra.gmra.mxu3 %vm71_vm0, %v457_v50 }
 0x70f   :  { %v691_v51 = vpop.xlane.xlu2 %690 }
 0x710   :  { %v692_v52 = vsub.f32 %v688_v42, %v691_v51 }
 0x712   :  { %v693_v53 = vmul.f32 1.442695, %v692_v52 }
 0x714   :  { %2184 = vpow2.f32 %v693_v53 }
 0x71a   :  { %v2185_v54 = vpop.eup %2184 }
 0x71b   :  { %v695_v55 = vsel %vm175_vm5, %v2185_v54, 0.0 }
 0x71c   :  { %696 = vadd.xlane.f32.xlu2 %v695_v55 }
 0x72c   :  { %v624_v56 = vpop.xlane.xlu0 %623 }
 0x72d   :  { %v625_v57 = vsub.f32 %v621_v24, %v624_v56  ;;  %v898_v56 = vld [vmem:[%s2983_s13 + $0x38] sm:$0xff] }
 0x72e   :  { %918 = vmatpush.msra.mxu2 %v898_v56 }
 0x72f   :  { %v626_v58 = vmul.f32 1.442695, %v625_v57  ;;  %v897_v57 = vld [vmem:[%s2983_s13 + $0x30] sm:$0xff] }
 0x730   :  { %919 = vmatpush.msra.mxu2 %v897_v57 }
 0x731   :  { %2186 = vpow2.f32 %v626_v58  ;;  %v896_v58 = vld [vmem:[%s2983_s13 + $0x28] sm:$0xff] }
 0x732   :  { %920 = vmatpush.msra.mxu2 %v896_v58 }
 0x734   :  { %633 = vrot.lane.b32.xlu2 %v2517_v46, %s2296_s23 }
 0x737   :  { %v2187_v18 = vpop.eup %2186 }
 0x738   :  { %v628_v59 = vsel %vm175_vm5, %v2187_v18, 0.0 }
 0x739   :  { %629 = vadd.xlane.f32.xlu0 %v628_v59  ;;  %v894_v59 = vld [vmem:[%s2983_s13 + $0x18] sm:$0xff] }
 0x73f   :  { %v567_v60 = vpop.permute.xlu0 %566 }
 0x740   :  { %587 = vmatpush.msra.mxu1 %v567_v60  ;;  %v893_v60 = vld [vmem:[%s2983_s13 + $0x10] sm:$0xff] }
 0x74d   :  { %700 = vrot.lane.b32.xlu0 %v2517_v46, %s2295_s28 }
 0x753   :  { %v496_v61 = vpop.xlane.xlu1 %495 }
 0x754   :  { %2188 = vrcp.f32 %v496_v61  ;;  %v892_v61 = vld [vmem:[%s2983_s13 + $0x8] sm:$0xff] }
 0x75a   :  { %v2189_v62 = vpop.eup %2188 }
 0x75b   :  { %v498_v0 = vmul.f32 %v2189_v62, %v2181_v38  ;;  %v891_v62 = vld [vmem:[%s2983_s13] sm:$0xff] }
 0x76b   :  { %v500_v63 = vpop.permute.xlu1 %499 }
 0x76c   :  { %520 = vmatpush.msrb.mxu0 %v500_v63  ;;  %v2665_v63 = vld [vmem:[%s2982_s12] ss:$0 sm:$0xff] }
 0x76d   :  { %2040 = vmatmul.msk.f32.vlgmr.msrb.gmra.mxu0 %vm175_vm5, %v498_v0 }
 0x770   :  { %v563_v1 = vpop.xlane.xlu2 %562 }
 0x771   :  { %2190 = vrcp.f32 %v563_v1 }
 0x777   :  { %v2191_v2 = vpop.eup %2190 }
 0x778   :  { %v565_v3 = vmul.f32 %v2191_v2, %v2183_v30  ;;  %v2624_v30 = vld [vmem:[%s2979_s9] ss:$0 sm:$0xff] }
 0x77a   :  { %2043 = vmatmul.msk.f32.vlgmr.msra.gmra.mxu1 %vm175_vm5, %v565_v3 }
 0x786   :  { %v772_v46 = vpop.f32.mrf.mxu3 }
 0x787   :  { %v773_v5 = vadd.f32 %v2596_v4, %v772_v46 }
 0x789   :  { %v778_v6 = vadd.f32 %v773_v5, %v2440_v32 }
 0x78b   :  { %v782_v7 = vsel %vm71_vm0, %v778_v6, 0.0 }
 0x78c   :  { %783 = vadd.xlane.f32.xlu1 %v782_v7 }
 0x78f   :  { %v697_v9 = vpop.xlane.xlu2 %696 }
 0x797   :  { %v634_v11 = vpop.permute.xlu2 %633 }
 0x798   :  { %654 = vmatpush.msra.mxu0 %v634_v11 }
 0x79a   :  { %862 = vmatpush.msrb.mxu0 %v839_v26 }
 0x79c   :  { %863 = vmatpush.msrb.mxu0 %v838_v28 }
 0x79e   :  { %864 = vmatpush.msrb.mxu0 %v837_v29 }
 0x7a0   :  { %865 = vmatpush.msrb.mxu0 %v836_v31 }
 0x7ac   :  { %v630_v12 = vpop.xlane.xlu0 %629 }
 0x7ad   :  { %2192 = vrcp.f32 %v630_v12 }
 0x7ae   :  { %2194 = vrcp.f32 %v697_v9 }
 0x7b3   :  { %v2193_v13 = vpop.eup %2192 }
 0x7b4   :  { %v632_v14 = vmul.f32 %v2193_v13, %v2187_v18  ;;  %v2195_v15 = vpop.eup %2194  ;;  %v895_v18 = vld [vmem:[%s2983_s13 + $0x20] sm:$0xff] }
 0x7b5   :  { %v699_v16 = vmul.f32 %v2195_v15, %v2185_v54  ;;  %921 = vmatpush.msra.mxu2 %v895_v18 }
 0x7b6   :  { %2046 = vmatmul.msk.f32.vlgmr.msra.gmra.mxu0 %vm175_vm5, %v632_v14 }
 0x7b7   :  { %922 = vmatpush.msra.mxu2 %v894_v59 }
 0x7b9   :  { %923 = vmatpush.msra.mxu2 %v893_v60 }
 0x7bb   :  { %924 = vmatpush.msra.mxu2 %v892_v61 }
 0x7bd   :  { %925 = vmatpush.msra.mxu2 %v891_v62 }
 0x7bf   :  { %v701_v17 = vpop.permute.xlu0 %700 }
 0x7c0   :  { %721 = vmatpush.msrb.mxu1 %v701_v17 }
 0x7c1   :  { %2049 = vmatmul.msk.f32.vlgmr.msrb.gmra.mxu1 %vm175_vm5, %v699_v16 }
 0x7ea   :  { %v522_v23 = vpop.f32.mrf.mxu0 }
 0x7f7   :  { %v589_v32 = vpop.f32.mrf.mxu1 }
 0x7f8   :  { %727 = vrot.lane.b32.xlu2 %v589_v32, %s2297_s4 }
 0x7ff   :  { %v784_v19 = vpop.xlane.xlu1 %783 }
 0x800   :  { %v788_v20 = vmul.f32 %v784_v19, %v2411_v8 }
 0x802   :  { %v790_v42 = vsub.f32 %v778_v6, %v788_v20 }
 0x804   :  { %v792_v21 = vmul.f32 %v790_v42, %v790_v42 }
 0x806   :  { %v794_v22 = vsel %vm71_vm0, %v792_v21, 0.0 }
 0x807   :  { %795 = vadd.xlane.f32.xlu0 %v794_v22 }
 0x833   :  { %v656_v24 = vpop.f32.mrf.mxu0 }
 0x834   :  { %731 = vrot.lane.b32.xlu2 %v656_v24, %s3009_s24  ;;  %s3029_s24 = smov 56  }
 0x83e   :  { %v723_v25 = vpop.f32.mrf.mxu1 }
 0x83f   :  { %735 = vrot.lane.b32.xlu2 %v723_v25, %s3011_s2 }
 0x852   :  { %v728_v41 = vpop.permute.xlu2 %727 }
 0x853   :  { %v738_v52 = vsel %vm175_vm5, %v522_v23, %v728_v41 }
 0x87a   :  { %v796_v34 = vpop.xlane.xlu0 %795 }
 0x87b   :  { %v800_v36 = vmul.f32 %v796_v34, %v2411_v8 }
 0x87d   :  { %v802_v37 = vadd.f32 1e-12, %v800_v36 }
 0x87f   :  { %2196 = vrsqrt.f32 %v802_v37  ;;  %vm810_vm12 = vweird.f32 %v802_v37 }
 0x885   :  { %v2197_v38 = vpop.eup %2196 }
 0x886   :  { %v805_v39 = vmul.f32 %v2197_v38, %v802_v37  ;;  %vm811_vm11 = vweird.f32 %v2197_v38 }
 0x887   :  { %vm812_vm13 = vmor %vm810_vm12, %vm811_vm11 }
 0x888   :  { %v806_v40 = vmul.f32 %v2197_v38, %v805_v39 }
 0x88a   :  { %v807_v44 = vmul.f32 0.5, %v806_v40 }
 0x88c   :  { %v808_v45 = vsub.f32 1.5, %v807_v44 }
 0x88e   :  { %v809_v27 = vmul.f32 %v2197_v38, %v808_v45  ;;  %v732_v33 = vpop.permute.xlu2 %731 }
 0x88f   :  { %v739_v53 = vsel %vm454_vm9, %v738_v52, %v732_v33  ;;  %v2059_v33 = vld [vmem:[%s2975_s5 + $0x38] sm:$0xff] }
 0x890   :  { %v813_v47 = vsel %vm812_vm13, %v2197_v38, %v809_v27  ;;  %1019 = vmatpush.msra.mxu1 %v2059_v33 }
 0x891   :  { %v824_v48 = vmul.f32 %v813_v47, %v790_v42 }
 0x893   :  { %v829_v50 = vmul.f32 %v2624_v30, %v824_v48 }
 0x895   :  { %v834_v51 = vadd.f32 %v2629_v49, %v829_v50  ;;  %v2058_v50 = vld [vmem:[%s2975_s5 + $0x30] sm:$0xff] }
 0x896   :  { %1020 = vmatpush.msra.mxu1 %v2058_v50 }
 0x897   :  { %2052 = vmatmul.msk.f32.vlgmr.msrb.gmra.mxu0 %vm71_vm0, %v834_v51 }
 0x899   :  { %v736_v54 = vpop.permute.xlu2 %735 }
 0x89a   :  { %v740_v55 = vsel %vm456_vm10, %v739_v53, %v736_v54 }
 0x89b   :  { %2051 = vmatmul.msk.f32.gmra.mxu3 %vm71_vm0, %v740_v55 }
 0x914   :  { %v867_v0 = vpop.f32.mrf.mxu0 }
 0x915   :  { %v868_v1 = vadd.f32 %v2665_v63, %v867_v0 }
 0x917   :  { %v873_v2 = vmul.f32 %v868_v1, %v868_v1 }
 0x919   :  { %v875_v3 = vmul.f32 %v873_v2, %v868_v1 }
 0x91b   :  { %v877_v46 = vmul.f32 0.044715, %v875_v3  ;;  %v2146_v3 = vld [vmem:[%s2985_s15] ss:$0 sm:$0xff] }
 0x91d   :  { %v879_v5 = vadd.f32 %v877_v46, %v868_v1 }
 0x91e   :  { %v775_v6 = vpop.f32.mrf.mxu3 }
 0x91f   :  { %v881_v7 = vmul.f32 0.7978846, %v879_v5  ;;  %v776_v9 = vadd.f32 %v2596_v4, %v775_v6  ;;  %v2147_v5 = vld [vmem:[%s2986_s16] ss:$0 sm:$0xff] }
 0x921   :  { %2198 = vtanh.f32 %v881_v7  ;;  %v779_v11 = vadd.f32 %v776_v9, %v2512_v35  ;;  %v2677_v35 = vld [vmem:[%s2984_s14] ss:$0 sm:$0xff] }
 0x923   :  { %v785_v12 = vsel %vm71_vm0, %v779_v11, 0.0 }
 0x924   :  { %786 = vadd.xlane.f32.xlu2 %v785_v12 }
 0x927   :  { %v2199_v13 = vpop.eup %2198 }
 0x928   :  { %v885_v14 = vadd.f32 1.0, %v2199_v13 }
 0x92a   :  { %v887_v15 = vmul.f32 0.5, %v885_v14  ;;  %v2715_v14 = vld [vmem:[%s2976_s6 + $0x1] ss:$0 sm:$0xff]  ;;  %s3025_s6 = smov 80  }
 0x92c   :  { %v889_v16 = vmul.f32 %v887_v15, %v868_v1 }
 0x92e   :  { %2054 = vmatmul.msk.f32.vlgmr.msra.gmra.mxu2 %vm903_vm14, %v889_v16 }
 0x997   :  { %v787_v17 = vpop.xlane.xlu2 %786 }
 0x998   :  { %v789_v32 = vmul.f32 %v787_v17, %v2411_v8 }
 0x99a   :  { %v791_v19 = vsub.f32 %v779_v11, %v789_v32 }
 0x99c   :  { %v793_v20 = vmul.f32 %v791_v19, %v791_v19 }
 0x99e   :  { %v797_v4 = vsel %vm71_vm0, %v793_v20, 0.0 }
 0x99f   :  { %798 = vadd.xlane.f32.xlu1 %v797_v4 }
 0x9b1   :  { %v927_v42 = vpop.f32.mrf.mxu2 }
 0x9b2   :  { %v928_v21 = vadd.f32 %v2677_v35, %v927_v42 }
 0x9b4   :  { %v933_v22 = vadd.f32 %v928_v21, %v834_v51 }
 0x9b6   :  { %v937_v23 = vsel %vm71_vm0, %v933_v22, 0.0 }
 0x9b7   :  { %938 = vadd.xlane.f32.xlu0 %v937_v23 }
 0xa12   :  { %v799_v24 = vpop.xlane.xlu1 %798 }
 0xa13   :  { %v801_v25 = vmul.f32 %v799_v24, %v2411_v8 }
 0xa15   :  { %v803_v26 = vadd.f32 1e-12, %v801_v25 }
 0xa17   :  { %2200 = vrsqrt.f32 %v803_v26  ;;  %vm820_vm1 = vweird.f32 %v803_v26 }
 0xa1d   :  { %v2201_v28 = vpop.eup %2200 }
 0xa1e   :  { %v815_v29 = vmul.f32 %v2201_v28, %v803_v26  ;;  %vm821_vm15 = vweird.f32 %v2201_v28 }
 0xa1f   :  { %vm822_vm2 = vmor %vm820_vm1, %vm821_vm15 }
 0xa20   :  { %v816_v31 = vmul.f32 %v2201_v28, %v815_v29 }
 0xa22   :  { %v817_v34 = vmul.f32 0.5, %v816_v31 }
 0xa24   :  { %v818_v36 = vsub.f32 1.5, %v817_v34 }
 0xa26   :  { %v819_v37 = vmul.f32 %v2201_v28, %v818_v36 }
 0xa28   :  { %v823_v38 = vsel %vm822_vm2, %v2201_v28, %v819_v37 }
 0xa29   :  { %v825_v39 = vmul.f32 %v823_v38, %v791_v19 }
 0xa2a   :  { %v939_v40 = vpop.xlane.xlu0 %938 }
 0xa2b   :  { %v943_v41 = vmul.f32 %v939_v40, %v2411_v8  ;;  %v830_v44 = vmul.f32 %v2624_v30, %v825_v39  ;;  %v2057_v30 = vld [vmem:[%s2975_s5 + $0x28] sm:$0xff] }
 0xa2c   :  { %1021 = vmatpush.msra.mxu1 %v2057_v30 }
 0xa2d   :  { %v945_v45 = vsub.f32 %v933_v22, %v943_v41  ;;  %v835_v27 = vadd.f32 %v2629_v49, %v830_v44  ;;  %v2056_v49 = vld [vmem:[%s2975_s5 + $0x20] sm:$0xff]  ;;  %s3028_s5 = smov 104  }
 0xa2e   :  { %1022 = vmatpush.msra.mxu1 %v2056_v49 }
 0xa2f   :  { %2053 = vmatmul.msk.f32.gmra.mxu0 %vm71_vm0, %v835_v27  ;;  %v947_v47 = vmul.f32 %v945_v45, %v945_v45 }
 0xa31   :  { %v949_v48 = vsel %vm71_vm0, %v947_v47, 0.0 }
 0xa32   :  { %950 = vadd.xlane.f32.xlu1 %v949_v48 }
 0xaa5   :  { %v951_v51 = vpop.xlane.xlu1 %950 }
 0xaa6   :  { %v955_v52 = vmul.f32 %v951_v51, %v2411_v8 }
 0xaa8   :  { %v957_v53 = vadd.f32 1e-12, %v955_v52 }
 0xaaa   :  { %2202 = vrsqrt.f32 %v957_v53  ;;  %vm965_vm4 = vweird.f32 %v957_v53 }
 0xaac   :  { %v870_v54 = vpop.f32.mrf.mxu0 }
 0xaad   :  { %v871_v55 = vadd.f32 %v2665_v63, %v870_v54 }
 0xaaf   :  { %v874_v56 = vmul.f32 %v871_v55, %v871_v55 }
 0xab0   :  { %v2203_v57 = vpop.eup %2202 }
 0xab1   :  { %v960_v58 = vmul.f32 %v2203_v57, %v957_v53  ;;  %v876_v18 = vmul.f32 %v874_v56, %v871_v55  ;;  %vm966_vm3 = vweird.f32 %v2203_v57 }
 0xab2   :  { %vm967_vm6 = vmor %vm965_vm4, %vm966_vm3  ;;  %vm1919_vm4 = vcmask 58369  }
 0xab3   :  { %v961_v59 = vmul.f32 %v2203_v57, %v960_v58  ;;  %v878_v60 = vmul.f32 0.044715, %v876_v18 }
 0xab5   :  { %v962_v61 = vmul.f32 0.5, %v961_v59  ;;  %v880_v62 = vadd.f32 %v878_v60, %v871_v55 }
 0xab7   :  { %v963_v0 = vsub.f32 1.5, %v962_v61  ;;  %v882_v1 = vmul.f32 0.7978846, %v880_v62 }
 0xab9   :  { %v964_v2 = vmul.f32 %v2203_v57, %v963_v0  ;;  %2204 = vtanh.f32 %v882_v1 }
 0xabb   :  { %v968_v63 = vsel %vm967_vm6, %v2203_v57, %v964_v2  ;;  %vm1876_vm6 = vcmask 57344  }
 0xabc   :  { %v979_v46 = vmul.f32 %v968_v63, %v945_v45 }
 0xabe   :  { %v984_v6 = vmul.f32 %v2146_v3, %v979_v46 }
 0xabf   :  { %v2205_v7 = vpop.eup %2204 }
 0xac0   :  { %v2707_v9 = vadd.f32 %v2147_v5, %v984_v6  ;;  %v886_v11 = vadd.f32 1.0, %v2205_v7 }
 0xac2   :  { %2061 = vmatmul.msk.f32.vlgmr.msra.gmra.mxu1 %vm71_vm0, %v2707_v9  ;;  %v888_v12 = vmul.f32 0.5, %v886_v11 }
 0xac4   :  { %v890_v13 = vmul.f32 %v888_v12, %v871_v55 }
 0xac6   :  { %2055 = vmatmul.msk.f32.gmra.mxu2 %vm903_vm14, %v890_v13 }
 0xb3f   :  { %v1024_v15 = vpop.f32.mrf.mxu1 }
 0xb40   :  { %v2718_v16 = vadd.f32 %v2715_v14, %v1024_v15 }
 0xb42   :  { %1096 = vrot.lane.b32.xlu2 %v2718_v16, %s3022_s26  ;;  %1031 = vrot.lane.b32.xlu0 %v2718_v16, %s3023_s27 }
 0xb49   :  { %v930_v17 = vpop.f32.mrf.mxu2 }
 0xb4a   :  { %v931_v32 = vadd.f32 %v2677_v35, %v930_v17  ;;  %1098 = vrot.lane.b32.xlu0 %v2718_v16, %s3024_s30 }
 0xb4c   :  { %v934_v19 = vadd.f32 %v931_v32, %v835_v27 }
 0xb4e   :  { %v940_v20 = vsel %vm71_vm0, %v934_v19, 0.0 }
 0xb4f   :  { %941 = vadd.xlane.f32.xlu1 %v940_v20 }
 0xb52   :  { %1165 = vrot.lane.b32.xlu0 %v2718_v16, %s3025_s6 }
 0xb5a   :  { %1232 = vrot.lane.b32.xlu0 %v2718_v16, %s3026_s0 }
 0xb62   :  { %1163 = vrot.lane.b32.xlu0 %v2718_v16, %s3027_s21 }
 0xb9c   :  { %v1097_v30 = vpop.permute.xlu2 %1096 }
 0xbb4   :  { %v1032_v4 = vpop.permute.xlu0 %1031 }
 0xbb5   :  { %2063 = vmatpush.xpose.msk.msrb.mxu3 %vm175_vm5, %v1032_v4 }
 0xbb8   :  { %2064 = vmatmul.msk.f32.vlgmr.msrb.gmra.mxu3 %vm175_vm5, %v2718_v16 }
 0xbbc   :  { %v1099_v35 = vpop.permute.xlu0 %1098 }
 0xbbd   :  { %2066 = vmatpush.xpose.msk.msrb.mxu1 %vm175_vm5, %v1099_v35 }
 0xbc2   :  { %v942_v42 = vpop.xlane.xlu1 %941 }
 0xbc3   :  { %v944_v21 = vmul.f32 %v942_v42, %v2411_v8 }
 0xbc4   :  { %v1166_v22 = vpop.permute.xlu0 %1165 }
 0xbc5   :  { %v946_v23 = vsub.f32 %v934_v19, %v944_v21 }
 0xbc7   :  { %v948_v24 = vmul.f32 %v946_v23, %v946_v23 }
 0xbc9   :  { %v952_v25 = vsel %vm71_vm0, %v948_v24, 0.0 }
 0xbca   :  { %953 = vadd.xlane.f32.xlu1 %v952_v25 }
 0xbcc   :  { %v1233_v26 = vpop.permute.xlu0 %1232 }
 0xbcd   :  { %2072 = vmatpush.xpose.msk.msra.mxu1 %vm175_vm5, %v1233_v26 }
 0xc3b   :  { %v1054_v28 = vpop.f32.mrf.mxu3 }
 0xc3c   :  { %v1057_v29 = vmul.f32 0.35355338, %v1054_v28 }
 0xc3d   :  { %v954_v31 = vpop.xlane.xlu1 %953 }
 0xc3e   :  { %v956_v34 = vmul.f32 %v954_v31, %v2411_v8  ;;  %v1058_v36 = vadd.f32 %v1057_v29, %v2471_v43 }
 0xc40   :  { %v958_v37 = vadd.f32 1e-12, %v956_v34  ;;  %v1059_v38 = vsel %vm175_vm5, %v1058_v36, -inf }
 0xc41   :  { %1060 = vmax.xlane.f32.xlu1 %v1059_v38 }
 0xc42   :  { %2206 = vrsqrt.f32 %v958_v37  ;;  %vm975_vm8 = vweird.f32 %v958_v37 }
 0xc48   :  { %v2207_v39 = vpop.eup %2206 }
 0xc49   :  { %v970_v40 = vmul.f32 %v2207_v39, %v958_v37  ;;  %vm976_vm7 = vweird.f32 %v2207_v39 }
 0xc4a   :  { %vm977_vm11 = vmor %vm975_vm8, %vm976_vm7 }
 0xc4b   :  { %v971_v41 = vmul.f32 %v2207_v39, %v970_v40 }
 0xc4d   :  { %v972_v44 = vmul.f32 0.5, %v971_v41 }
 0xc4f   :  { %v973_v45 = vsub.f32 1.5, %v972_v44 }
 0xc51   :  { %v974_v27 = vmul.f32 %v2207_v39, %v973_v45 }
 0xc53   :  { %v978_v47 = vsel %vm977_vm11, %v2207_v39, %v974_v27 }
 0xc54   :  { %v980_v48 = vmul.f32 %v978_v47, %v946_v23 }
 0xc56   :  { %v985_v33 = vmul.f32 %v2146_v3, %v980_v48  ;;  %v1164_v3 = vpop.permute.xlu0 %1163 }
 0xc58   :  { %v2744_v50 = vadd.f32 %v2147_v5, %v985_v33 }
 0xc5a   :  { %1070 = vrot.lane.b32.xlu1 %v2718_v16, %s2286_s25  ;;  %2062 = vmatmul.msk.f32.gmra.mxu1 %vm71_vm0, %v2744_v50 }
 0xc62   :  { %1230 = vrot.lane.b32.xlu1 %v2718_v16, %s3028_s5  ;;  %2067 = vmatmul.msk.f32.vlgmr.msrb.gmra.mxu1 %vm175_vm5, %v1097_v30 }
 0xcb4   :  { %v1061_v49 = vpop.xlane.xlu1 %1060 }
 0xcb5   :  { %v1062_v51 = vsub.f32 %v1058_v36, %v1061_v49 }
 0xcb7   :  { %v1063_v52 = vmul.f32 1.442695, %v1062_v51 }
 0xcb9   :  { %2208 = vpow2.f32 %v1063_v52 }
 0xcbf   :  { %v2209_v53 = vpop.eup %2208 }
 0xcc0   :  { %v1065_v54 = vsel %vm175_vm5, %v2209_v53, 0.0 }
 0xcc1   :  { %1066 = vadd.xlane.f32.xlu2 %v1065_v54 }
 0xccc   :  { %v1071_v55 = vpop.permute.xlu1 %1070 }
 0xccd   :  { %1091 = vmatpush.msra.mxu0 %v1071_v55 }
 0xccf   :  { %2069 = vmatpush.xpose.msk.msrb.mxu0 %vm175_vm5, %v1166_v22 }
 0xcd4   :  { %v1231_v56 = vpop.permute.xlu1 %1230 }
 0xcd5   :  { %2073 = vmatmul.msk.f32.vlgmr.msra.gmra.mxu1 %vm175_vm5, %v1231_v56 }
 0xcd7   :  { %v1027_v57 = vpop.f32.mrf.mxu1 }
 0xcd8   :  { %v2757_v58 = vadd.f32 %v2715_v14, %v1027_v57 }
 0xcda   :  { %1378 = vrot.lane.b32.xlu1 %v2757_v58, %s3022_s26  ;;  %1380 = vrot.lane.b32.xlu0 %v2757_v58, %s3024_s30 }
 0xcdb   :  { %1313 = vrot.lane.b32.xlu2 %v2757_v58, %s3023_s27 }
 0xcdf   :  { %v1121_v18 = vpop.f32.mrf.mxu1 }
 0xce0   :  { %v1124_v59 = vmul.f32 0.35355338, %v1121_v18 }
 0xce2   :  { %1445 = vrot.lane.b32.xlu1 %v2757_v58, %s3027_s21  ;;  %1514 = vrot.lane.b32.xlu0 %v2757_v58, %s3026_s0  ;;  %v1125_v60 = vadd.f32 %v1124_v59, %v2471_v43  ;;  %s2301_s21 = smov [#allocation2]  }
 0xce3   :  { %1447 = vrot.lane.b32.xlu2 %v2757_v58, %s3025_s6 }
 0xce4   :  { %v1126_v61 = vsel %vm175_vm5, %v1125_v60, -inf }
 0xceb   :  { %1512 = vrot.lane.b32.xlu2 %v2757_v58, %s3028_s5  ;;  %s2013_s5 = sshll.u32 %s2301_s21, 4  ;;  %s2014_s5 = int_to_ptr.vmem [resolvable:$true] %s2013_s5 }
 0xcf3   :  { %1137 = vrot.lane.b32.xlu2 %v2718_v16, %s3029_s24 }
 0xd0c   :  { %1127 = vmax.xlane.f32.xlu0 %v1126_v61 }
 0xd34   :  { %v1067_v62 = vpop.xlane.xlu2 %1066 }
 0xd35   :  { %2210 = vrcp.f32 %v1067_v62 }
 0xd3b   :  { %v2211_v0 = vpop.eup %2210 }
 0xd3c   :  { %v1069_v1 = vmul.f32 %v2211_v0, %v2209_v53  ;;  %v1314_v2 = vpop.permute.xlu2 %1313 }
 0xd3e   :  { %2065 = vmatmul.msk.f32.vlgmr.msra.gmra.mxu0 %vm175_vm5, %v1069_v1 }
 0xd3f   :  { %2075 = vmatpush.xpose.msk.msra.mxu0 %vm175_vm5, %v1314_v2 }
 0xd44   :  { %v1448_v63 = vpop.permute.xlu2 %1447 }
 0xd46   :  { %2070 = vmatmul.msk.f32.vlgmr.msrb.gmra.mxu0 %vm175_vm5, %v1164_v3 }
 0xd47   :  { %2081 = vmatpush.xpose.msk.msrb.mxu0 %vm175_vm5, %v1448_v63 }
 0xd4c   :  { %v1381_v46 = vpop.permute.xlu0 %1380  ;;  %v1513_v5 = vpop.permute.xlu2 %1512 }
 0xd4d   :  { %v1379_v6 = vpop.permute.xlu1 %1378  ;;  %2078 = vmatpush.xpose.msk.msrb.mxu1 %vm175_vm5, %v1381_v46 }
 0xd4e   :  { %2076 = vmatmul.msk.f32.vlgmr.msra.gmra.mxu0 %vm175_vm5, %v2757_v58 }
 0xd50   :  { %2079 = vmatmul.msk.f32.vlgmr.msrb.gmra.mxu1 %vm175_vm5, %v1379_v6 }
 0xd52   :  { %v1255_v7 = vpop.f32.mrf.mxu1 }
 0xd53   :  { %v1258_v11 = vmul.f32 0.35355338, %v1255_v7 }
 0xd54   :  { %v1515_v12 = vpop.permute.xlu0 %1514  ;;  %v1138_v13 = vpop.permute.xlu2 %1137 }
 0xd55   :  { %v1446_v14 = vpop.permute.xlu1 %1445  ;;  %1158 = vmatpush.msra.mxu3 %v1138_v13  ;;  %2084 = vmatpush.xpose.msk.msra.mxu1 %vm175_vm5, %v1515_v12  ;;  %v1259_v15 = vadd.f32 %v1258_v11, %v2471_v43 }
 0xd56   :  { %2082 = vmatmul.msk.f32.vlgmr.msrb.gmra.mxu0 %vm175_vm5, %v1446_v14 }
 0xd57   :  { %v1260_v17 = vsel %vm175_vm5, %v1259_v15, -inf }
 0xd58   :  { %1261 = vmax.xlane.f32.xlu2 %v1260_v17  ;;  %2085 = vmatmul.msk.f32.vlgmr.msra.gmra.mxu1 %vm175_vm5, %v1513_v5 }
 0xd7f   :  { %v1128_v32 = vpop.xlane.xlu0 %1127 }
 0xd80   :  { %v1129_v19 = vsub.f32 %v1125_v60, %v1128_v32 }
 0xd82   :  { %v1130_v20 = vmul.f32 1.442695, %v1129_v19 }
 0xd84   :  { %2212 = vpow2.f32 %v1130_v20 }
 0xd8a   :  { %v2213_v4 = vpop.eup %2212 }
 0xd8b   :  { %v1132_v35 = vsel %vm175_vm5, %v2213_v4, 0.0 }
 0xd8c   :  { %1133 = vadd.xlane.f32.xlu2 %v1132_v35 }
 0xdbb   :  { %v2791_v42 = vpop.f32.mrf.mxu0 }
 0xdc3   :  { %v1188_v21 = vpop.f32.mrf.mxu0 }
 0xdc4   :  { %v1191_v22 = vmul.f32 0.35355338, %v1188_v21 }
 0xdc6   :  { %v1192_v23 = vadd.f32 %v1191_v22, %v2471_v43 }
 0xdc8   :  { %v1193_v24 = vsel %vm175_vm5, %v1192_v23, -inf }
 0xdc9   :  { %1194 = vmax.xlane.f32.xlu1 %v1193_v24 }
 0xdcb   :  { %v1262_v25 = vpop.xlane.xlu2 %1261  ;;  %v1336_v37 = vpop.f32.mrf.mxu0 }
 0xdcc   :  { %v1263_v26 = vsub.f32 %v1259_v15, %v1262_v25  ;;  %v1339_v39 = vmul.f32 0.35355338, %v1336_v37 }
 0xdcd   :  { %v1403_v28 = vpop.f32.mrf.mxu1 }
 0xdce   :  { %v1264_v29 = vmul.f32 1.442695, %v1263_v26  ;;  %v1406_v31 = vmul.f32 0.35355338, %v1403_v28  ;;  %v1340_v43 = vadd.f32 %v1339_v39, %v2551_v10 }
 0xdd0   :  { %2214 = vpow2.f32 %v1264_v29  ;;  %v1407_v34 = vadd.f32 %v1406_v31, %v2551_v10  ;;  %v1341_v45 = vsel %vm175_vm5, %v1340_v43, -inf }
 0xdd2   :  { %v1408_v36 = vsel %vm175_vm5, %v1407_v34, -inf }
 0xdd3   :  { %1409 = vmax.xlane.f32.xlu2 %v1408_v36  ;;  %v1470_v33 = vpop.f32.mrf.mxu0 }
 0xdd4   :  { %v1473_v30 = vmul.f32 0.35355338, %v1470_v33  ;;  %v2088_v33 = vld [vmem:[%s2977_s7 + $0x28] sm:$0xff] }
 0xdd5   :  { %v1537_v41 = vpop.f32.mrf.mxu1 }
 0xdd6   :  { %v2215_v38 = vpop.eup %2214  ;;  %v1540_v44 = vmul.f32 0.35355338, %v1537_v41  ;;  %v1474_v52 = vadd.f32 %v1473_v30, %v2551_v10 }
 0xdd7   :  { %v1266_v40 = vsel %vm175_vm5, %v2215_v38, 0.0 }
 0xdd8   :  { %1267 = vadd.xlane.f32.xlu0 %v1266_v40  ;;  %v1541_v27 = vadd.f32 %v1540_v44, %v2551_v10  ;;  %v1475_v53 = vsel %vm175_vm5, %v1474_v52, -inf }
 0xdda   :  { %v1542_v47 = vsel %vm175_vm5, %v1541_v27, -inf }
 0xde0   :  { %1342 = vmax.xlane.f32.xlu0 %v1341_v45 }
 0xde2   :  { %1271 = vrot.lane.b32.xlu1 %v2718_v16, %s2295_s28 }
 0xde8   :  { %1543 = vmax.xlane.f32.xlu0 %v1542_v47  ;;  %v2090_v47 = vld [vmem:[%s2977_s7 + $0x38] sm:$0xff] }
 0xde9   :  { %1622 = vmatpush.msra.mxu0 %v2090_v47 }
 0xdeb   :  { %1352 = vrot.lane.b32.xlu2 %v2757_v58, %s2286_s25  ;;  %s3030_s25 = smov 24  }
 0xdfc   :  { %1204 = vrot.lane.b32.xlu0 %v2718_v16, %s2296_s23 }
 0xdff   :  { %v1134_v48 = vpop.xlane.xlu2 %1133 }
 0xe00   :  { %2216 = vrcp.f32 %v1134_v48  ;;  %v2089_v48 = vld [vmem:[%s2977_s7 + $0x30] sm:$0xff] }
 0xe01   :  { %1623 = vmatpush.msra.mxu0 %v2089_v48 }
 0xe03   :  { %1624 = vmatpush.msra.mxu0 %v2088_v33 }
 0xe06   :  { %v2217_v49 = vpop.eup %2216 }
 0xe07   :  { %v1136_v51 = vmul.f32 %v2217_v49, %v2213_v4 }
 0xe09   :  { %2068 = vmatmul.msk.f32.vlgmr.msra.gmra.mxu3 %vm175_vm5, %v1136_v51 }
 0xe0c   :  { %1476 = vmax.xlane.f32.xlu1 %v1475_v53  ;;  %v2087_v53 = vld [vmem:[%s2977_s7 + $0x20] sm:$0xff] }
 0xe0d   :  { %1625 = vmatpush.msra.mxu0 %v2087_v53 }
 0xe3c   :  { %v1195_v54 = vpop.xlane.xlu1 %1194 }
 0xe3d   :  { %v1196_v55 = vsub.f32 %v1192_v23, %v1195_v54 }
 0xe3f   :  { %v1197_v56 = vmul.f32 1.442695, %v1196_v55 }
 0xe41   :  { %2218 = vpow2.f32 %v1197_v56 }
 0xe46   :  { %v1410_v57 = vpop.xlane.xlu2 %1409 }
 0xe47   :  { %v2219_v18 = vpop.eup %2218  ;;  %v1411_v16 = vsub.f32 %v1407_v34, %v1410_v57 }
 0xe48   :  { %v1199_v59 = vsel %vm175_vm5, %v2219_v18, 0.0 }
 0xe49   :  { %v1412_v60 = vmul.f32 1.442695, %v1411_v16  ;;  %1200 = vadd.xlane.f32.xlu1 %v1199_v59 }
 0xe4b   :  { %2220 = vpow2.f32 %v1412_v60  ;;  %v1268_v61 = vpop.xlane.xlu0 %1267 }
 0xe4c   :  { %2222 = vrcp.f32 %v1268_v61 }
 0xe4e   :  { %v1353_v17 = vpop.permute.xlu2 %1352 }
 0xe51   :  { %v2221_v10 = vpop.eup %2220 }
 0xe52   :  { %v2223_v62 = vpop.eup %2222  ;;  %v1414_v0 = vsel %vm175_vm5, %v2221_v10, 0.0 }
 0xe53   :  { %v1270_v1 = vmul.f32 %v2223_v62, %v2215_v38  ;;  %v1343_v2 = vpop.xlane.xlu0 %1342  ;;  %1415 = vadd.xlane.f32.xlu1 %v1414_v0 }
 0xe54   :  { %v1344_v3 = vsub.f32 %v1340_v43, %v1343_v2  ;;  %v1272_v63 = vpop.permute.xlu1 %1271 }
 0xe55   :  { %1292 = vmatpush.msrb.mxu3 %v1272_v63 }
 0xe56   :  { %v1345_v46 = vmul.f32 1.442695, %v1344_v3  ;;  %2074 = vmatmul.msk.f32.vlgmr.msrb.gmra.mxu3 %vm175_vm5, %v1270_v1 }
 0xe58   :  { %2224 = vpow2.f32 %v1345_v46 }
 0xe5b   :  { %v1544_v5 = vpop.xlane.xlu0 %1543 }
 0xe5c   :  { %v1545_v6 = vsub.f32 %v1541_v27, %v1544_v5 }
 0xe5e   :  { %v2225_v7 = vpop.eup %2224  ;;  %v1546_v11 = vmul.f32 1.442695, %v1545_v6 }
 0xe5f   :  { %v1347_v12 = vsel %vm175_vm5, %v2225_v7, 0.0 }
 0xe60   :  { %2226 = vpow2.f32 %v1546_v11  ;;  %1348 = vadd.xlane.f32.xlu1 %v1347_v12 }
 0xe66   :  { %v2227_v13 = vpop.eup %2226 }
 0xe67   :  { %v1548_v14 = vsel %vm175_vm5, %v2227_v13, 0.0 }
 0xe68   :  { %1549 = vadd.xlane.f32.xlu2 %v1548_v14 }
 0xe6e   :  { %v1205_v15 = vpop.permute.xlu0 %1204 }
 0xe6f   :  { %1225 = vmatpush.msrb.mxu2 %v1205_v15 }
 0xe71   :  { %1373 = vmatpush.msra.mxu2 %v1353_v17 }
 0xe79   :  { %1419 = vrot.lane.b32.xlu1 %v2757_v58, %s3029_s24 }
 0xe7f   :  { %v1477_v32 = vpop.xlane.xlu1 %1476 }
 0xe80   :  { %v1478_v19 = vsub.f32 %v1474_v52, %v1477_v32 }
 0xe81   :  { %1486 = vrot.lane.b32.xlu1 %v2757_v58, %s2296_s23 }
 0xe82   :  { %v1479_v20 = vmul.f32 1.442695, %v1478_v19 }
 0xe84   :  { %2228 = vpow2.f32 %v1479_v20 }
 0xe89   :  { %1553 = vrot.lane.b32.xlu1 %v2757_v58, %s2295_s28  ;;  %s3031_s28 = smov 16  }
 0xe8a   :  { %v2229_v4 = vpop.eup %2228 }
 0xe8b   :  { %v1481_v35 = vsel %vm175_vm5, %v2229_v4, 0.0 }
 0xe8c   :  { %1482 = vadd.xlane.f32.xlu0 %v1481_v35  ;;  %v1160_v21 = vpop.f32.mrf.mxu3  ;;  %v2097_v35 = vld [vmem:[%s2981_s11 + $0x28] sm:$0xff] }
 0xea0   :  { %1298 = vrot.lane.b32.xlu0 %v1160_v21, %s2297_s4  ;;  %v2096_v21 = vld [vmem:[%s2981_s11 + $0x20] sm:$0xff] }
 0xebc   :  { %v1201_v22 = vpop.xlane.xlu1 %1200 }
 0xebd   :  { %2230 = vrcp.f32 %v1201_v22 }
 0xec3   :  { %v2231_v23 = vpop.eup %2230 }
 0xec4   :  { %v1203_v24 = vmul.f32 %v2231_v23, %v2219_v18 }
 0xec6   :  { %2071 = vmatmul.msk.f32.vlgmr.msrb.gmra.mxu2 %vm175_vm5, %v1203_v24  ;;  %v1416_v25 = vpop.xlane.xlu1 %1415 }
 0xed3   :  { %v1349_v26 = vpop.xlane.xlu1 %1348 }
 0xed4   :  { %2232 = vrcp.f32 %v1349_v26 }
 0xed5   :  { %2234 = vrcp.f32 %v1416_v25 }
 0xed9   :  { %v1294_v28 = vpop.f32.mrf.mxu3 }
 0xeda   :  { %v2233_v29 = vpop.eup %2232  ;;  %1306 = vrot.lane.b32.xlu2 %v1294_v28, %s3030_s25 }
 0xedb   :  { %v1351_v58 = vmul.f32 %v2233_v29, %v2225_v7  ;;  %v2235_v31 = vpop.eup %2234  ;;  %v1550_v37 = vpop.xlane.xlu2 %1549 }
 0xedc   :  { %v1418_v34 = vmul.f32 %v2235_v31, %v2221_v10  ;;  %2236 = vrcp.f32 %v1550_v37 }
 0xedd   :  { %2077 = vmatmul.msk.f32.vlgmr.msra.gmra.mxu2 %vm175_vm5, %v1351_v58 }
 0xee2   :  { %v2237_v39 = vpop.eup %2236 }
 0xee3   :  { %v1552_v40 = vmul.f32 %v2237_v39, %v2227_v13 }
 0xeeb   :  { %v1420_v36 = vpop.permute.xlu1 %1419 }
 0xeec   :  { %1440 = vmatpush.msra.mxu3 %v1420_v36 }
 0xeed   :  { %2080 = vmatmul.msk.f32.vlgmr.msra.gmra.mxu3 %vm175_vm5, %v1418_v34  ;;  %v2150_v34 = vld [vmem:[%s2979_s9 + $0x1] ss:$0 sm:$0xff] }
 0xef3   :  { %v1487_v38 = vpop.permute.xlu1 %1486 }
 0xef4   :  { %1507 = vmatpush.msrb.mxu2 %v1487_v38  ;;  %v2151_v38 = vld [vmem:[%s2980_s10 + $0x1] ss:$0 sm:$0xff] }
 0xefb   :  { %v1554_v43 = vpop.permute.xlu1 %1553 }
 0xefc   :  { %1574 = vmatpush.msrb.mxu3 %v1554_v43 }
 0xefd   :  { %2086 = vmatmul.msk.f32.vlgmr.msrb.gmra.mxu3 %vm175_vm5, %v1552_v40 }
 0xeff   :  { %v1483_v41 = vpop.xlane.xlu0 %1482 }
 0xf00   :  { %2238 = vrcp.f32 %v1483_v41 }
 0xf06   :  { %v2239_v44 = vpop.eup %2238 }
 0xf07   :  { %v1485_v45 = vmul.f32 %v2239_v44, %v2229_v4  ;;  %v2098_v4 = vld [vmem:[%s2981_s11 + $0x30] sm:$0xff] }
 0xf09   :  { %2083 = vmatmul.msk.f32.vlgmr.msrb.gmra.mxu2 %vm175_vm5, %v1485_v45 }
 0xf12   :  { %v1299_v54 = vpop.permute.xlu0 %1298 }
 0xf13   :  { %v1309_v55 = vsel %vm175_vm5, %v2791_v42, %v1299_v54  ;;  %v2149_v42 = vld [vmem:[%s2978_s8 + $0x1] ss:$0 sm:$0xff]  ;;  %v2110_v54 = vld [vmem:[%s2983_s13 + $0x78] sm:$0xff] }
 0xf14   :  { %1778 = vmatpush.msrb.mxu1 %v2110_v54 }
 0xf34   :  { %v1307_v57 = vpop.permute.xlu2 %1306 }
 0xf49   :  { %v1227_v27 = vpop.f32.mrf.mxu2 }
 0xf4a   :  { %1302 = vrot.lane.b32.xlu1 %v1227_v27, %s3031_s28 }
 0xf60   :  { %v1375_v51 = vpop.f32.mrf.mxu2 }
 0xf70   :  { %v1442_v30 = vpop.f32.mrf.mxu3 }
 0xf71   :  { %1580 = vrot.lane.b32.xlu1 %v1442_v30, %s2297_s4  ;;  %s3032_s4 = sld [smem:[#allocation7_spill]] }
 0xf80   :  { %v1576_v49 = vpop.f32.mrf.mxu3 }
 0xf81   :  { %1588 = vrot.lane.b32.xlu0 %v1576_v49, %s3030_s25 }
 0xf8c   :  { %v1509_v52 = vpop.f32.mrf.mxu2 }
 0xf8d   :  { %1584 = vrot.lane.b32.xlu1 %v1509_v52, %s3031_s28  ;;  %s2015_s28 = sshll.u32 %s2990_s20, 4  ;;  %s2016_s28 = int_to_ptr.hbm [resolvable:$true] %s2015_s28 }
 0xfbc   :  { %v1303_v56 = vpop.permute.xlu1 %1302 }
 0xfbd   :  { %v1310_v18 = vsel %vm454_vm9, %v1309_v55, %v1303_v56  ;;  %v2109_v55 = vld [vmem:[%s2983_s13 + $0x70] sm:$0xff]  ;;  %v2108_v56 = vld [vmem:[%s2983_s13 + $0x68] sm:$0xff] }
 0xfbe   :  { %v1311_v16 = vsel %vm456_vm10, %v1310_v18, %v1307_v57  ;;  %1779 = vmatpush.msrb.mxu1 %v2109_v55  ;;  %v2107_v57 = vld [vmem:[%s2983_s13 + $0x60] sm:$0xff]  ;;  %v2106_v18 = vld [vmem:[%s2983_s13 + $0x58] sm:$0xff] }
 0xfbf   :  { %2092 = vmatmul.msk.f32.vlgmr.msra.gmra.mxu0 %vm71_vm0, %v1311_v16  ;;  %v2105_v16 = vld [vmem:[%s2983_s13 + $0x50] sm:$0xff] }
 0xfc0   :  { %1780 = vmatpush.msrb.mxu1 %v2108_v56  ;;  %v2258_v56 = vld [vmem:[%s3021_s29] sm:$0x3] }
 0xfc2   :  { %1781 = vmatpush.msrb.mxu1 %v2107_v57  ;;  %v1920_v57 = vsel %vm1919_vm4, %v2258_v56, 0.0  ;;  %vm1979_vm4 = vcmask 123904  }
 0xfc4   :  { %1782 = vmatpush.msrb.mxu1 %v2106_v18  ;;  %v1877_v18 = vsel %vm1876_vm6, %v2258_v56, 0.0 }
 0xfc6   :  { %1783 = vmatpush.msrb.mxu1 %v2105_v16 }
 0xfe3   :  { %v1581_v59 = vpop.permute.xlu1 %1580 }
 0xfe4   :  { %v1591_v60 = vsel %vm175_vm5, %v1375_v51, %v1581_v59  ;;  %v2104_v59 = vld [vmem:[%s2983_s13 + $0x48] sm:$0xff] }
 0xfe5   :  { %1784 = vmatpush.msrb.mxu1 %v2104_v59 }
 0xff3   :  { %v1589_v10 = vpop.permute.xlu0 %1588 }
 0xfff   :  { %v1585_v61 = vpop.permute.xlu1 %1584 }
0x1000   :  { %v1592_v62 = vsel %vm454_vm9, %v1591_v60, %v1585_v61  ;;  %v2103_v60 = vld [vmem:[%s2983_s13 + $0x40] sm:$0xff] }
0x1001   :  { %v1593_v0 = vsel %vm456_vm10, %v1592_v62, %v1589_v10  ;;  %1785 = vmatpush.msrb.mxu1 %v2103_v60  ;;  %v2152_v61 = vld [vmem:[%s2982_s12 + $0x1] ss:$0 sm:$0xff] }
0x1002   :  { %2093 = vmatmul.msk.f32.gmra.mxu0 %vm71_vm0, %v1593_v0 }
0x103c   :  { %v1627_v1 = vpop.f32.mrf.mxu0 }
0x103d   :  { %v1628_v2 = vadd.f32 %v2149_v42, %v1627_v1 }
0x103f   :  { %v1633_v3 = vadd.f32 %v1628_v2, %v2707_v9 }
0x1041   :  { %v1639_v63 = vsel %vm71_vm0, %v1633_v3, 0.0 }
0x1042   :  { %1640 = vadd.xlane.f32.xlu1 %v1639_v63 }
0x107f   :  { %v1630_v46 = vpop.f32.mrf.mxu0 }
0x1080   :  { %v1631_v5 = vadd.f32 %v2149_v42, %v1630_v46 }
0x1082   :  { %v1634_v6 = vadd.f32 %v1631_v5, %v2744_v50  ;;  %v2099_v50 = vld [vmem:[%s2981_s11 + $0x38] sm:$0xff] }
0x1083   :  { %1721 = vmatpush.msra.mxu2 %v2099_v50  ;;  %v2153_v50 = vld [vmem:[%s2984_s14 + $0x1] ss:$0 sm:$0xff] }
0x1084   :  { %v1642_v7 = vsel %vm71_vm0, %v1634_v6, 0.0 }
0x1085   :  { %1643 = vadd.xlane.f32.xlu0 %v1642_v7  ;;  %1722 = vmatpush.msra.mxu2 %v2098_v4 }
0x1087   :  { %1723 = vmatpush.msra.mxu2 %v2097_v35 }
0x1089   :  { %1724 = vmatpush.msra.mxu2 %v2096_v21 }
0x10b5   :  { %v1641_v11 = vpop.xlane.xlu1 %1640 }
0x10b6   :  { %v1645_v12 = vmul.f32 %v1641_v11, %v2411_v8 }
0x10b8   :  { %v1647_v13 = vsub.f32 %v1633_v3, %v1645_v12 }
0x10ba   :  { %v1649_v14 = vmul.f32 %v1647_v13, %v1647_v13 }
0x10bc   :  { %v1651_v15 = vsel %vm71_vm0, %v1649_v14, 0.0 }
0x10bd   :  { %1652 = vadd.xlane.f32.xlu2 %v1651_v15 }
0x10f8   :  { %v1644_v17 = vpop.xlane.xlu0 %1643 }
0x10f9   :  { %v1646_v9 = vmul.f32 %v1644_v17, %v2411_v8 }
0x10fb   :  { %v1648_v32 = vsub.f32 %v1634_v6, %v1646_v9 }
0x10fd   :  { %v1650_v19 = vmul.f32 %v1648_v32, %v1648_v32 }
0x10ff   :  { %v1654_v20 = vsel %vm71_vm0, %v1650_v19, 0.0 }
0x1100   :  { %1655 = vadd.xlane.f32.xlu1 %v1654_v20 }
0x1130   :  { %v1653_v22 = vpop.xlane.xlu2 %1652 }
0x1131   :  { %v1657_v23 = vmul.f32 %v1653_v22, %v2411_v8 }
0x1133   :  { %v1659_v24 = vadd.f32 1e-12, %v1657_v23 }
0x1135   :  { %2240 = vrsqrt.f32 %v1659_v24  ;;  %vm1667_vm10 = vweird.f32 %v1659_v24 }
0x113b   :  { %v2241_v25 = vpop.eup %2240 }
0x113c   :  { %v1662_v26 = vmul.f32 %v2241_v25, %v1659_v24  ;;  %vm1668_vm9 = vweird.f32 %v2241_v25 }
0x113d   :  { %vm1669_vm12 = vmor %vm1667_vm10, %vm1668_vm9 }
0x113e   :  { %v1663_v28 = vmul.f32 %v2241_v25, %v1662_v26 }
0x1140   :  { %v1664_v29 = vmul.f32 0.5, %v1663_v28 }
0x1142   :  { %v1665_v58 = vsub.f32 1.5, %v1664_v29 }
0x1144   :  { %v1666_v31 = vmul.f32 %v2241_v25, %v1665_v58 }
0x1146   :  { %v1670_v36 = vsel %vm1669_vm12, %v2241_v25, %v1666_v31 }
0x1147   :  { %v1681_v37 = vmul.f32 %v1670_v36, %v1647_v13 }
0x1149   :  { %v1686_v39 = vmul.f32 %v2150_v34, %v1681_v37 }
0x114b   :  { %v2885_v40 = vadd.f32 %v2151_v38, %v1686_v39 }
0x114d   :  { %2101 = vmatmul.msk.f32.vlgmr.msra.gmra.mxu2 %vm71_vm0, %v2885_v40 }
0x1173   :  { %v1656_v43 = vpop.xlane.xlu1 %1655 }
0x1174   :  { %v1658_v41 = vmul.f32 %v1656_v43, %v2411_v8 }
0x1176   :  { %v1660_v44 = vadd.f32 1e-12, %v1658_v41 }
0x1178   :  { %2242 = vrsqrt.f32 %v1660_v44  ;;  %vm1677_vm15 = vweird.f32 %v1660_v44 }
0x117e   :  { %v2243_v45 = vpop.eup %2242 }
0x117f   :  { %v1672_v27 = vmul.f32 %v2243_v45, %v1660_v44  ;;  %vm1678_vm13 = vweird.f32 %v2243_v45 }
0x1180   :  { %vm1679_vm1 = vmor %vm1677_vm15, %vm1678_vm13 }
0x1181   :  { %v1673_v47 = vmul.f32 %v2243_v45, %v1672_v27 }
0x1183   :  { %v1674_v48 = vmul.f32 0.5, %v1673_v47 }
0x1185   :  { %v1675_v33 = vsub.f32 1.5, %v1674_v48 }
0x1187   :  { %v1676_v30 = vmul.f32 %v2243_v45, %v1675_v33 }
0x1189   :  { %v1680_v49 = vsel %vm1679_vm1, %v2243_v45, %v1676_v30 }
0x118a   :  { %v1682_v51 = vmul.f32 %v1680_v49, %v1648_v32  ;;  %v2154_v49 = vld [vmem:[%s2985_s15 + $0x1] ss:$0 sm:$0xff] }
0x118c   :  { %v1687_v52 = vmul.f32 %v2150_v34, %v1682_v51 }
0x118e   :  { %v1692_v53 = vadd.f32 %v2151_v38, %v1687_v52 }
0x1190   :  { %2102 = vmatmul.msk.f32.gmra.mxu2 %vm71_vm0, %v1692_v53 }
0x11d0   :  { %v1726_v10 = vpop.f32.mrf.mxu2 }
0x11d1   :  { %v1727_v62 = vadd.f32 %v2152_v61, %v1726_v10 }
0x11d3   :  { %v1732_v0 = vmul.f32 %v1727_v62, %v1727_v62 }
0x11d5   :  { %v1734_v42 = vmul.f32 %v1732_v0, %v1727_v62 }
0x11d7   :  { %v1736_v1 = vmul.f32 0.044715, %v1734_v42 }
0x11d9   :  { %v1738_v2 = vadd.f32 %v1736_v1, %v1727_v62 }
0x11db   :  { %v1740_v3 = vmul.f32 0.7978846, %v1738_v2 }
0x11dd   :  { %2244 = vtanh.f32 %v1740_v3 }
0x11e3   :  { %v2245_v63 = vpop.eup %2244 }
0x11e4   :  { %v1744_v46 = vadd.f32 1.0, %v2245_v63 }
0x11e6   :  { %v1746_v5 = vmul.f32 0.5, %v1744_v46  ;;  %v1896_v46 = vrot.slane %v2258_v56, 1 }
0x11e8   :  { %v1748_v6 = vmul.f32 %v1746_v5, %v1727_v62 }
0x11ea   :  { %2112 = vmatmul.msk.f32.vlgmr.msrb.gmra.mxu1 %vm903_vm14, %v1748_v6 }
0x1213   :  { %v1729_v7 = vpop.f32.mrf.mxu2 }
0x1214   :  { %v1730_v11 = vadd.f32 %v2152_v61, %v1729_v7 }
0x1216   :  { %v1733_v12 = vmul.f32 %v1730_v11, %v1730_v11 }
0x1218   :  { %v1735_v13 = vmul.f32 %v1733_v12, %v1730_v11 }
0x121a   :  { %v1737_v14 = vmul.f32 0.044715, %v1735_v13 }
0x121c   :  { %v1739_v15 = vadd.f32 %v1737_v14, %v1730_v11  ;;  %v1949_v14 = vld [vmem:[%s2987_s17 + $0x10] sm:$0xff] }
0x121e   :  { %v1741_v17 = vmul.f32 0.7978846, %v1739_v15  ;;  %v1948_v15 = vld [vmem:[%s2987_s17 + $0x8] sm:$0xff] }
0x1220   :  { %2246 = vtanh.f32 %v1741_v17  ;;  %v1947_v17 = vld [vmem:[%s2987_s17] sm:$0xff] }
0x1226   :  { %v2247_v9 = vpop.eup %2246 }
0x1227   :  { %v1745_v32 = vadd.f32 1.0, %v2247_v9 }
0x1229   :  { %v1747_v19 = vmul.f32 0.5, %v1745_v32 }
0x122b   :  { %v1749_v20 = vmul.f32 %v1747_v19, %v1730_v11 }
0x122d   :  { %2113 = vmatmul.msk.f32.gmra.mxu1 %vm903_vm14, %v1749_v20 }
0x1267   :  { %v1787_v4 = vpop.f32.mrf.mxu1 }
0x1268   :  { %v1788_v35 = vadd.f32 %v2153_v50, %v1787_v4 }
0x126a   :  { %v1793_v21 = vadd.f32 %v1788_v35, %v2885_v40 }
0x126c   :  { %v1799_v22 = vsel %vm71_vm0, %v1793_v21, 0.0 }
0x126d   :  { %1800 = vadd.xlane.f32.xlu0 %v1799_v22 }
0x12aa   :  { %v1790_v23 = vpop.f32.mrf.mxu1 }
0x12ab   :  { %v1791_v24 = vadd.f32 %v2153_v50, %v1790_v23 }
0x12ad   :  { %v1794_v25 = vadd.f32 %v1791_v24, %v1692_v53  ;;  %v2155_v53 = vld [vmem:[%s2986_s16 + $0x1] ss:$0 sm:$0xff] }
0x12af   :  { %v1802_v26 = vsel %vm71_vm0, %v1794_v25, 0.0 }
0x12b0   :  { %1803 = vadd.xlane.f32.xlu2 %v1802_v26 }
0x12b8   :  { %1921 = vadd.xlane.f32.xlu2 %v1920_v57 }
0x12e0   :  { %v1801_v28 = vpop.xlane.xlu0 %1800 }
0x12e1   :  { %v1805_v29 = vmul.f32 %v1801_v28, %v2411_v8 }
0x12e3   :  { %v1807_v58 = vsub.f32 %v1793_v21, %v1805_v29 }
0x12e5   :  { %v1809_v31 = vmul.f32 %v1807_v58, %v1807_v58 }
0x12e7   :  { %v1811_v34 = vsel %vm71_vm0, %v1809_v31, 0.0 }
0x12e8   :  { %1812 = vadd.xlane.f32.xlu1 %v1811_v34 }
0x12f0   :  { %1878 = vadd.xlane.f32.xlu1 %v1877_v18 }
0x1323   :  { %v1804_v36 = vpop.xlane.xlu2 %1803 }
0x1324   :  { %v1806_v37 = vmul.f32 %v1804_v36, %v2411_v8 }
0x1326   :  { %v1808_v38 = vsub.f32 %v1794_v25, %v1806_v37 }
0x1328   :  { %v1810_v39 = vmul.f32 %v1808_v38, %v1808_v38 }
0x132a   :  { %v1814_v40 = vsel %vm71_vm0, %v1810_v39, 0.0 }
0x132b   :  { %1815 = vadd.xlane.f32.xlu0 %v1814_v40  ;;  %v1922_v6 = vpop.xlane.xlu2 %1921 }
0x132c   :  { %v1923_v7 = vmax.f32 %v1922_v6, 1e-09 }
0x132e   :  { %v1925_v12 = vrot.slane %v1923_v7, 1 }
0x1330   :  { %vm1932_vm10 = vweird.f32 %v1925_v12  ;;  %v1938_v24 = vand.u32 2147483648, %v1925_v12  ;;  %v1936_v29 = vand.u32 2147483647, %v1925_v12 }
0x1332   :  { %v1939_v31 = vor.u32 1.1754944e-38, %v1938_v24 }
0x135b   :  { %v1813_v43 = vpop.xlane.xlu1 %1812 }
0x135c   :  { %v1817_v41 = vmul.f32 %v1813_v43, %v2411_v8 }
0x135e   :  { %v1819_v44 = vadd.f32 1e-12, %v1817_v41 }
0x1360   :  { %2248 = vrsqrt.f32 %v1819_v44  ;;  %vm1827_vm2 = vweird.f32 %v1819_v44 }
0x1363   :  { %v1879_v11 = vpop.xlane.xlu1 %1878 }
0x1364   :  { %v1880_v13 = vmax.f32 %v1879_v11, 1e-09 }
0x1366   :  { %v2249_v45 = vpop.eup %2248  ;;  %v1892_v23 = vand.u32 2147483648, %v1880_v13  ;;  %v1890_v26 = vand.u32 2147483647, %v1880_v13 }
0x1367   :  { %v1822_v27 = vmul.f32 %v2249_v45, %v1819_v44  ;;  %vm1828_vm14 = vweird.f32 %v2249_v45 }
0x1368   :  { %vm1829_vm3 = vmor %vm1827_vm2, %vm1828_vm14  ;;  %vm1891_vm1 = vcmp.eq.f32.partialorder %v1890_v26, 8.507059e+37  ;;  %vm1937_vm14 = vcmp.eq.f32.partialorder %v1936_v29, 8.507059e+37  ;;  %vm1945_vm2 = vcmask 1040384  }
0x1369   :  { %v1823_v47 = vmul.f32 %v2249_v45, %v1822_v27  ;;  %v2300_v27 = vmov 0  }
0x136a   :  { %2136 = vset.pattern.permute.xlu2 %v2300_v27  ;;  %2137 = vset.pattern.permute.xlu0 %v2300_v27 }
0x136b   :  { %v1824_v48 = vmul.f32 0.5, %v1823_v47 }
0x136d   :  { %v1825_v33 = vsub.f32 1.5, %v1824_v48  ;;  %v2156_v48 = vld [vmem:[%s2988_s18] ss:$0 sm:$0xff] }
0x136f   :  { %v1826_v30 = vmul.f32 %v2249_v45, %v1825_v33 }
0x1371   :  { %v1830_v51 = vsel %vm1829_vm3, %v2249_v45, %v1826_v30  ;;  %v1995_v45 = vld [vmem:[%s3032_s4] sm:$0x3] }
0x1372   :  { %v1841_v52 = vmul.f32 %v1830_v51, %v1807_v58  ;;  %v1893_v58 = vor.u32 1.1754944e-38, %v1892_v23  ;;  %vm1996_vm3 = vcmp.gt.f32.partialorder %v1995_v45, 0.5 }
0x1373   :  { %v1998_v47 = vsel %vm1996_vm3, 1, %v2300_v27 }
0x1374   :  { %v1846_v54 = vmul.f32 %v2154_v49, %v1841_v52  ;;  %2000 = vperm.xlu2 %2136, %v1998_v47  }
0x1376   :  { %v1851_v55 = vadd.f32 %v2155_v53, %v1846_v54 }
0x1378   :  { %1871 = vmatpush.msra.mxu3 %v1851_v55 }
0x1379   :  { %2116 = vmatmul.msk.f32.vlgmr.msra.gmra.mxu3 %vm175_vm5, %v2258_v56 }
0x139e   :  { %v1816_v16 = vpop.xlane.xlu0 %1815 }
0x139f   :  { %v1818_v59 = vmul.f32 %v1816_v16, %v2411_v8  ;;  %v1950_v8 = vld [vmem:[%s2987_s17 + $0x18] sm:$0xff] }
0x13a0   :  { %1970 = vmatpush.msrb.mxu0 %v1950_v8 }
0x13a1   :  { %v1820_v60 = vadd.f32 1e-12, %v1818_v59 }
0x13a2   :  { %1971 = vmatpush.msrb.mxu0 %v1949_v14 }
0x13a3   :  { %2250 = vrsqrt.f32 %v1820_v60  ;;  %vm1837_vm8 = vweird.f32 %v1820_v60 }
0x13a4   :  { %2252 = vrcp.f32 %v1925_v12  ;;  %1972 = vmatpush.msrb.mxu0 %v1948_v15 }
0x13a5   :  { %2254 = vrcp.f32 %v1880_v13 }
0x13a6   :  { %1973 = vmatpush.msrb.mxu0 %v1947_v17 }
0x13a9   :  { %v2251_v61 = vpop.eup %2250 }
0x13aa   :  { %v1832_v10 = vmul.f32 %v2251_v61, %v1820_v60  ;;  %vm1838_vm7 = vweird.f32 %v2251_v61  ;;  %v2253_v9 = vpop.eup %2252  ;;  %v2157_v60 = vld [vmem:[%s2989_s19] ss:$0 sm:$0xff] }
0x13ab   :  { %vm1839_vm11 = vmor %vm1837_vm8, %vm1838_vm7  ;;  %v2255_v32 = vpop.eup %2254  ;;  %v1928_v20 = vmul.f32 %v2253_v9, %v1925_v12  ;;  %vm1933_vm12 = vweird.f32 %v2253_v9 }
0x13ac   :  { %v1833_v62 = vmul.f32 %v2251_v61, %v1832_v10  ;;  %v1882_v19 = vmul.f32 %v2255_v32, %v1880_v13  ;;  %vm1887_vm9 = vweird.f32 %v2255_v32  ;;  %vm1934_vm15 = vmor %vm1932_vm10, %vm1933_vm12 }
0x13ad   :  { %v1929_v4 = vsub.f32 1.0, %v1928_v20 }
0x13ae   :  { %v1834_v0 = vmul.f32 0.5, %v1833_v62  ;;  %v1883_v50 = vsub.f32 1.0, %v1882_v19 }
0x13af   :  { %v1930_v21 = vmul.f32 %v2253_v9, %v1929_v4 }
0x13b0   :  { %v1835_v42 = vsub.f32 1.5, %v1834_v0  ;;  %v1884_v35 = vmul.f32 %v2255_v32, %v1883_v50 }
0x13b1   :  { %v1931_v28 = vadd.f32 %v2253_v9, %v1930_v21 }
0x13b2   :  { %v1836_v1 = vmul.f32 %v2251_v61, %v1835_v42  ;;  %v1885_v25 = vadd.f32 %v2255_v32, %v1884_v35 }
0x13b3   :  { %v1935_v36 = vsel %vm1934_vm15, %v2253_v9, %v1931_v28 }
0x13b4   :  { %v1840_v2 = vsel %vm1839_vm11, %v2251_v61, %v1836_v1  ;;  %v1940_v39 = vsel %vm1937_vm14, %v1939_v31, %v1935_v36 }
0x13b5   :  { %v1842_v3 = vmul.f32 %v1840_v2, %v1808_v38 }
0x13b7   :  { %v1847_v63 = vmul.f32 %v2154_v49, %v1842_v3 }
0x13b9   :  { %v1852_v5 = vadd.f32 %v2155_v53, %v1847_v63 }
0x13bb   :  { %1914 = vmatpush.msrb.mxu3 %v1852_v5 }
0x13bc   :  { %2117 = vmatmul.msk.f32.vlgmr.msrb.gmra.mxu3 %vm175_vm5, %v1896_v46  ;;  %vm1886_vm5 = vweird.f32 %v1880_v13 }
0x13bd   :  { %vm1888_vm13 = vmor %vm1886_vm5, %vm1887_vm9 }
0x13be   :  { %v1889_v34 = vsel %vm1888_vm13, %v2255_v32, %v1885_v25 }
0x13bf   :  { %v1894_v37 = vsel %vm1891_vm1, %v1893_v58, %v1889_v34 }
0x13ce   :  { %v2001_v16 = vpop.permute.xlu2 %2000 }
0x13cf   :  { %vm2002_vm8 = vcmp.eq.s32.totalorder %v2001_v16, 1 }
0x13fc   :  { %v1873_v22 = vpop.f32.mrf.mxu3 }
0x13fd   :  { %v1895_v43 = vmul.f32 %v1894_v37, %v1873_v22 }
0x143f   :  { %v1916_v38 = vpop.f32.mrf.mxu3 }
0x1440   :  { %v1941_v40 = vmul.f32 %v1940_v39, %v1916_v38 }
0x1442   :  { %v1943_v41 = vrot.slane %v1941_v40, 7 }
0x1444   :  { %v1946_v44 = vsel %vm1945_vm2, %v1895_v43, %v1943_v41 }
0x1445   :  { %2118 = vmatmul.msk.f32.vlgmr.msrb.gmra.mxu0 %vm71_vm0, %v1946_v44 }
0x14c2   :  { %v1975_v33 = vpop.f32.mrf.mxu0 }
0x14c3   :  { %v1976_v30 = vadd.f32 %v2156_v48, %v1975_v33 }
0x14c5   :  { %v1978_v49 = vmul.f32 %v1976_v30, %v1976_v30 }
0x14c7   :  { %v1980_v51 = vsel %vm1979_vm4, %v1978_v49, 0.0 }
0x14c8   :  { %1981 = vadd.xlane.f32.xlu0 %v1980_v51 }
0x153b   :  { %v1982_v52 = vpop.xlane.xlu0 %1981 }
0x153c   :  { %v1983_v53 = vmax.f32 %v1982_v52, 1e-24 }
0x153e   :  { %2256 = vrsqrt.f32 %v1983_v53  ;;  %vm1990_vm6 = vweird.f32 %v1983_v53 }
0x1544   :  { %v2257_v54 = vpop.eup %2256 }
0x1545   :  { %v1985_v55 = vmul.f32 %v2257_v54, %v1983_v53  ;;  %vm1991_vm0 = vweird.f32 %v2257_v54 }
0x1546   :  { %vm1992_vm7 = vmor %vm1990_vm6, %vm1991_vm0 }
0x1547   :  { %v1986_v56 = vmul.f32 %v2257_v54, %v1985_v55 }
0x1549   :  { %v1987_v57 = vmul.f32 0.5, %v1986_v56 }
0x154b   :  { %v1988_v18 = vsub.f32 1.5, %v1987_v57 }
0x154d   :  { %v1989_v59 = vmul.f32 %v2257_v54, %v1988_v18 }
0x154f   :  { %v1993_v61 = vsel %vm1992_vm7, %v2257_v54, %v1989_v59 }
0x1550   :  { %v1994_v10 = vmul.f32 %v1993_v61, %v1976_v30 }
0x1552   :  { %v2006_v62 = vsel %vm2002_vm8, %v2157_v60, %v1994_v10 }
0x1553   :  { %2007 = vst.msk [vmem:[#allocation2] sm:$0x3] %vm1979_vm4, %v2006_v62 }
0x1554   :  { %2018 = dma.vmem_to_hbm [thread:$0]  %s2014_s5, 32, %s2016_s28, [#allocation3]  }
0x1555   :  { %2283 = dma.done.wait [#allocation3], 32  }
0x1556   :  { %2284 = vsyncadd [#allocation3], 4294967264 }
0x1557   :  { %2023 = vsyncpa [#allocation3], 1 }

</bundles_post_ra>
